<compile_context>
chip_gen: v7x
topology: tpu7x:2x2x1
jax: 0.10.0
libtpu: 0.0.40
codegen_flags: <defaults>
</compile_context>

<pallas_src>
import functools

import jax
import jax.numpy as jnp
from jax.experimental import pallas as pl
from jax.experimental.pallas import tpu as pltpu

LN_EPS = 1e-5   # torch.nn.LayerNorm default eps


def _round_up(x: int, m: int) -> int:
    return -(-x // m) * m


# --------------------------- hardware-derived budgets ---------------------------

@functools.lru_cache(maxsize=None)
def _vmem_capacity_bytes() -> int:
    try:
        cap = int(getattr(pltpu.get_tpu_info(), "vmem_capacity_bytes", 0))
        if cap > 0:
            return cap
    except Exception:
        pass
    return 64 * 1024 * 1024  # conservative fallback (v7x per-TensorCore VMEM)


def _budgets():
    cap = _vmem_capacity_bytes()
    # Leave headroom for Mosaic internal scratch / compiler temporaries.
    scoped_cap = min(int(cap * 0.82), cap - 8 * 1024 * 1024)
    fuse_budget = int(cap * 0.65)
    multi_core = cap <= 80 * 1024 * 1024   # v7x-like: 64 MiB per TC, 2 TCs/chip
    return cap, scoped_cap, fuse_budget, multi_core


# ------------------------ Buffered(k) capability probe ------------------------

@functools.lru_cache(maxsize=None)
def _pipeline_mode_supported() -> bool:
    """Probe whether BlockSpec(pipeline_mode=pl.Buffered(k)) is accepted."""
    try:
        def _k(x_ref, o_ref):
            o_ref[...] = x_ref[...] + 1.0

        spec = pl.BlockSpec((8, 128), lambda i: (0, 0), pipeline_mode=pl.Buffered(1))
        f = pl.pallas_call(
            _k,
            out_shape=jax.ShapeDtypeStruct((8, 128), jnp.float32),
            grid=(1,),
            in_specs=[spec],
            out_specs=pl.BlockSpec((8, 128), lambda i: (0, 0)),
        )
        jax.block_until_ready(f(jnp.zeros((8, 128), jnp.float32)))
        return True
    except Exception:
        return False


# ------------------------------ Pallas kernel --------------------------------

def _make_mlp_kernel(num_hidden: int, has_out: bool):
    """Fused kernel: for each row tile, run all layers with weights resident in VMEM."""

    def kernel(*refs):
        x_ref = refs[0]
        o_ref = refs[-1]
        idx = 1
        h = x_ref[...]
        for _ in range(num_hidden):
            w_ref, lgb_ref = refs[idx], refs[idx + 1]
            idx += 2
            w = w_ref[...]                       # already in compute dtype (no in-kernel weight cast)
            lhs = h if h.dtype == w.dtype else h.astype(w.dtype)
            y = jnp.dot(lhs, w, preferred_element_type=jnp.float32)
            y = y + lgb_ref[0:1, :]              # bias (f32)
            # One-pass LayerNorm statistics: two independent XLU reductions.
            inv_n = 1.0 / y.shape[-1]
            s1 = jnp.sum(y, axis=-1, keepdims=True)
            s2 = jnp.sum(y * y, axis=-1, keepdims=True)
            mean = s1 * inv_n
            var = jnp.maximum(s2 * inv_n - mean * mean, 0.0)
            y = (y - mean) * jax.lax.rsqrt(var + LN_EPS)     # rsqrt -> EUP
            y = y * lgb_ref[1:2, :] + lgb_ref[2:3, :]        # gamma, beta (f32)
            h = jnp.maximum(y, 0.0)
        if has_out:
            w_ref, b_ref = refs[idx], refs[idx + 1]
            w = w_ref[...]
            lhs = h if h.dtype == w.dtype else h.astype(w.dtype)
            h = jnp.dot(lhs, w, preferred_element_type=jnp.float32) + b_ref[...]
        o_ref[...] = h.astype(o_ref.dtype)

    return kernel


# ------------------------------ tile planning --------------------------------

def _const_bytes(params, buf_factor: int) -> int:
    total = 0
    for (w, lgb) in params["layers"]:
        total += int(w.size) * w.dtype.itemsize + int(lgb.size) * lgb.dtype.itemsize
    if params["out"] is not None:
        w, b = params["out"]
        total += int(w.size) * w.dtype.itemsize + int(b.size) * b.dtype.itemsize
    return total * buf_factor


def _plan_tiles(n_rows, in_f, hidden, last, x_itemsize, const_bytes, multi_core):
    """Pick a 128-multiple row tile that fills the generation-aware VMEM budget."""
    _, scoped_cap, _, _ = _budgets()
    widest = max([in_f, last] + list(hidden))
    # double-buffered x tile + double-buffered out tile + ~4 live f32 intermediates
    per_row_bytes = 2 * in_f * x_itemsize + 2 * last * 4 + 4 * widest * 4
    avail = scoped_cap - const_bytes - 2 * 1024 * 1024
    tm_max = max(8, avail // per_row_bytes)
    if tm_max >= 128:
        tm_max = min(2048, (tm_max // 128) * 128)
    else:
        tm_max = max(8, (tm_max // 8) * 8)

    rows8 = _round_up(max(n_rows, 1), 8)
    rows128 = _round_up(max(n_rows, 1), 128)
    if multi_core and rows128 >= 256:
        # v7x: at least two 128-multiple row tiles so the row axis can shard
        # across both TensorCores.
        desired = max(128, (rows128 // 2 // 128) * 128)
    else:
        # Single-TC chips (v5e/v6e): one maximal tile — extra grid steps are
        # pure per-step overhead with no parallelism gain.
        desired = rows128
    tm = min(desired, tm_max)
    if tm >= 128:
        tm = (tm // 128) * 128
    if rows8 < 128 and rows8 <= tm_max:
        tm = rows8               # tiny inputs: don't pad rows all the way to 128
    tm = max(8, tm)
    padded_rows = _round_up(n_rows, tm)

    need = const_bytes + tm * per_row_bytes + 2 * 1024 * 1024
    vmem_limit = int(min(scoped_cap, max(32 * 1024 * 1024, need)))
    return tm, padded_rows, vmem_limit


# ------------------------------ kernel wrapper --------------------------------

def _mlp_block_2d(params, x2d):
    """Run (some or all) MLP layers on a flattened (rows, features) activation."""
    n_rows, in_f = x2d.shape
    hidden = [w.shape[1] for (w, _) in params["layers"]]
    out = params["out"]
    out_f = out[0].shape[1] if out is not None else None
    last = out_f if out_f is not None else (hidden[-1] if hidden else in_f)

    # Feed the MXU in the weights' dtype (e.g. bf16): cast x once in the wrapper
    # so its DMA is already narrow; accumulation stays f32 inside the kernel.
    w0 = params["layers"][0][0] if params["layers"] else out[0]
    if w0.dtype != x2d.dtype and w0.dtype != jnp.float32:
        x2d = x2d.astype(w0.dtype)
    x_itemsize = x2d.dtype.itemsize

    _, scoped_cap, _, multi_core = _budgets()
    single_buffer = _pipeline_mode_supported()
    buf_factor = 1 if single_buffer else 2
    const_bytes = _const_bytes(params, buf_factor)
    tm, padded_rows, vmem_limit = _plan_tiles(
        n_rows, in_f, hidden, last, x_itemsize, const_bytes, multi_core)

    if padded_rows != n_rows:
        x2d = jnp.pad(x2d, ((0, padded_rows - n_rows), (0, 0)))
    grid_steps = padded_rows // tm
    grid = (grid_steps,)

    def _const_spec(shape):
        ndim = len(shape)
        imap = lambda i, _nd=ndim: (0,) * _nd
        if single_buffer:
            # Constant index_map -> single buffer: halves resident weight VMEM.
            return pl.BlockSpec(shape, imap, pipeline_mode=pl.Buffered(1))
        return pl.BlockSpec(shape, imap)

    # Streaming x tile: deeper pipelining on long grids (hides DMA latency on
    # low-HBM-bandwidth chips) when VMEM headroom allows.
    x_spec = pl.BlockSpec((tm, in_f), lambda i: (i, 0))
    if (single_buffer and grid_steps >= 4
            and vmem_limit + tm * in_f * x_itemsize <= scoped_cap):
        x_spec = pl.BlockSpec((tm, in_f), lambda i: (i, 0),
                              pipeline_mode=pl.Buffered(3))
        vmem_limit = int(vmem_limit + tm * in_f * x_itemsize)

    in_specs = [x_spec]
    operands = [x2d]
    flops = 0
    fan_in = in_f
    for (w, lgb) in params["layers"]:
        hdim = w.shape[1]
        in_specs += [_const_spec((fan_in, hdim)), _const_spec((3, hdim))]
        operands += [w, lgb]
        flops += 2 * padded_rows * fan_in * hdim
        fan_in = hdim
    if out is not None:
        w, b = out
        in_specs += [_const_spec((fan_in, out_f)), _const_spec((1, out_f))]
        operands += [w, b]
        flops += 2 * padded_rows * fan_in * out_f

    param_bytes = sum(int(o.size) * o.dtype.itemsize for o in operands[1:])
    cost = pl.CostEstimate(
        flops=int(flops),
        transcendentals=int(padded_rows * len(hidden)),
        bytes_accessed=int(padded_rows * (in_f * x_itemsize + last * 4) + param_bytes),
    )

    kernel = _make_mlp_kernel(len(params["layers"]), out is not None)
    out_shape = jax.ShapeDtypeStruct((padded_rows, last), jnp.float32)
    out_spec = pl.BlockSpec((tm, last), lambda i: (i, 0))

    # Explicit core-parallel sharding on v7x-like chips (2 TensorCores),
    # otherwise plain "parallel"; fall back gracefully if a semantics value is
    # rejected by this JAX/Mosaic version.
    sem_options = []
    if multi_core and grid_steps >= 2:
        core_parallel = getattr(pltpu, "CORE_PARALLEL", None)
        if core_parallel is not None:
            sem_options.append((core_parallel,))
    sem_options += [("parallel",), ("arbitrary",)]

    last_err = None
    for sem in sem_options:
        try:
            result = pl.pallas_call(
                kernel,
                out_shape=out_shape,
                grid=grid,
                in_specs=in_specs,
                out_specs=out_spec,
                compiler_params=pltpu.CompilerParams(
                    dimension_semantics=sem,
                    vmem_limit_bytes=int(vmem_limit)),
                cost_estimate=cost,
            )(*operands)
            result = jax.block_until_ready(result)
            return result[:n_rows]
        except Exception as e:   # unsupported semantics on this generation, etc.
            last_err = e
    raise last_err


def mlp_forward(params, x):
    """x: (batch, seq, in_features) -> (batch, seq, last_dim)."""
    batch, seq, feat = x.shape
    h = x.reshape(batch * seq, feat)
    _, _, fuse_budget, _ = _budgets()
    buf_factor = 1 if _pipeline_mode_supported() else 2
    if _const_bytes(params, buf_factor) <= fuse_budget:
        # All weights resident in VMEM: one fused pallas_call for the whole MLP.
        h = _mlp_block_2d(params, h)
    else:
        # Fall back to one fused (Linear+LN+ReLU) call per layer.
        # TODO(synk): if a single layer's weight alone exceeds the VMEM budget,
        # add a K/N-tiled reduction grid axis with a VMEM f32 accumulator.
        for layer in params["layers"]:
            h = _mlp_block_2d({"layers": [layer], "out": None}, h)
        if params["out"] is not None:
            h = _mlp_block_2d({"layers": [], "out": params["out"]}, h)
    return h.reshape(batch, seq, h.shape[-1])


# ------------------------------ params / reference ----------------------------

def init_mlp_params(key, in_features, hidden_features, out_features=None,
                    dtype=jnp.float32):
    """Kaiming-uniform-ish init (like torch.nn.Linear). Weights are stored
    pre-transposed as (in, out); bias/gamma/beta packed as one (3, hdim) slab."""
    params = {"layers": [], "out": None}
    fan_in = in_features
    for hdim in hidden_features:
        key, kw, kb = jax.random.split(key, 3)
        bound = 1.0 / float(fan_in) ** 0.5
        w = jax.random.uniform(kw, (fan_in, hdim), dtype, -bound, bound)
        b = jax.random.uniform(kb, (1, hdim), dtype, -bound, bound)
        gamma = jnp.ones((1, hdim), dtype)
        beta = jnp.zeros((1, hdim), dtype)
        lgb = jnp.concatenate([b, gamma, beta], axis=0)   # (3, hdim): bias/gamma/beta
        params["layers"].append((w, lgb))
        fan_in = hdim
    if out_features is not None:
        key, kw, kb = jax.random.split(key, 3)
        bound = 1.0 / float(fan_in) ** 0.5
        w = jax.random.uniform(kw, (fan_in, out_features), dtype, -bound, bound)
        b = jax.random.uniform(kb, (1, out_features), dtype, -bound, bound)
        params["out"] = (w, b)
    return params


def prepare_params(params, compute_dtype=jnp.bfloat16):
    """Pre-cast weights ONCE on the host to the MXU compute dtype (bias and LN
    params stay f32; matmuls still accumulate in f32)."""
    layers = [(w.astype(compute_dtype), lgb) for (w, lgb) in params["layers"]]
    out = None
    if params["out"] is not None:
        w, b = params["out"]
        out = (w.astype(compute_dtype), b)
    return {"layers": layers, "out": out}


def mlp_reference(params, x):
    """Plain-JAX reference with the same mixed-precision policy as the kernel."""
    batch, seq, feat = x.shape
    h = x.reshape(batch * seq, feat)
    for (w, lgb) in params["layers"]:
        y = jnp.dot(h.astype(w.dtype), w, preferred_element_type=jnp.float32)
        y = y + lgb[0:1, :]
        mean = jnp.mean(y, axis=-1, keepdims=True)
        var = jnp.mean(jnp.square(y - mean), axis=-1, keepdims=True)
        y = (y - mean) / jnp.sqrt(var + LN_EPS)
        y = y * lgb[1:2, :] + lgb[2:3, :]
        h = jnp.maximum(y, 0.0)
    if params["out"] is not None:
        w, b = params["out"]
        h = jnp.dot(h.astype(w.dtype), w, preferred_element_type=jnp.float32) + b
    return h.reshape(batch, seq, h.shape[-1])


# ----------------------------------- main -------------------------------------

if __name__ == "__main__":
    key = jax.random.PRNGKey(0)
    k_param, k_x = jax.random.split(key)

    # Lane-dense feature dims (multiples of 128) and 256 rows.
    batch, seq = 2, 128
    in_features, hidden_features, out_features = 128, [128, 128], 128
    params_f32 = init_mlp_params(k_param, in_features, hidden_features, out_features)
    x = jax.random.normal(k_x, (batch, seq, in_features), jnp.float32)

    # Test 1: exact f32 path (weights left in f32) against plain-JAX reference.
    out_f32 = jax.block_until_ready(mlp_forward(params_f32, x))
    ref_f32 = mlp_reference(params_f32, x)
    assert out_f32.shape == (batch, seq, out_features), out_f32.shape
    err = float(jnp.max(jnp.abs(out_f32 - ref_f32)))
    assert err < 1e-3, f"f32 path mismatch: max abs err {err}"

    # Test 2: default perf path — weights pre-cast to bf16 (MXU-native inputs),
    # f32 accumulation + f32 LayerNorm; compare against a reference using the
    # same mixed-precision policy.
    params_bf16 = prepare_params(params_f32, jnp.bfloat16)
    out_bf16 = jax.block_until_ready(mlp_forward(params_bf16, x))
    ref_bf16 = mlp_reference(params_bf16, x)
    err_bf16 = float(jnp.max(jnp.abs(out_bf16 - ref_bf16)))
    assert err_bf16 < 2e-2, f"bf16 path mismatch: max abs err {err_bf16}"

    # Test 3: ragged row count (exercises row padding) and no output projection.
    k2p, k2x = jax.random.split(jax.random.PRNGKey(1))
    params2 = init_mlp_params(k2p, 32, [64], None)
    x2 = jax.random.normal(k2x, (2, 10, 32), jnp.float32)
    out2 = jax.block_until_ready(mlp_forward(params2, x2))
    ref2 = mlp_reference(params2, x2)
    assert out2.shape == (2, 10, 64), out2.shape
    err2 = float(jnp.max(jnp.abs(out2 - ref2)))
    assert err2 < 1e-3, f"ragged/padded path mismatch: max abs err {err2}"

    print("KERNEL_OK")
</pallas_src>

<mosaic_0001>
module attributes {stable_mosaic.version = 11 : i64} {
  func.func @_k(%arg0: i32, %arg1: memref<8x128xf32, #tpu.memory_space<vmem>>, %arg2: memref<8x128xf32, #tpu.memory_space<vmem>>) attributes {dimension_semantics = [#tpu.dimension_semantics<arbitrary>], iteration_bounds = array<i64: 1>, scalar_prefetch = 0 : i64, scratch_operands = 0 : i64, tpu.core_type = #tpu.core_type<tc>, window_params = [{pipeline_mode = #tpu.pipeline_mode<synchronous>, transform_indices = @transform_0, window_bounds = array<i64: 8, 128>}, {pipeline_mode = #tpu.pipeline_mode<synchronous>, transform_indices = @transform_1, window_bounds = array<i64: 8, 128>}]} {
    %c0 = arith.constant 0 : index
    %c0_0 = arith.constant 0 : index
    %0 = vector.load %arg1[%c0, %c0_0] : memref<8x128xf32, #tpu.memory_space<vmem>>, vector<8x128xf32>
    %cst = arith.constant 1.000000e+00 : f32
    %1 = vector.broadcast %cst : f32 to vector<8x128xf32>
    %2 = arith.addf %0, %1 : vector<8x128xf32>
    %c0_1 = arith.constant 0 : index
    %c0_2 = arith.constant 0 : index
    %3 = vector.load %arg2[%c0_1, %c0_2] : memref<8x128xf32, #tpu.memory_space<vmem>>, vector<8x128xf32>
    tpu.vector_store %arg2[%c0_1, %c0_2], %2 {strides = array<i32>} : memref<8x128xf32, #tpu.memory_space<vmem>>, vector<8x128xf32>,
    return
  }
  func.func @transform_0(%arg0: i32) -> (i32, i32) {
    %c0_i32 = arith.constant 0 : i32
    %c0_i32_0 = arith.constant 0 : i32
    %c0_i32_1 = arith.constant 0 : i32
    return %c0_i32, %c0_i32_0 : i32, i32
  }
  func.func @transform_1(%arg0: i32) -> (i32, i32) {
    %c0_i32 = arith.constant 0 : i32
    %c0_i32_0 = arith.constant 0 : i32
    %c0_i32_1 = arith.constant 0 : i32
    return %c0_i32, %c0_i32_0 : i32, i32
  }
}

module attributes {stable_mosaic.version = 11 : i64} {
  func.func @kernel(%arg0: i32, %arg1: memref<128x128xf32, #tpu.memory_space<vmem>>, %arg2: memref<128x128xf32, #tpu.memory_space<vmem>>, %arg3: memref<3x128xf32, #tpu.memory_space<vmem>>, %arg4: memref<128x128xf32, #tpu.memory_space<vmem>>, %arg5: memref<3x128xf32, #tpu.memory_space<vmem>>, %arg6: memref<128x128xf32, #tpu.memory_space<vmem>>, %arg7: memref<1x128xf32, #tpu.memory_space<vmem>>, %arg8: memref<128x128xf32, #tpu.memory_space<vmem>>) attributes {dimension_semantics = [#tpu.dimension_semantics<core_parallel>], iteration_bounds = array<i64: 2>, scalar_prefetch = 0 : i64, scratch_operands = 0 : i64, tpu.core_type = #tpu.core_type<tc>, window_params = [{transform_indices = @transform_0, window_bounds = array<i64: 128, 128>}, {pipeline_mode = #tpu.pipeline_mode<synchronous>, transform_indices = @transform_1, window_bounds = array<i64: 128, 128>}, {pipeline_mode = #tpu.pipeline_mode<synchronous>, transform_indices = @transform_2, window_bounds = array<i64: 3, 128>}, {pipeline_mode = #tpu.pipeline_mode<synchronous>, transform_indices = @transform_3, window_bounds = array<i64: 128, 128>}, {pipeline_mode = #tpu.pipeline_mode<synchronous>, transform_indices = @transform_4, window_bounds = array<i64: 3, 128>}, {pipeline_mode = #tpu.pipeline_mode<synchronous>, transform_indices = @transform_5, window_bounds = array<i64: 128, 128>}, {pipeline_mode = #tpu.pipeline_mode<synchronous>, transform_indices = @transform_6, window_bounds = array<i64: 1, 128>}, {transform_indices = @transform_7, window_bounds = array<i64: 128, 128>}]} {
    %c0 = arith.constant 0 : index
    %c0_0 = arith.constant 0 : index
    %0 = vector.load %arg1[%c0, %c0_0] : memref<128x128xf32, #tpu.memory_space<vmem>>, vector<128x128xf32>
    %c0_1 = arith.constant 0 : index
    %c0_2 = arith.constant 0 : index
    %1 = vector.load %arg2[%c0_1, %c0_2] : memref<128x128xf32, #tpu.memory_space<vmem>>, vector<128x128xf32>
    %cst = arith.constant dense<0.000000e+00> : vector<128x128xf32>
    %2 = tpu.matmul %0, %1, %cst {dimension_numbers = #tpu.dot_dimension_numbers<[1], [0], [0], [1], [0, 0, 1, 1], [], []>} : vector<128x128xf32>, vector<128x128xf32>, vector<128x128xf32> -> vector<128x128xf32>
    %c0_3 = arith.constant 0 : index
    %c0_4 = arith.constant 0 : index
    %3 = vector.load %arg3[%c0_3, %c0_4] : memref<3x128xf32, #tpu.memory_space<vmem>>, vector<1x128xf32>
    %4 = vector.broadcast %3 : vector<1x128xf32> to vector<128x128xf32>
    %5 = arith.addf %2, %4 : vector<128x128xf32>
    %cst_5 = arith.constant dense<0.000000e+00> : vector<128xf32>
    %6 = vector.multi_reduction <add>, %5, %cst_5 [1] : vector<128x128xf32> to vector<128xf32>
    %7 = vector.shape_cast %6 : vector<128xf32> to vector<128x1xf32>
    %8 = arith.mulf %5, %5 : vector<128x128xf32>
    %cst_6 = arith.constant dense<0.000000e+00> : vector<128xf32>
    %9 = vector.multi_reduction <add>, %8, %cst_6 [1] : vector<128x128xf32> to vector<128xf32>
    %10 = vector.shape_cast %9 : vector<128xf32> to vector<128x1xf32>
    %cst_7 = arith.constant 7.812500e-03 : f32
    %11 = vector.broadcast %cst_7 : f32 to vector<128x1xf32>
    %12 = arith.mulf %7, %11 : vector<128x1xf32>
    %cst_8 = arith.constant 7.812500e-03 : f32
    %13 = vector.broadcast %cst_8 : f32 to vector<128x1xf32>
    %14 = arith.mulf %10, %13 : vector<128x1xf32>
    %15 = arith.mulf %12, %12 : vector<128x1xf32>
    %16 = arith.subf %14, %15 : vector<128x1xf32>
    %cst_9 = arith.constant 0.000000e+00 : f32
    %17 = vector.broadcast %cst_9 : f32 to vector<128x1xf32>
    %18 = arith.maximumf %16, %17 : vector<128x1xf32>
    %19 = vector.broadcast %12 : vector<128x1xf32> to vector<128x128xf32>
    %20 = arith.subf %5, %19 : vector<128x128xf32>
    %cst_10 = arith.constant 9.99999974E-6 : f32
    %21 = vector.broadcast %cst_10 : f32 to vector<128x1xf32>
    %22 = arith.addf %18, %21 : vector<128x1xf32>
    %23 = math.rsqrt %22 : vector<128x1xf32>
    %24 = vector.broadcast %23 : vector<128x1xf32> to vector<128x128xf32>
    %25 = arith.mulf %20, %24 : vector<128x128xf32>
    %c1 = arith.constant 1 : index
    %c0_11 = arith.constant 0 : index
    %26 = vector.load %arg3[%c1, %c0_11] : memref<3x128xf32, #tpu.memory_space<vmem>>, vector<1x128xf32>
    %27 = vector.broadcast %26 : vector<1x128xf32> to vector<128x128xf32>
    %28 = arith.mulf %25, %27 : vector<128x128xf32>
    %c2 = arith.constant 2 : index
    %c0_12 = arith.constant 0 : index
    %29 = vector.load %arg3[%c2, %c0_12] : memref<3x128xf32, #tpu.memory_space<vmem>>, vector<1x128xf32>
    %30 = vector.broadcast %29 : vector<1x128xf32> to vector<128x128xf32>
    %31 = arith.addf %28, %30 : vector<128x128xf32>
    %cst_13 = arith.constant 0.000000e+00 : f32
    %32 = vector.broadcast %cst_13 : f32 to vector<128x128xf32>
    %33 = arith.maximumf %31, %32 : vector<128x128xf32>
    %c0_14 = arith.constant 0 : index
    %c0_15 = arith.constant 0 : index
    %34 = vector.load %arg4[%c0_14, %c0_15] : memref<128x128xf32, #tpu.memory_space<vmem>>, vector<128x128xf32>
    %cst_16 = arith.constant dense<0.000000e+00> : vector<128x128xf32>
    %35 = tpu.matmul %33, %34, %cst_16 {dimension_numbers = #tpu.dot_dimension_numbers<[1], [0], [0], [1], [0, 0, 1, 1], [], []>} : vector<128x128xf32>, vector<128x128xf32>, vector<128x128xf32> -> vector<128x128xf32>
    %c0_17 = arith.constant 0 : index
    %c0_18 = arith.constant 0 : index
    %36 = vector.load %arg5[%c0_17, %c0_18] : memref<3x128xf32, #tpu.memory_space<vmem>>, vector<1x128xf32>
    %37 = vector.broadcast %36 : vector<1x128xf32> to vector<128x128xf32>
    %38 = arith.addf %35, %37 : vector<128x128xf32>
    %cst_19 = arith.constant dense<0.000000e+00> : vector<128xf32>
    %39 = vector.multi_reduction <add>, %38, %cst_19 [1] : vector<128x128xf32> to vector<128xf32>
    %40 = vector.shape_cast %39 : vector<128xf32> to vector<128x1xf32>
    %41 = arith.mulf %38, %38 : vector<128x128xf32>
    %cst_20 = arith.constant dense<0.000000e+00> : vector<128xf32>
    %42 = vector.multi_reduction <add>, %41, %cst_20 [1] : vector<128x128xf32> to vector<128xf32>
    %43 = vector.shape_cast %42 : vector<128xf32> to vector<128x1xf32>
    %cst_21 = arith.constant 7.812500e-03 : f32
    %44 = vector.broadcast %cst_21 : f32 to vector<128x1xf32>
    %45 = arith.mulf %40, %44 : vector<128x1xf32>
    %cst_22 = arith.constant 7.812500e-03 : f32
    %46 = vector.broadcast %cst_22 : f32 to vector<128x1xf32>
    %47 = arith.mulf %43, %46 : vector<128x1xf32>
    %48 = arith.mulf %45, %45 : vector<128x1xf32>
    %49 = arith.subf %47, %48 : vector<128x1xf32>
    %cst_23 = arith.constant 0.000000e+00 : f32
    %50 = vector.broadcast %cst_23 : f32 to vector<128x1xf32>
    %51 = arith.maximumf %49, %50 : vector<128x1xf32>
    %52 = vector.broadcast %45 : vector<128x1xf32> to vector<128x128xf32>
    %53 = arith.subf %38, %52 : vector<128x128xf32>
    %cst_24 = arith.constant 9.99999974E-6 : f32
    %54 = vector.broadcast %cst_24 : f32 to vector<128x1xf32>
    %55 = arith.addf %51, %54 : vector<128x1xf32>
    %56 = math.rsqrt %55 : vector<128x1xf32>
    %57 = vector.broadcast %56 : vector<128x1xf32> to vector<128x128xf32>
    %58 = arith.mulf %53, %57 : vector<128x128xf32>
    %c1_25 = arith.constant 1 : index
    %c0_26 = arith.constant 0 : index
    %59 = vector.load %arg5[%c1_25, %c0_26] : memref<3x128xf32, #tpu.memory_space<vmem>>, vector<1x128xf32>
    %60 = vector.broadcast %59 : vector<1x128xf32> to vector<128x128xf32>
    %61 = arith.mulf %58, %60 : vector<128x128xf32>
    %c2_27 = arith.constant 2 : index
    %c0_28 = arith.constant 0 : index
    %62 = vector.load %arg5[%c2_27, %c0_28] : memref<3x128xf32, #tpu.memory_space<vmem>>, vector<1x128xf32>
    %63 = vector.broadcast %62 : vector<1x128xf32> to vector<128x128xf32>
    %64 = arith.addf %61, %63 : vector<128x128xf32>
    %cst_29 = arith.constant 0.000000e+00 : f32
    %65 = vector.broadcast %cst_29 : f32 to vector<128x128xf32>
    %66 = arith.maximumf %64, %65 : vector<128x128xf32>
    %c0_30 = arith.constant 0 : index
    %c0_31 = arith.constant 0 : index
    %67 = vector.load %arg6[%c0_30, %c0_31] : memref<128x128xf32, #tpu.memory_space<vmem>>, vector<128x128xf32>
    %cst_32 = arith.constant dense<0.000000e+00> : vector<128x128xf32>
    %68 = tpu.matmul %66, %67, %cst_32 {dimension_numbers = #tpu.dot_dimension_numbers<[1], [0], [0], [1], [0, 0, 1, 1], [], []>} : vector<128x128xf32>, vector<128x128xf32>, vector<128x128xf32> -> vector<128x128xf32>
    %c0_33 = arith.constant 0 : index
    %c0_34 = arith.constant 0 : index
    %69 = vector.load %arg7[%c0_33, %c0_34] : memref<1x128xf32, #tpu.memory_space<vmem>>, vector<1x128xf32>
    %70 = vector.broadcast %69 : vector<1x128xf32> to vector<128x128xf32>
    %71 = arith.addf %68, %70 : vector<128x128xf32>
    %c0_35 = arith.constant 0 : index
    %c0_36 = arith.constant 0 : index
    %72 = vector.load %arg8[%c0_35, %c0_36] : memref<128x128xf32, #tpu.memory_space<vmem>>, vector<128x128xf32>
    tpu.vector_store %arg8[%c0_35, %c0_36], %71 {strides = array<i32>} : memref<128x128xf32, #tpu.memory_space<vmem>>, vector<128x128xf32>,
    return
  }
  func.func @transform_0(%arg0: i32) -> (i32, i32) {
    %c0_i32 = arith.constant 0 : i32
    %c0_i32_0 = arith.constant 0 : i32
    return %arg0, %c0_i32 : i32, i32
  }
  func.func @transform_1(%arg0: i32) -> (i32, i32) {
    %c0_i32 = arith.constant 0 : i32
    %c0_i32_0 = arith.constant 0 : i32
    %c0_i32_1 = arith.constant 0 : i32
    return %c0_i32, %c0_i32_0 : i32, i32
  }
  func.func @transform_2(%arg0: i32) -> (i32, i32) {
    %c0_i32 = arith.constant 0 : i32
    %c0_i32_0 = arith.constant 0 : i32
    %c0_i32_1 = arith.constant 0 : i32
    return %c0_i32, %c0_i32_0 : i32, i32
  }
  func.func @transform_3(%arg0: i32) -> (i32, i32) {
    %c0_i32 = arith.constant 0 : i32
    %c0_i32_0 = arith.constant 0 : i32
    %c0_i32_1 = arith.constant 0 : i32
    return %c0_i32, %c0_i32_0 : i32, i32
  }
  func.func @transform_4(%arg0: i32) -> (i32, i32) {
    %c0_i32 = arith.constant 0 : i32
    %c0_i32_0 = arith.constant 0 : i32
    %c0_i32_1 = arith.constant 0 : i32
    return %c0_i32, %c0_i32_0 : i32, i32
  }
  func.func @transform_5(%arg0: i32) -> (i32, i32) {
    %c0_i32 = arith.constant 0 : i32
    %c0_i32_0 = arith.constant 0 : i32
    %c0_i32_1 = arith.constant 0 : i32
    return %c0_i32, %c0_i32_0 : i32, i32
  }
  func.func @transform_6(%arg0: i32) -> (i32, i32) {
    %c0_i32 = arith.constant 0 : i32
    %c0_i32_0 = arith.constant 0 : i32
    %c0_i32_1 = arith.constant 0 : i32
    return %c0_i32, %c0_i32_0 : i32, i32
  }
  func.func @transform_7(%arg0: i32) -> (i32, i32) {
    %c0_i32 = arith.constant 0 : i32
    %c0_i32_0 = arith.constant 0 : i32
    return %arg0, %c0_i32 : i32, i32
  }
}

module attributes {stable_mosaic.version = 11 : i64} {
  func.func @kernel(%arg0: i32, %arg1: memref<128x128xf32, #tpu.memory_space<vmem>>, %arg2: memref<128x128xf32, #tpu.memory_space<vmem>>, %arg3: memref<3x128xf32, #tpu.memory_space<vmem>>, %arg4: memref<128x128xf32, #tpu.memory_space<vmem>>, %arg5: memref<3x128xf32, #tpu.memory_space<vmem>>, %arg6: memref<128x128xf32, #tpu.memory_space<vmem>>, %arg7: memref<1x128xf32, #tpu.memory_space<vmem>>, %arg8: memref<128x128xf32, #tpu.memory_space<vmem>>) attributes {dimension_semantics = [#tpu.dimension_semantics<parallel>], iteration_bounds = array<i64: 2>, scalar_prefetch = 0 : i64, scratch_operands = 0 : i64, tpu.core_type = #tpu.core_type<tc>, window_params = [{transform_indices = @transform_0, window_bounds = array<i64: 128, 128>}, {pipeline_mode = #tpu.pipeline_mode<synchronous>, transform_indices = @transform_1, window_bounds = array<i64: 128, 128>}, {pipeline_mode = #tpu.pipeline_mode<synchronous>, transform_indices = @transform_2, window_bounds = array<i64: 3, 128>}, {pipeline_mode = #tpu.pipeline_mode<synchronous>, transform_indices = @transform_3, window_bounds = array<i64: 128, 128>}, {pipeline_mode = #tpu.pipeline_mode<synchronous>, transform_indices = @transform_4, window_bounds = array<i64: 3, 128>}, {pipeline_mode = #tpu.pipeline_mode<synchronous>, transform_indices = @transform_5, window_bounds = array<i64: 128, 128>}, {pipeline_mode = #tpu.pipeline_mode<synchronous>, transform_indices = @transform_6, window_bounds = array<i64: 1, 128>}, {transform_indices = @transform_7, window_bounds = array<i64: 128, 128>}]} {
    %c0 = arith.constant 0 : index
    %c0_0 = arith.constant 0 : index
    %0 = vector.load %arg1[%c0, %c0_0] : memref<128x128xf32, #tpu.memory_space<vmem>>, vector<128x128xf32>
    %c0_1 = arith.constant 0 : index
    %c0_2 = arith.constant 0 : index
    %1 = vector.load %arg2[%c0_1, %c0_2] : memref<128x128xf32, #tpu.memory_space<vmem>>, vector<128x128xf32>
    %cst = arith.constant dense<0.000000e+00> : vector<128x128xf32>
    %2 = tpu.matmul %0, %1, %cst {dimension_numbers = #tpu.dot_dimension_numbers<[1], [0], [0], [1], [0, 0, 1, 1], [], []>} : vector<128x128xf32>, vector<128x128xf32>, vector<128x128xf32> -> vector<128x128xf32>
    %c0_3 = arith.constant 0 : index
    %c0_4 = arith.constant 0 : index
    %3 = vector.load %arg3[%c0_3, %c0_4] : memref<3x128xf32, #tpu.memory_space<vmem>>, vector<1x128xf32>
    %4 = vector.broadcast %3 : vector<1x128xf32> to vector<128x128xf32>
    %5 = arith.addf %2, %4 : vector<128x128xf32>
    %cst_5 = arith.constant dense<0.000000e+00> : vector<128xf32>
    %6 = vector.multi_reduction <add>, %5, %cst_5 [1] : vector<128x128xf32> to vector<128xf32>
    %7 = vector.shape_cast %6 : vector<128xf32> to vector<128x1xf32>
    %8 = arith.mulf %5, %5 : vector<128x128xf32>
    %cst_6 = arith.constant dense<0.000000e+00> : vector<128xf32>
    %9 = vector.multi_reduction <add>, %8, %cst_6 [1] : vector<128x128xf32> to vector<128xf32>
    %10 = vector.shape_cast %9 : vector<128xf32> to vector<128x1xf32>
    %cst_7 = arith.constant 7.812500e-03 : f32
    %11 = vector.broadcast %cst_7 : f32 to vector<128x1xf32>
    %12 = arith.mulf %7, %11 : vector<128x1xf32>
    %cst_8 = arith.constant 7.812500e-03 : f32
    %13 = vector.broadcast %cst_8 : f32 to vector<128x1xf32>
    %14 = arith.mulf %10, %13 : vector<128x1xf32>
    %15 = arith.mulf %12, %12 : vector<128x1xf32>
    %16 = arith.subf %14, %15 : vector<128x1xf32>
    %cst_9 = arith.constant 0.000000e+00 : f32
    %17 = vector.broadcast %cst_9 : f32 to vector<128x1xf32>
    %18 = arith.maximumf %16, %17 : vector<128x1xf32>
    %19 = vector.broadcast %12 : vector<128x1xf32> to vector<128x128xf32>
    %20 = arith.subf %5, %19 : vector<128x128xf32>
    %cst_10 = arith.constant 9.99999974E-6 : f32
    %21 = vector.broadcast %cst_10 : f32 to vector<128x1xf32>
    %22 = arith.addf %18, %21 : vector<128x1xf32>
    %23 = math.rsqrt %22 : vector<128x1xf32>
    %24 = vector.broadcast %23 : vector<128x1xf32> to vector<128x128xf32>
    %25 = arith.mulf %20, %24 : vector<128x128xf32>
    %c1 = arith.constant 1 : index
    %c0_11 = arith.constant 0 : index
    %26 = vector.load %arg3[%c1, %c0_11] : memref<3x128xf32, #tpu.memory_space<vmem>>, vector<1x128xf32>
    %27 = vector.broadcast %26 : vector<1x128xf32> to vector<128x128xf32>
    %28 = arith.mulf %25, %27 : vector<128x128xf32>
    %c2 = arith.constant 2 : index
    %c0_12 = arith.constant 0 : index
    %29 = vector.load %arg3[%c2, %c0_12] : memref<3x128xf32, #tpu.memory_space<vmem>>, vector<1x128xf32>
    %30 = vector.broadcast %29 : vector<1x128xf32> to vector<128x128xf32>
    %31 = arith.addf %28, %30 : vector<128x128xf32>
    %cst_13 = arith.constant 0.000000e+00 : f32
    %32 = vector.broadcast %cst_13 : f32 to vector<128x128xf32>
    %33 = arith.maximumf %31, %32 : vector<128x128xf32>
    %c0_14 = arith.constant 0 : index
    %c0_15 = arith.constant 0 : index
    %34 = vector.load %arg4[%c0_14, %c0_15] : memref<128x128xf32, #tpu.memory_space<vmem>>, vector<128x128xf32>
    %cst_16 = arith.constant dense<0.000000e+00> : vector<128x128xf32>
    %35 = tpu.matmul %33, %34, %cst_16 {dimension_numbers = #tpu.dot_dimension_numbers<[1], [0], [0], [1], [0, 0, 1, 1], [], []>} : vector<128x128xf32>, vector<128x128xf32>, vector<128x128xf32> -> vector<128x128xf32>
    %c0_17 = arith.constant 0 : index
    %c0_18 = arith.constant 0 : index
    %36 = vector.load %arg5[%c0_17, %c0_18] : memref<3x128xf32, #tpu.memory_space<vmem>>, vector<1x128xf32>
    %37 = vector.broadcast %36 : vector<1x128xf32> to vector<128x128xf32>
    %38 = arith.addf %35, %37 : vector<128x128xf32>
    %cst_19 = arith.constant dense<0.000000e+00> : vector<128xf32>
    %39 = vector.multi_reduction <add>, %38, %cst_19 [1] : vector<128x128xf32> to vector<128xf32>
    %40 = vector.shape_cast %39 : vector<128xf32> to vector<128x1xf32>
    %41 = arith.mulf %38, %38 : vector<128x128xf32>
    %cst_20 = arith.constant dense<0.000000e+00> : vector<128xf32>
    %42 = vector.multi_reduction <add>, %41, %cst_20 [1] : vector<128x128xf32> to vector<128xf32>
    %43 = vector.shape_cast %42 : vector<128xf32> to vector<128x1xf32>
    %cst_21 = arith.constant 7.812500e-03 : f32
    %44 = vector.broadcast %cst_21 : f32 to vector<128x1xf32>
    %45 = arith.mulf %40, %44 : vector<128x1xf32>
    %cst_22 = arith.constant 7.812500e-03 : f32
    %46 = vector.broadcast %cst_22 : f32 to vector<128x1xf32>
    %47 = arith.mulf %43, %46 : vector<128x1xf32>
    %48 = arith.mulf %45, %45 : vector<128x1xf32>
    %49 = arith.subf %47, %48 : vector<128x1xf32>
    %cst_23 = arith.constant 0.000000e+00 : f32
    %50 = vector.broadcast %cst_23 : f32 to vector<128x1xf32>
    %51 = arith.maximumf %49, %50 : vector<128x1xf32>
    %52 = vector.broadcast %45 : vector<128x1xf32> to vector<128x128xf32>
    %53 = arith.subf %38, %52 : vector<128x128xf32>
    %cst_24 = arith.constant 9.99999974E-6 : f32
    %54 = vector.broadcast %cst_24 : f32 to vector<128x1xf32>
    %55 = arith.addf %51, %54 : vector<128x1xf32>
    %56 = math.rsqrt %55 : vector<128x1xf32>
    %57 = vector.broadcast %56 : vector<128x1xf32> to vector<128x128xf32>
    %58 = arith.mulf %53, %57 : vector<128x128xf32>
    %c1_25 = arith.constant 1 : index
    %c0_26 = arith.constant 0 : index
    %59 = vector.load %arg5[%c1_25, %c0_26] : memref<3x128xf32, #tpu.memory_space<vmem>>, vector<1x128xf32>
    %60 = vector.broadcast %59 : vector<1x128xf32> to vector<128x128xf32>
    %61 = arith.mulf %58, %60 : vector<128x128xf32>
    %c2_27 = arith.constant 2 : index
    %c0_28 = arith.constant 0 : index
    %62 = vector.load %arg5[%c2_27, %c0_28] : memref<3x128xf32, #tpu.memory_space<vmem>>, vector<1x128xf32>
    %63 = vector.broadcast %62 : vector<1x128xf32> to vector<128x128xf32>
    %64 = arith.addf %61, %63 : vector<128x128xf32>
    %cst_29 = arith.constant 0.000000e+00 : f32
    %65 = vector.broadcast %cst_29 : f32 to vector<128x128xf32>
    %66 = arith.maximumf %64, %65 : vector<128x128xf32>
    %c0_30 = arith.constant 0 : index
    %c0_31 = arith.constant 0 : index
    %67 = vector.load %arg6[%c0_30, %c0_31] : memref<128x128xf32, #tpu.memory_space<vmem>>, vector<128x128xf32>
    %cst_32 = arith.constant dense<0.000000e+00> : vector<128x128xf32>
    %68 = tpu.matmul %66, %67, %cst_32 {dimension_numbers = #tpu.dot_dimension_numbers<[1], [0], [0], [1], [0, 0, 1, 1], [], []>} : vector<128x128xf32>, vector<128x128xf32>, vector<128x128xf32> -> vector<128x128xf32>
    %c0_33 = arith.constant 0 : index
    %c0_34 = arith.constant 0 : index
    %69 = vector.load %arg7[%c0_33, %c0_34] : memref<1x128xf32, #tpu.memory_space<vmem>>, vector<1x128xf32>
    %70 = vector.broadcast %69 : vector<1x128xf32> to vector<128x128xf32>
    %71 = arith.addf %68, %70 : vector<128x128xf32>
    %c0_35 = arith.constant 0 : index
    %c0_36 = arith.constant 0 : index
    %72 = vector.load %arg8[%c0_35, %c0_36] : memref<128x128xf32, #tpu.memory_space<vmem>>, vector<128x128xf32>
    tpu.vector_store %arg8[%c0_35, %c0_36], %71 {strides = array<i32>} : memref<128x128xf32, #tpu.memory_space<vmem>>, vector<128x128xf32>,
    return
  }
  func.func @transform_0(%arg0: i32) -> (i32, i32) {
    %c0_i32 = arith.constant 0 : i32
    %c0_i32_0 = arith.constant 0 : i32
    return %arg0, %c0_i32 : i32, i32
  }
  func.func @transform_1(%arg0: i32) -> (i32, i32) {
    %c0_i32 = arith.constant 0 : i32
    %c0_i32_0 = arith.constant 0 : i32
    %c0_i32_1 = arith.constant 0 : i32
    return %c0_i32, %c0_i32_0 : i32, i32
  }
  func.func @transform_2(%arg0: i32) -> (i32, i32) {
    %c0_i32 = arith.constant 0 : i32
    %c0_i32_0 = arith.constant 0 : i32
    %c0_i32_1 = arith.constant 0 : i32
    return %c0_i32, %c0_i32_0 : i32, i32
  }
  func.func @transform_3(%arg0: i32) -> (i32, i32) {
    %c0_i32 = arith.constant 0 : i32
    %c0_i32_0 = arith.constant 0 : i32
    %c0_i32_1 = arith.constant 0 : i32
    return %c0_i32, %c0_i32_0 : i32, i32
  }
  func.func @transform_4(%arg0: i32) -> (i32, i32) {
    %c0_i32 = arith.constant 0 : i32
    %c0_i32_0 = arith.constant 0 : i32
    %c0_i32_1 = arith.constant 0 : i32
    return %c0_i32, %c0_i32_0 : i32, i32
  }
  func.func @transform_5(%arg0: i32) -> (i32, i32) {
    %c0_i32 = arith.constant 0 : i32
    %c0_i32_0 = arith.constant 0 : i32
    %c0_i32_1 = arith.constant 0 : i32
    return %c0_i32, %c0_i32_0 : i32, i32
  }
  func.func @transform_6(%arg0: i32) -> (i32, i32) {
    %c0_i32 = arith.constant 0 : i32
    %c0_i32_0 = arith.constant 0 : i32
    %c0_i32_1 = arith.constant 0 : i32
    return %c0_i32, %c0_i32_0 : i32, i32
  }
  func.func @transform_7(%arg0: i32) -> (i32, i32) {
    %c0_i32 = arith.constant 0 : i32
    %c0_i32_0 = arith.constant 0 : i32
    return %arg0, %c0_i32 : i32, i32
  }
}

module attributes {stable_mosaic.version = 11 : i64} {
  func.func @kernel(%arg0: i32, %arg1: memref<128x128xf32, #tpu.memory_space<vmem>>, %arg2: memref<128x128xf32, #tpu.memory_space<vmem>>, %arg3: memref<3x128xf32, #tpu.memory_space<vmem>>, %arg4: memref<128x128xf32, #tpu.memory_space<vmem>>, %arg5: memref<3x128xf32, #tpu.memory_space<vmem>>, %arg6: memref<128x128xf32, #tpu.memory_space<vmem>>, %arg7: memref<1x128xf32, #tpu.memory_space<vmem>>, %arg8: memref<128x128xf32, #tpu.memory_space<vmem>>) attributes {dimension_semantics = [#tpu.dimension_semantics<arbitrary>], iteration_bounds = array<i64: 2>, scalar_prefetch = 0 : i64, scratch_operands = 0 : i64, tpu.core_type = #tpu.core_type<tc>, window_params = [{transform_indices = @transform_0, window_bounds = array<i64: 128, 128>}, {pipeline_mode = #tpu.pipeline_mode<synchronous>, transform_indices = @transform_1, window_bounds = array<i64: 128, 128>}, {pipeline_mode = #tpu.pipeline_mode<synchronous>, transform_indices = @transform_2, window_bounds = array<i64: 3, 128>}, {pipeline_mode = #tpu.pipeline_mode<synchronous>, transform_indices = @transform_3, window_bounds = array<i64: 128, 128>}, {pipeline_mode = #tpu.pipeline_mode<synchronous>, transform_indices = @transform_4, window_bounds = array<i64: 3, 128>}, {pipeline_mode = #tpu.pipeline_mode<synchronous>, transform_indices = @transform_5, window_bounds = array<i64: 128, 128>}, {pipeline_mode = #tpu.pipeline_mode<synchronous>, transform_indices = @transform_6, window_bounds = array<i64: 1, 128>}, {transform_indices = @transform_7, window_bounds = array<i64: 128, 128>}]} {
    %c0 = arith.constant 0 : index
    %c0_0 = arith.constant 0 : index
    %0 = vector.load %arg1[%c0, %c0_0] : memref<128x128xf32, #tpu.memory_space<vmem>>, vector<128x128xf32>
    %c0_1 = arith.constant 0 : index
    %c0_2 = arith.constant 0 : index
    %1 = vector.load %arg2[%c0_1, %c0_2] : memref<128x128xf32, #tpu.memory_space<vmem>>, vector<128x128xf32>
    %cst = arith.constant dense<0.000000e+00> : vector<128x128xf32>
    %2 = tpu.matmul %0, %1, %cst {dimension_numbers = #tpu.dot_dimension_numbers<[1], [0], [0], [1], [0, 0, 1, 1], [], []>} : vector<128x128xf32>, vector<128x128xf32>, vector<128x128xf32> -> vector<128x128xf32>
    %c0_3 = arith.constant 0 : index
    %c0_4 = arith.constant 0 : index
    %3 = vector.load %arg3[%c0_3, %c0_4] : memref<3x128xf32, #tpu.memory_space<vmem>>, vector<1x128xf32>
    %4 = vector.broadcast %3 : vector<1x128xf32> to vector<128x128xf32>
    %5 = arith.addf %2, %4 : vector<128x128xf32>
    %cst_5 = arith.constant dense<0.000000e+00> : vector<128xf32>
    %6 = vector.multi_reduction <add>, %5, %cst_5 [1] : vector<128x128xf32> to vector<128xf32>
    %7 = vector.shape_cast %6 : vector<128xf32> to vector<128x1xf32>
    %8 = arith.mulf %5, %5 : vector<128x128xf32>
    %cst_6 = arith.constant dense<0.000000e+00> : vector<128xf32>
    %9 = vector.multi_reduction <add>, %8, %cst_6 [1] : vector<128x128xf32> to vector<128xf32>
    %10 = vector.shape_cast %9 : vector<128xf32> to vector<128x1xf32>
    %cst_7 = arith.constant 7.812500e-03 : f32
    %11 = vector.broadcast %cst_7 : f32 to vector<128x1xf32>
    %12 = arith.mulf %7, %11 : vector<128x1xf32>
    %cst_8 = arith.constant 7.812500e-03 : f32
    %13 = vector.broadcast %cst_8 : f32 to vector<128x1xf32>
    %14 = arith.mulf %10, %13 : vector<128x1xf32>
    %15 = arith.mulf %12, %12 : vector<128x1xf32>
    %16 = arith.subf %14, %15 : vector<128x1xf32>
    %cst_9 = arith.constant 0.000000e+00 : f32
    %17 = vector.broadcast %cst_9 : f32 to vector<128x1xf32>
    %18 = arith.maximumf %16, %17 : vector<128x1xf32>
    %19 = vector.broadcast %12 : vector<128x1xf32> to vector<128x128xf32>
    %20 = arith.subf %5, %19 : vector<128x128xf32>
    %cst_10 = arith.constant 9.99999974E-6 : f32
    %21 = vector.broadcast %cst_10 : f32 to vector<128x1xf32>
    %22 = arith.addf %18, %21 : vector<128x1xf32>
    %23 = math.rsqrt %22 : vector<128x1xf32>
    %24 = vector.broadcast %23 : vector<128x1xf32> to vector<128x128xf32>
    %25 = arith.mulf %20, %24 : vector<128x128xf32>
    %c1 = arith.constant 1 : index
    %c0_11 = arith.constant 0 : index
    %26 = vector.load %arg3[%c1, %c0_11] : memref<3x128xf32, #tpu.memory_space<vmem>>, vector<1x128xf32>
    %27 = vector.broadcast %26 : vector<1x128xf32> to vector<128x128xf32>
    %28 = arith.mulf %25, %27 : vector<128x128xf32>
    %c2 = arith.constant 2 : index
    %c0_12 = arith.constant 0 : index
    %29 = vector.load %arg3[%c2, %c0_12] : memref<3x128xf32, #tpu.memory_space<vmem>>, vector<1x128xf32>
    %30 = vector.broadcast %29 : vector<1x128xf32> to vector<128x128xf32>
    %31 = arith.addf %28, %30 : vector<128x128xf32>
    %cst_13 = arith.constant 0.000000e+00 : f32
    %32 = vector.broadcast %cst_13 : f32 to vector<128x128xf32>
    %33 = arith.maximumf %31, %32 : vector<128x128xf32>
    %c0_14 = arith.constant 0 : index
    %c0_15 = arith.constant 0 : index
    %34 = vector.load %arg4[%c0_14, %c0_15] : memref<128x128xf32, #tpu.memory_space<vmem>>, vector<128x128xf32>
    %cst_16 = arith.constant dense<0.000000e+00> : vector<128x128xf32>
    %35 = tpu.matmul %33, %34, %cst_16 {dimension_numbers = #tpu.dot_dimension_numbers<[1], [0], [0], [1], [0, 0, 1, 1], [], []>} : vector<128x128xf32>, vector<128x128xf32>, vector<128x128xf32> -> vector<128x128xf32>
    %c0_17 = arith.constant 0 : index
    %c0_18 = arith.constant 0 : index
    %36 = vector.load %arg5[%c0_17, %c0_18] : memref<3x128xf32, #tpu.memory_space<vmem>>, vector<1x128xf32>
    %37 = vector.broadcast %36 : vector<1x128xf32> to vector<128x128xf32>
    %38 = arith.addf %35, %37 : vector<128x128xf32>
    %cst_19 = arith.constant dense<0.000000e+00> : vector<128xf32>
    %39 = vector.multi_reduction <add>, %38, %cst_19 [1] : vector<128x128xf32> to vector<128xf32>
    %40 = vector.shape_cast %39 : vector<128xf32> to vector<128x1xf32>
    %41 = arith.mulf %38, %38 : vector<128x128xf32>
    %cst_20 = arith.constant dense<0.000000e+00> : vector<128xf32>
    %42 = vector.multi_reduction <add>, %41, %cst_20 [1] : vector<128x128xf32> to vector<128xf32>
    %43 = vector.shape_cast %42 : vector<128xf32> to vector<128x1xf32>
    %cst_21 = arith.constant 7.812500e-03 : f32
    %44 = vector.broadcast %cst_21 : f32 to vector<128x1xf32>
    %45 = arith.mulf %40, %44 : vector<128x1xf32>
    %cst_22 = arith.constant 7.812500e-03 : f32
    %46 = vector.broadcast %cst_22 : f32 to vector<128x1xf32>
    %47 = arith.mulf %43, %46 : vector<128x1xf32>
    %48 = arith.mulf %45, %45 : vector<128x1xf32>
    %49 = arith.subf %47, %48 : vector<128x1xf32>
    %cst_23 = arith.constant 0.000000e+00 : f32
    %50 = vector.broadcast %cst_23 : f32 to vector<128x1xf32>
    %51 = arith.maximumf %49, %50 : vector<128x1xf32>
    %52 = vector.broadcast %45 : vector<128x1xf32> to vector<128x128xf32>
    %53 = arith.subf %38, %52 : vector<128x128xf32>
    %cst_24 = arith.constant 9.99999974E-6 : f32
    %54 = vector.broadcast %cst_24 : f32 to vector<128x1xf32>
    %55 = arith.addf %51, %54 : vector<128x1xf32>
    %56 = math.rsqrt %55 : vector<128x1xf32>
    %57 = vector.broadcast %56 : vector<128x1xf32> to vector<128x128xf32>
    %58 = arith.mulf %53, %57 : vector<128x128xf32>
    %c1_25 = arith.constant 1 : index
    %c0_26 = arith.constant 0 : index
    %59 = vector.load %arg5[%c1_25, %c0_26] : memref<3x128xf32, #tpu.memory_space<vmem>>, vector<1x128xf32>
    %60 = vector.broadcast %59 : vector<1x128xf32> to vector<128x128xf32>
    %61 = arith.mulf %58, %60 : vector<128x128xf32>
    %c2_27 = arith.constant 2 : index
    %c0_28 = arith.constant 0 : index
    %62 = vector.load %arg5[%c2_27, %c0_28] : memref<3x128xf32, #tpu.memory_space<vmem>>, vector<1x128xf32>
    %63 = vector.broadcast %62 : vector<1x128xf32> to vector<128x128xf32>
    %64 = arith.addf %61, %63 : vector<128x128xf32>
    %cst_29 = arith.constant 0.000000e+00 : f32
    %65 = vector.broadcast %cst_29 : f32 to vector<128x128xf32>
    %66 = arith.maximumf %64, %65 : vector<128x128xf32>
    %c0_30 = arith.constant 0 : index
    %c0_31 = arith.constant 0 : index
    %67 = vector.load %arg6[%c0_30, %c0_31] : memref<128x128xf32, #tpu.memory_space<vmem>>, vector<128x128xf32>
    %cst_32 = arith.constant dense<0.000000e+00> : vector<128x128xf32>
    %68 = tpu.matmul %66, %67, %cst_32 {dimension_numbers = #tpu.dot_dimension_numbers<[1], [0], [0], [1], [0, 0, 1, 1], [], []>} : vector<128x128xf32>, vector<128x128xf32>, vector<128x128xf32> -> vector<128x128xf32>
    %c0_33 = arith.constant 0 : index
    %c0_34 = arith.constant 0 : index
    %69 = vector.load %arg7[%c0_33, %c0_34] : memref<1x128xf32, #tpu.memory_space<vmem>>, vector<1x128xf32>
    %70 = vector.broadcast %69 : vector<1x128xf32> to vector<128x128xf32>
    %71 = arith.addf %68, %70 : vector<128x128xf32>
    %c0_35 = arith.constant 0 : index
    %c0_36 = arith.constant 0 : index
    %72 = vector.load %arg8[%c0_35, %c0_36] : memref<128x128xf32, #tpu.memory_space<vmem>>, vector<128x128xf32>
    tpu.vector_store %arg8[%c0_35, %c0_36], %71 {strides = array<i32>} : memref<128x128xf32, #tpu.memory_space<vmem>>, vector<128x128xf32>,
    return
  }
  func.func @transform_0(%arg0: i32) -> (i32, i32) {
    %c0_i32 = arith.constant 0 : i32
    %c0_i32_0 = arith.constant 0 : i32
    return %arg0, %c0_i32 : i32, i32
  }
  func.func @transform_1(%arg0: i32) -> (i32, i32) {
    %c0_i32 = arith.constant 0 : i32
    %c0_i32_0 = arith.constant 0 : i32
    %c0_i32_1 = arith.constant 0 : i32
    return %c0_i32, %c0_i32_0 : i32, i32
  }
  func.func @transform_2(%arg0: i32) -> (i32, i32) {
    %c0_i32 = arith.constant 0 : i32
    %c0_i32_0 = arith.constant 0 : i32
    %c0_i32_1 = arith.constant 0 : i32
    return %c0_i32, %c0_i32_0 : i32, i32
  }
  func.func @transform_3(%arg0: i32) -> (i32, i32) {
    %c0_i32 = arith.constant 0 : i32
    %c0_i32_0 = arith.constant 0 : i32
    %c0_i32_1 = arith.constant 0 : i32
    return %c0_i32, %c0_i32_0 : i32, i32
  }
  func.func @transform_4(%arg0: i32) -> (i32, i32) {
    %c0_i32 = arith.constant 0 : i32
    %c0_i32_0 = arith.constant 0 : i32
    %c0_i32_1 = arith.constant 0 : i32
    return %c0_i32, %c0_i32_0 : i32, i32
  }
  func.func @transform_5(%arg0: i32) -> (i32, i32) {
    %c0_i32 = arith.constant 0 : i32
    %c0_i32_0 = arith.constant 0 : i32
    %c0_i32_1 = arith.constant 0 : i32
    return %c0_i32, %c0_i32_0 : i32, i32
  }
  func.func @transform_6(%arg0: i32) -> (i32, i32) {
    %c0_i32 = arith.constant 0 : i32
    %c0_i32_0 = arith.constant 0 : i32
    %c0_i32_1 = arith.constant 0 : i32
    return %c0_i32, %c0_i32_0 : i32, i32
  }
  func.func @transform_7(%arg0: i32) -> (i32, i32) {
    %c0_i32 = arith.constant 0 : i32
    %c0_i32_0 = arith.constant 0 : i32
    return %arg0, %c0_i32 : i32, i32
  }
}

</mosaic_0001>

<bundles_post_ra>
// kernel: tpu_custom_call.1
= control target key start
LH: loop header
LB: loop body
LE: loop exit
PB: predicated region body
PF: predicated region fallthrough
CT: control target
= control target key end

     0   :  { %6 = vsyncpa [#allocation3], 0  ;;  %s125_s0 = inlined_call_operand.hbm [shape: f32[8,128], index: 0, kind: input, shape index: {}]   ;;  %s126_s1 = inlined_call_operand.hbm [shape: f32[8,128], index: 1, kind: output, shape index: {}]  }
   0x1   :  { %7 = vsyncpa [#allocation4], 0  ;;  %s89_s6 = smov [#allocation2]   ;;  %s41_s10 = scalar_lea.hbm %s125_s0, 128 }
   0x2   :  { %s14_s7 = sshll.u32 %s89_s6, 4  ;;  %p42_p0 = scmp.ne.s32.totalorder %s125_s0, %s41_s10  ;;  %s15_s7 = int_to_ptr.vmem [resolvable:$true] %s14_s7 }
   0x3   :  { %p45_p1 = scmp.lt.u32.totalorder %s41_s10, %s125_s0 }
   0x5   :  { %p47_p2 = pnand %p45_p1, %p42_p0 }
   0x7   :  { %50 = shalt.err (!%p47_p2)
}
   0x8   :  { %s51_s15 = scalar_lea.vmem %s15_s7, 128  ;;  %p56_p4 = scmp.lt.s32.totalorder %s15_s7, %s15_s7 }
   0x9   :  { %p52_p3 = scmp.ne.s32.totalorder %s15_s7, %s51_s15  ;;  %p57_p5 = scmp.lt.s32.totalorder %s51_s15, %s51_s15 }
   0xb   :  { %p58_p6 = por %p57_p5, %p56_p4 }
   0xd   :  { %p59_p7 = pnand %p58_p6, %p52_p3 }
   0xf   :  { %62 = shalt.err (!%p59_p7)
}
  0x10   :  { %17 = dma.hbm_to_vmem [thread:$0]  %s125_s0, 128, %s15_s7, [#allocation3]  }
  0x11   :  { %85 = dma.done.wait [#allocation3], 128  }
  0x12   :  { %86 = vsyncadd [#allocation3], 4294967168  ;;  %s90_s18 = smov [#allocation5]   ;;  %v21_v0 = vld [vmem:[#allocation2] sm:$0xff] }
  0x13   :  { %s30_s19 = sshll.u32 %s90_s18, 4  ;;  %v22_v1 = vadd.f32 1.0, %v21_v0  ;;  %s31_s19 = int_to_ptr.vmem [resolvable:$true] %s30_s19 }
  0x14   :  { %s63_s20 = scalar_lea.vmem %s31_s19, 128  ;;  %p68_p9 = scmp.lt.s32.totalorder %s31_s19, %s31_s19 }
  0x15   :  { %23 = vst [vmem:[#allocation5] sm:$0xff] %v22_v1  ;;  %p64_p8 = scmp.ne.s32.totalorder %s31_s19, %s63_s20  ;;  %p69_p10 = scmp.lt.s32.totalorder %s63_s20, %s63_s20 }
  0x17   :  { %p70_p11 = por %p69_p10, %p68_p9 }
  0x19   :  { %p71_p12 = pnand %p70_p11, %p64_p8 }
  0x1b   :  { %74 = shalt.err (!%p71_p12)
}
  0x1c   :  { %s75_s23 = scalar_lea.hbm %s126_s1, 128 }
  0x1d   :  { %p76_p13 = scmp.ne.s32.totalorder %s126_s1, %s75_s23  ;;  %p79_p0 = scmp.lt.u32.totalorder %s75_s23, %s126_s1 }
  0x1f   :  { %p81_p1 = pnand %p79_p0, %p76_p13 }
  0x21   :  { %84 = shalt.err (!%p81_p1)
}
  0x22   :  { %33 = dma.vmem_to_hbm [thread:$0]  %s31_s19, 128, %s126_s1, [#allocation4]  }
  0x23   :  { %87 = dma.done.wait [#allocation4], 128  }
  0x24   :  { %88 = vsyncadd [#allocation4], 4294967168 }
  0x25   :  { %37 = vsyncpa [#allocation3], 1 }
  0x26   :  { %38 = vsyncpa [#allocation4], 1 }

// kernel: tpu_custom_call.1
= control target key start
LH: loop header
LB: loop body
LE: loop exit
PB: predicated region body
PF: predicated region fallthrough
CT: control target
= control target key end

     0   :  { %12 = vsyncpa [#allocation3], 0  ;;  %s3103_s0 = inlined_call_operand.hbm [shape: f32[256,128], index: 0, kind: input, shape index: {}]   ;;  %s3104_s1 = inlined_call_operand.hbm [shape: f32[128,128], index: 1, kind: input, shape index: {}]   ;;  %s3105_s2 = inlined_call_operand.vmem [shape: f32[3,128], index: 2, kind: input, shape index: {}]   ;;  %s3106_s3 = inlined_call_operand.hbm [shape: f32[128,128], index: 3, kind: input, shape index: {}]   ;;  %s3107_s4 = inlined_call_operand.vmem [shape: f32[3,128], index: 4, kind: input, shape index: {}]   ;;  %s3108_s5 = inlined_call_operand.hbm [shape: f32[128,128], index: 5, kind: input, shape index: {}]   ;;  %s3109_s6 = inlined_call_operand.vmem [shape: f32[1,128], index: 6, kind: input, shape index: {}]   ;;  %s3110_s7 = inlined_call_operand.hbm [shape: f32[256,128], index: 7, kind: output, shape index: {}]  }
   0x1   :  { %14 = vsyncpa [#allocation3 + $0x1], 0 }
   0x2   :  { %15 = vsyncpa [#allocation6], 0 }
   0x3   :  { %16 = vsyncpa [#allocation9], 0 }
   0x4   :  { %17 = vsyncpa [#allocation4], 0 }
   0x5   :  { %19 = vsyncpa [#allocation4 + $0x1], 0  ;;  %s2344_s24 = smov 0   ;;  %s2346_s25 = smov 0  }
   0x6   :  { %s2348_s26 = smov 0   ;;  %s2350_s27 = smov 0  }
   0x7 LB: > { %s2365_s28 = sadd.s32 4294967295, %s2293_s27   ;;  %s1555_s29 = sadd.s32 4294967294, %s2293_s27   ;;  %s2293_s27 = sphi %s2350_s27, %s3136_s27   ;;  %s2289_s26 = sphi %s2348_s26, %s3135_s26   ;;  %s2285_s25 = sphi %s2346_s25, %s3134_s25   ;;  %s2281_s24 = sphi %s2344_s24, %s3133_s24  }
   0x8   : > { %p45_p0 = scmp.ne.s32.totalorder %s2285_s25, %s2281_s24  ;;  %p3111_p1 = scmp.eq.s32.totalorder %s2365_s28, 0 }
   0x9   : > { %p201_p3 = scmp.eq.s32.totalorder %s1555_s29, 1  ;;  %p1556_p5 = scmp.ge.s32.totalorder %s2293_s27, 1 }
   0xa   : > { %p2374_p4 = por %p3111_p1, %p45_p0  ;;  %p208_p7 = scmp.lt.s32.totalorder %s2293_s27, 3 }
   0xb   : > { %p2379_p6 = por %p201_p3, %p45_p0  ;;  %s2295_s10 = smov [#allocation5]  }
   0xc   : > { %s3115_s30 = scalar_select %p2374_p4, 1, 0 }
   0xd   : > { %s3116_s8 = scalar_select %p2379_p6, 1, 0 }
   0xe   : > { %p2384_p8 = pnand %p1556_p5, %p208_p7  ;;  %s220_s11 = sshll.u32 %s2295_s10, 4  ;;  %s2388_s11 = int_to_ptr.vmem [resolvable:$true] %s220_s11 }
   0xf   : > { %3117 = sst [smem:[#allocation15_spill]] %s3116_s8  ;;  %s2296_s13 = smov [#allocation7]  }
  0x10   : > { %s3118_s9 = scalar_select %p2384_p8, 1, 0 }
  0x11   : > { %p1976_p9 = pneg %p2384_p8  ;;  %s236_s14 = sshll.u32 %s2296_s13, 4  ;;  %s2399_s14 = int_to_ptr.vmem [resolvable:$true] %s236_s14 }
  0x12   : > { %s2297_s15 = smov [#allocation8]   ;;  %s2105_s19 = scalar_lea.hbm %s3104_s1, 2048 }
  0x13   : > { %p2395_p11 = pnand %p1976_p9, %p3111_p1  ;;  %s2401_s16 = sshll.u32 %s2297_s15, 4  ;;  %s253_s16 = int_to_ptr.vmem [resolvable:$true] %s2401_s16 }
  0x14   : > { %p2106_p12 = scmp.ne.s32.totalorder %s3104_s1, %s2105_s19  ;;  %p2112_p5 = scmp.lt.u32.totalorder %s2105_s19, %s3104_s1 }
  0x15   : > { %p2411_p13 = pneg %p2395_p11 }
  0x17   : > { %p2108_p0 = pnand %p2411_p13, %p2106_p12 }
  0x19   : > { %p2109_p3 = pneg %p2108_p0 }
  0x1b   : > { %p2114_p7 = pnand %p2112_p5, %p2109_p3 }
  0x1d   : > { %2117 = shalt.err (!%p2114_p7)
}
  0x1e   : > { %s2118_s10 = scalar_lea.vmem %s2388_s11, 2048  ;;  %p2126_p2 = scmp.lt.s32.totalorder %s2388_s11, %s2388_s11 }
  0x1f   : > { %p2119_p9 = scmp.ne.s32.totalorder %s2388_s11, %s2118_s10  ;;  %p2127_p6 = scmp.lt.s32.totalorder %s2118_s10, %s2118_s10 }
  0x21   : > { %p2121_p10 = pnand %p2119_p9, %p2411_p13  ;;  %p2128_p12 = por %p2127_p6, %p2126_p2 }
  0x23   : > { %p2122_p1 = pneg %p2121_p10 }
  0x25   : > { %p2129_p0 = pnand %p2128_p12, %p2122_p1 }
  0x27   : > { %2132 = shalt.err (!%p2129_p0)
}
  0x28   : > { %s2298_s13 = smov 128   ;;  %s2299_s15 = smov 8  }
  0x29   : > { %1979 = dma.hbm_to_vmem [thread:$0]  (!%p2395_p11), %s3104_s1, 2048, %s2388_s11, [#allocation6], %s2298_s13, %s2298_s13, %s2299_s15  }
  0x2a   : > { %s2133_s21 = scalar_lea.hbm %s3106_s3, 2048 }
  0x2b   : > { %p2134_p1 = scmp.ne.s32.totalorder %s3106_s3, %s2133_s21  ;;  %p2140_p10 = scmp.lt.u32.totalorder %s2133_s21, %s3106_s3 }
  0x2d   : > { %p2136_p2 = pnand %p2134_p1, %p2411_p13 }
  0x2f   : > { %p2137_p6 = pneg %p2136_p2 }
  0x31   : > { %p2142_p3 = pnand %p2140_p10, %p2137_p6 }
  0x33   : > { %2145 = shalt.err (!%p2142_p3)
}
  0x34   : > { %s2146_s11 = scalar_lea.vmem %s2399_s14, 2048  ;;  %p2154_p12 = scmp.lt.s32.totalorder %s2399_s14, %s2399_s14 }
  0x35   : > { %p2147_p5 = scmp.ne.s32.totalorder %s2399_s14, %s2146_s11  ;;  %p2155_p0 = scmp.lt.s32.totalorder %s2146_s11, %s2146_s11 }
  0x37   : > { %p2149_p7 = pnand %p2147_p5, %p2411_p13  ;;  %p2156_p1 = por %p2155_p0, %p2154_p12 }
  0x39   : > { %p2150_p9 = pneg %p2149_p7 }
  0x3b   : > { %p2157_p2 = pnand %p2156_p1, %p2150_p9 }
  0x3d   : > { %2160 = shalt.err (!%p2157_p2)
}
  0x3e   : > { %1982 = dma.hbm_to_vmem [thread:$0]  (!%p2395_p11), %s3106_s3, 2048, %s2399_s14, [#allocation6], %s2298_s13, %s2298_s13, %s2299_s15  }
  0x3f   : > { %s2161_s20 = scalar_lea.hbm %s3108_s5, 2048 }
  0x40   : > { %p2162_p6 = scmp.ne.s32.totalorder %s3108_s5, %s2161_s20  ;;  %p2168_p5 = scmp.lt.u32.totalorder %s2161_s20, %s3108_s5 }
  0x42   : > { %p2164_p10 = pnand %p2162_p6, %p2411_p13 }
  0x44   : > { %p2165_p3 = pneg %p2164_p10 }
  0x46   : > { %p2170_p7 = pnand %p2168_p5, %p2165_p3 }
  0x48   : > { %2173 = shalt.err (!%p2170_p7)
}
  0x49   : > { %s2174_s11 = scalar_lea.vmem %s253_s16, 2048  ;;  %p2182_p1 = scmp.lt.s32.totalorder %s253_s16, %s253_s16 }
  0x4a   : > { %p2175_p9 = scmp.ne.s32.totalorder %s253_s16, %s2174_s11  ;;  %p2183_p2 = scmp.lt.s32.totalorder %s2174_s11, %s2174_s11 }
  0x4c   : > { %p2177_p12 = pnand %p2175_p9, %p2411_p13  ;;  %p2184_p4 = por %p2183_p2, %p2182_p1 }
  0x4e   : > { %p2178_p0 = pneg %p2177_p12 }
  0x50   : > { %p2185_p8 = pnand %p2184_p4, %p2178_p0 }
  0x52   : > { %2188 = shalt.err (!%p2185_p8)
}
  0x53   : > { %1985 = dma.hbm_to_vmem [thread:$0]  (!%p2395_p11), %s3108_s5, 2048, %s253_s16, [#allocation9], %s2298_s13, %s2298_s13, %s2299_s15  }
  0x54   : > { %s2484_s22 = sadd.s32 1, %s2293_s27   ;;  %s32_s17 = sadd.s32 1, %s2289_s26 }
  0x55   : > { %s29_s12 = ssub.s32 %s2293_s27, %s2484_s22  ;;  %p39_p8 = scmp.ne.s32.totalorder %s2289_s26, %s2285_s25 }
  0x56   : > { %p30_p4 = scmp.eq.s32.totalorder %s29_s12, 0  ;;  %p40_p13 = scmp.eq.s32.totalorder %s2293_s27, 0 }
  0x57   : > { %p1997_p6 = scmp.lt.s32.totalorder %s2293_s27, 2  ;;  %p3121_p3 = scmp.eq.s32.totalorder %s2365_s28, 1 }
  0x58   : > { %s2494_s18 = scalar_select %p30_p4, %s2289_s26, %s32_s17  }
  0x59   : > { %p41_p10 = por %p40_p13, %p39_p8  ;;  %p2498_p5 = por %p3121_p3, %p39_p8 }
  0x5a   : > { %s269_s20 = sand.u32 1, %s2289_s26   ;;  %s1582_s21 = sshll.u32 %s2293_s27, 11 }
  0x5b   : > { %s1561_s16 = sshll.u32 %s269_s20, 7  ;;  %s2507_s10 = scalar_lea.hbm %s3103_s0, %s1582_s21 }
  0x5c   : > { %s273_s11 = scalar_lea.vmem [#allocation2], %s1561_s16  ;;  %p2509_p11 = pnand %p1997_p6, %p41_p10 }
  0x5d   : > { %s280_s14 = sshll.u32 %s273_s11, 4  ;;  %s2515_s12 = scalar_lea.sflag [#allocation3], %s269_s20  ;;  %s2513_s14 = int_to_ptr.vmem [resolvable:$true] %s280_s14 }
  0x5e   : > { %s2189_s17 = scalar_lea.hbm %s2507_s10, 2048  ;;  %p2191_p9 = pneg %p2509_p11 }
  0x5f   : > { %p2190_p7 = scmp.ne.s32.totalorder %s2507_s10, %s2189_s17  ;;  %s2194_s23 = scalar_lea.hbm %s3103_s0, 4096 }
  0x60   : > { %p2195_p1 = scmp.lt.u32.totalorder %s2507_s10, %s3103_s0  ;;  %p2196_p2 = scmp.lt.u32.totalorder %s2194_s23, %s2189_s17 }
  0x61   : > { %p2192_p12 = pnand %p2191_p9, %p2190_p7  ;;  %p2198_p8 = scmp.lt.u32.totalorder %s2189_s17, %s2507_s10 }
  0x62   : > { %p2197_p4 = por %p2196_p2, %p2195_p1 }
  0x63   : > { %p2193_p0 = pneg %p2192_p12 }
  0x64   : > { %p2199_p13 = por %p2198_p8, %p2197_p4 }
  0x66   : > { %p2200_p6 = pnand %p2199_p13, %p2193_p0 }
  0x68   : > { %2203 = shalt.err (!%p2200_p6)
}
  0x69   : > { %s2204_s20 = scalar_lea.vmem %s2513_s14, 2048  ;;  %s2300_s21 = smov [#allocation2]  }
  0x6a   : > { %p2205_p10 = scmp.ne.s32.totalorder %s2513_s14, %s2204_s20  ;;  %s2209_s16 = sshll.u32 %s2300_s21, 4  ;;  %s2210_s16 = int_to_ptr.vmem [resolvable:$false] %s2209_s16 }
  0x6b   : > { %s2211_s29 = scalar_lea.vmem %s2210_s16, 4096  ;;  %p2212_p12 = scmp.lt.s32.totalorder %s2513_s14, %s2210_s16 }
  0x6c   : > { %p2207_p3 = pnand %p2205_p10, %p2191_p9  ;;  %p2213_p1 = scmp.lt.s32.totalorder %s2211_s29, %s2204_s20 }
  0x6e   : > { %p2208_p7 = pneg %p2207_p3  ;;  %p2214_p2 = por %p2213_p1, %p2212_p12 }
  0x70   : > { %p2215_p4 = pnand %p2214_p2, %p2208_p7 }
  0x72   : > { %2218 = shalt.err (!%p2215_p4)
}
  0x73   : > { %1989 = dma.hbm_to_vmem [thread:$0]  (!%p2509_p11), %s2507_s10, 2048, %s2513_s14, %s2515_s12, %s2298_s13, %s2298_s13, %s2299_s15  }
  0x74   : > { %p3124_p9 = scmp.ne.s32.totalorder %s3118_s9, 0 }
  0x75   : > { %s2549_s17 = sand.u32 (!%p3124_p9), 1, %s2285_s25   ;;  %p3125_p0 = scmp.ne.s32.totalorder (!%p3124_p9), %s3115_s30, 0 }
  0x76   : > { %292 = sbr.rel (%p3124_p9) target bundleno = 1262 (0x4ee), region = 48  ;;  %s1565_s23 = sshll.u32 (!%p3124_p9), %s2549_s17, 7 }
  0x77   : > { %s295_s11 = scalar_lea.sflag (!%p3124_p9), [#allocation3], %s2549_s17  ;;  %s2555_s8 = scalar_lea.vmem (!%p3124_p9), [#allocation2], %s1565_s23 }
  0x7d   : > { %2264 = dma.done.wait (%p3125_p0), %s295_s11, 2048  }
  0x7e   : > { %2266 = vsyncadd (%p3125_p0), %s295_s11, 4294965248  ;;  %p3126_p11 = scmp.eq.s32.totalorder %s2365_s28, 0 }
  0x80   : > { %2268 = dma.done.wait (%p3126_p11), [#allocation6], 4096   ;;  %p3127_p8 = pmov %p3126_p11 }
  0x82   : > { %2270 = vsyncadd (%p3127_p8), [#allocation6], 4294963200  ;;  %p3128_p13 = pmov %p3127_p8 }
  0x83   : > { %p3129_p6 = pmov %p3127_p8 }
  0x84   : > { %2272 = dma.done.wait (%p3128_p13), [#allocation9], 2048  }
  0x85   : > { %2274 = vsyncadd (%p3129_p6), [#allocation9], 4294965248  ;;  %v359_v0 = vld [vmem:[#allocation5] sm:$0xff]  ;;  %v360_v1 = vld [vmem:[#allocation5 + $0x8] sm:$0xff]  ;;  %s3034_s9 = scalar_lea.vmem [#allocation10], %s1565_s23  ;;  %s1583_s23 = sshll.u32 %s2365_s28, 11 }
  0x86   : > { %v361_v2 = vld [vmem:[#allocation5 + $0x10] sm:$0xff]  ;;  %v1848_v3 = vpack.c.bf16 %v360_v1, %v359_v0  ;;  %v362_v4 = vld [vmem:[#allocation5 + $0x18] sm:$0xff]  ;;  %v363_v6 = vld [vmem:[#allocation5 + $0x20] sm:$0xff]  ;;  %s1453_s13 = sshll.u32 %s3034_s9, 4  ;;  %s3055_s14 = scalar_lea.hbm %s3110_s7, %s1583_s23  ;;  %s3057_s13 = int_to_ptr.vmem [resolvable:$true] %s1453_s13 }
  0x87   : > { %v1852_v5 = vpack.c.bf16 %v362_v4, %v361_v2  ;;  %v364_v7 = vld [vmem:[#allocation5 + $0x28] sm:$0xff]  ;;  %v343_v9 = vld [vmem:[%s2555_s8] sm:$0xff]  ;;  %v365_v10 = vld [vmem:[#allocation5 + $0x30] sm:$0xff]  ;;  %s1440_s12 = scalar_lea.sflag [#allocation4], %s2549_s17  ;;  %s2219_s20 = scalar_lea.vmem %s3057_s13, 2048 }
  0x88   : > { %1849 = vmatprep.subr.bf16.mxu0 %v1848_v3  ;;  %v1856_v8 = vpack.c.bf16 %v364_v7, %v363_v6  ;;  %v366_v11 = vld [vmem:[#allocation5 + $0x38] sm:$0xff]  ;;  %1712 = vmatprep.mubr.f32.mxu0 %v343_v9  ;;  %v367_v13 = vld [vmem:[#allocation5 + $0x40] sm:$0xff]  ;;  %v368_v14 = vld [vmem:[#allocation5 + $0x48] sm:$0xff]  ;;  %p2220_p10 = scmp.ne.s32.totalorder %s3057_s13, %s2219_s20  ;;  %s2301_s28 = smov [#allocation10]  }
  0x89   : > { %1851 = vmatpush3.bf16.msra.mxu0 %v1848_v3  ;;  %v1860_v12 = vpack.c.bf16 %v366_v11, %v365_v10  ;;  %v1864_v15 = vpack.c.bf16 %v368_v14, %v367_v13  ;;  %v369_v16 = vld [vmem:[#allocation5 + $0x50] sm:$0xff]  ;;  %v370_v17 = vld [vmem:[#allocation5 + $0x58] sm:$0xff]  ;;  %v371_v19 = vld [vmem:[#allocation5 + $0x60] sm:$0xff]  ;;  %s2223_s21 = sshll.u32 %s2301_s28, 4  ;;  %s2224_s21 = int_to_ptr.vmem [resolvable:$false] %s2223_s21 }
  0x8a   : > { %1853 = vmatprep.subr.bf16.mxu0 %v1852_v5  ;;  %v1868_v18 = vpack.c.bf16 %v370_v17, %v369_v16  ;;  %v372_v20 = vld [vmem:[#allocation5 + $0x68] sm:$0xff]  ;;  %v373_v22 = vld [vmem:[#allocation5 + $0x70] sm:$0xff]  ;;  %v374_v23 = vld [vmem:[#allocation5 + $0x78] sm:$0xff]  ;;  %p2221_p3 = pnand %p2220_p10, %p2498_p5  ;;  %s2225_s16 = scalar_lea.vmem %s2224_s21, 4096 }
  0x8b   : > { %v1872_v21 = vpack.c.bf16 %v372_v20, %v371_v19  ;;  %v1876_v24 = vpack.c.bf16 %v374_v23, %v373_v22  ;;  %v344_v25 = vld [vmem:[%s2555_s8 + $0x8] sm:$0xff]  ;;  %v345_v26 = vld [vmem:[%s2555_s8 + $0x10] sm:$0xff]  ;;  %v346_v27 = vld [vmem:[%s2555_s8 + $0x18] sm:$0xff]  ;;  %p2226_p12 = scmp.lt.s32.totalorder %s3057_s13, %s2224_s21  ;;  %p2227_p1 = scmp.lt.s32.totalorder %s2225_s16, %s2219_s20 }
  0x8c   : > { %v347_v28 = vld [vmem:[%s2555_s8 + $0x20] sm:$0xff]  ;;  %v348_v29 = vld [vmem:[%s2555_s8 + $0x28] sm:$0xff]  ;;  %v349_v30 = vld [vmem:[%s2555_s8 + $0x30] sm:$0xff]  ;;  %p2222_p7 = pneg %p2221_p3 }
  0x8d   : > { %1855 = vmatpush3.bf16.msra.mxu0 %v1852_v5  ;;  %v350_v31 = vld [vmem:[%s2555_s8 + $0x38] sm:$0xff]  ;;  %v351_v32 = vld [vmem:[%s2555_s8 + $0x40] sm:$0xff]  ;;  %v352_v33 = vld [vmem:[%s2555_s8 + $0x48] sm:$0xff]  ;;  %p2228_p2 = por %p2227_p1, %p2226_p12 }
  0x8e   : > { %1857 = vmatprep.subr.bf16.mxu0 %v1856_v8  ;;  %v353_v34 = vld [vmem:[%s2555_s8 + $0x50] sm:$0xff]  ;;  %v354_v35 = vld [vmem:[%s2555_s8 + $0x58] sm:$0xff]  ;;  %v355_v36 = vld [vmem:[%s2555_s8 + $0x60] sm:$0xff] }
  0x8f   : > { %v356_v37 = vld [vmem:[%s2555_s8 + $0x68] sm:$0xff]  ;;  %v357_v38 = vld [vmem:[%s2555_s8 + $0x70] sm:$0xff]  ;;  %v358_v39 = vld [vmem:[%s2555_s8 + $0x78] sm:$0xff]  ;;  %p2229_p4 = pnand %p2228_p2, %p2222_p7 }
  0x90   : > { %v2588_v40 = vld [vmem:[%s3105_s2] ss:$0 sm:$0xff]  ;;  %v808_v60 = vld [vmem:[#allocation7 + $0x8] sm:$0xff]  ;;  %v809_v1 = vld [vmem:[#allocation7 + $0x10] sm:$0xff] }
  0x91   : > { %1859 = vmatpush3.bf16.msra.mxu0 %v1856_v8  ;;  %v807_v59 = vld [vmem:[#allocation7] sm:$0xff]  ;;  %v810_v2 = vld [vmem:[#allocation7 + $0x18] sm:$0xff]  ;;  %v812_v11 = vld [vmem:[#allocation7 + $0x28] sm:$0xff] }
  0x92   : > { %1861 = vmatprep.subr.bf16.mxu0 %v1860_v12  ;;  %v1880_v62 = vpack.c.bf16 %v808_v60, %v807_v59  ;;  %v1884_v5 = vpack.c.bf16 %v810_v2, %v809_v1  ;;  %v811_v10 = vld [vmem:[#allocation7 + $0x20] sm:$0xff]  ;;  %v813_v17 = vld [vmem:[#allocation7 + $0x30] sm:$0xff]  ;;  %v816_v23 = vld [vmem:[#allocation7 + $0x48] sm:$0xff] }
  0x93   : > { %v815_v22 = vld [vmem:[#allocation7 + $0x40] sm:$0xff] }
  0x94   : > { %1881 = vmatprep.subr.bf16.mxu1 %v1880_v62 }
  0x95   : > { %1863 = vmatpush3.bf16.msra.mxu0 %v1860_v12  ;;  %1883 = vmatpush3.bf16.msra.mxu1 %v1880_v62  ;;  %v1888_v12 = vpack.c.bf16 %v812_v11, %v811_v10 }
  0x96   : > { %1865 = vmatprep.subr.bf16.mxu0 %v1864_v15  ;;  %1885 = vmatprep.subr.bf16.mxu1 %v1884_v5 }
  0x99   : > { %1867 = vmatpush3.bf16.msra.mxu0 %v1864_v15  ;;  %1887 = vmatpush3.bf16.msra.mxu1 %v1884_v5 }
  0x9a   : > { %1869 = vmatprep.subr.bf16.mxu0 %v1868_v18  ;;  %1889 = vmatprep.subr.bf16.mxu1 %v1888_v12 }
  0x9d   : > { %1871 = vmatpush3.bf16.msra.mxu0 %v1868_v18  ;;  %1891 = vmatpush3.bf16.msra.mxu1 %v1888_v12  ;;  %v814_v18 = vld [vmem:[#allocation7 + $0x38] sm:$0xff] }
  0x9e   : > { %1873 = vmatprep.subr.bf16.mxu0 %v1872_v21  ;;  %v1892_v19 = vpack.c.bf16 %v814_v18, %v813_v17 }
  0xa0   : > { %1893 = vmatprep.subr.bf16.mxu1 %v1892_v19 }
  0xa1   : > { %1875 = vmatpush3.bf16.msra.mxu0 %v1872_v21  ;;  %1895 = vmatpush3.bf16.msra.mxu1 %v1892_v19 }
  0xa2   : > { %1877 = vmatprep.subr.bf16.mxu0 %v1876_v24 }
  0xa5   : > { %1879 = vmatpush3.bf16.msra.mxu0 %v1876_v24  ;;  %v1896_v24 = vpack.c.bf16 %v816_v23, %v815_v22 }
  0xa7   : > { %1897 = vmatprep.subr.bf16.mxu1 %v1896_v24 }
  0xa8   : > { %1713 = vmatmul.mubr.f32.vlgmr.msra.gmra.mrb[0].mxu0 %v344_v25  ;;  %1899 = vmatpush3.bf16.msra.mxu1 %v1896_v24 }
  0xa9   : > { %1715 = vmatprep.mubr.f32.mxu0 %v345_v26 }
  0xac   : > { %1716 = vmatmul.mubr.f32.gmra.mrb[2].mxu0 %v346_v27  ;;  %v817_v27 = vld [vmem:[#allocation7 + $0x50] sm:$0xff] }
  0xad   : > { %1718 = vmatprep.mubr.f32.mxu0 %v347_v28  ;;  %v818_v28 = vld [vmem:[#allocation7 + $0x58] sm:$0xff] }
  0xb0   : > { %1719 = vmatmul.mubr.f32.gmra.mrb[4].mxu0 %v348_v29  ;;  %v1900_v29 = vpack.c.bf16 %v818_v28, %v817_v27 }
  0xb1   : > { %1721 = vmatprep.mubr.f32.mxu0 %v349_v30 }
  0xb2   : > { %1901 = vmatprep.subr.bf16.mxu1 %v1900_v29 }
  0xb3   : > { %1903 = vmatpush3.bf16.msra.mxu1 %v1900_v29 }
  0xb4   : > { %1722 = vmatmul.mubr.f32.gmra.mrb[6].mxu0 %v350_v31 }
  0xb5   : > { %1724 = vmatprep.mubr.f32.mxu0 %v351_v32 }
  0xb8   : > { %1725 = vmatmul.mubr.f32.gmra.mrb[8].mxu0 %v352_v33  ;;  %v819_v33 = vld [vmem:[#allocation7 + $0x60] sm:$0xff] }
  0xb9   : > { %1727 = vmatprep.mubr.f32.mxu0 %v353_v34  ;;  %v820_v34 = vld [vmem:[#allocation7 + $0x68] sm:$0xff] }
  0xbc   : > { %1728 = vmatmul.mubr.f32.gmra.mrb[10].mxu0 %v354_v35  ;;  %v1904_v35 = vpack.c.bf16 %v820_v34, %v819_v33 }
  0xbd   : > { %1730 = vmatprep.mubr.f32.mxu0 %v355_v36 }
  0xbe   : > { %1905 = vmatprep.subr.bf16.mxu1 %v1904_v35 }
  0xbf   : > { %1907 = vmatpush3.bf16.msra.mxu1 %v1904_v35 }
  0xc0   : > { %1731 = vmatmul.mubr.f32.gmra.mrb[12].mxu0 %v356_v37 }
  0xc1   : > { %1733 = vmatprep.mubr.f32.mxu0 %v357_v38  ;;  %v821_v38 = vld [vmem:[#allocation7 + $0x70] sm:$0xff] }
  0xc4   : > { %1734 = vmatmul.mubr.f32.gmra.mrb[14].mxu0 %v358_v39  ;;  %v822_v39 = vld [vmem:[#allocation7 + $0x78] sm:$0xff] }
 0x17b   : > { %v1714_v41 = vpop.f32.mrb[0].mxu0 }
 0x17c   : > { %v2591_v42 = vadd.f32 %v1714_v41, %v2588_v40  ;;  %v446_v43 = vpop.f32.mrb[1].mxu0  ;;  %v1908_v41 = vpack.c.bf16 %v822_v39, %v821_v38  ;;  %v2704_v38 = vld [vmem:[%s3105_s2 + $0x1] ss:$0 sm:$0xff] }
 0x17d   : > { %v2594_v44 = vadd.f32 %v2588_v40, %v446_v43 }
 0x17e   : > { %527 = vadd.xlane.f32.xlu0 %v2591_v42  ;;  %v558_v45 = vmul.f32 %v2591_v42, %v2591_v42  ;;  %1909 = vmatprep.subr.bf16.mxu1 %v1908_v41 }
 0x17f   : > { %v1717_v46 = vpop.f32.mrb[2].mxu0  ;;  %v557_v49 = vmul.f32 %v2594_v44, %v2594_v44  ;;  %1911 = vmatpush3.bf16.msra.mxu1 %v1908_v41 }
 0x180   : > { %575 = vadd.xlane.f32.xlu1 %v558_v45  ;;  %v456_v47 = vpop.f32.mrb[3].mxu0  ;;  %v2606_v52 = vadd.f32 %v1717_v46, %v2588_v40 }
 0x181   : > { %v2601_v48 = vadd.f32 %v2588_v40, %v456_v47 }
 0x182   : > { %525 = vadd.xlane.f32.xlu0 %v2594_v44  ;;  %v560_v57 = vmul.f32 %v2606_v52, %v2606_v52 }
 0x183   : > { %v1720_v50 = vpop.f32.mrb[4].mxu0  ;;  %v559_v54 = vmul.f32 %v2601_v48, %v2601_v48 }
 0x184   : > { %573 = vadd.xlane.f32.xlu1 %v557_v49  ;;  %v466_v51 = vpop.f32.mrb[5].mxu0  ;;  %v2618_v63 = vadd.f32 %v1720_v50, %v2588_v40 }
 0x185   : > { %v2613_v56 = vadd.f32 %v2588_v40, %v466_v51 }
 0x186   : > { %529 = vadd.xlane.f32.xlu0 %v2601_v48  ;;  %v562_v7 = vmul.f32 %v2618_v63, %v2618_v63 }
 0x187   : > { %v1723_v53 = vpop.f32.mrb[6].mxu0  ;;  %v561_v3 = vmul.f32 %v2613_v56, %v2613_v56 }
 0x188   : > { %531 = vadd.xlane.f32.xlu1 %v2606_v52  ;;  %v476_v55 = vpop.f32.mrb[7].mxu0  ;;  %v2630_v13 = vadd.f32 %v1723_v53, %v2588_v40 }
 0x189   : > { %v2625_v6 = vadd.f32 %v2588_v40, %v476_v55 }
 0x18a   : > { %577 = vadd.xlane.f32.xlu0 %v559_v54  ;;  %v564_v21 = vmul.f32 %v2630_v13, %v2630_v13 }
 0x18b   : > { %v1726_v58 = vpop.f32.mrb[8].mxu0  ;;  %v563_v15 = vmul.f32 %v2625_v6, %v2625_v6 }
 0x18c   : > { %579 = vadd.xlane.f32.xlu1 %v560_v57  ;;  %v486_v61 = vpop.f32.mrb[9].mxu0  ;;  %v2642_v25 = vadd.f32 %v1726_v58, %v2588_v40 }
 0x18d   : > { %v2637_v20 = vadd.f32 %v2588_v40, %v486_v61 }
 0x18e   : > { %533 = vadd.xlane.f32.xlu0 %v2613_v56  ;;  %v566_v31 = vmul.f32 %v2642_v25, %v2642_v25 }
 0x18f   : > { %v1729_v0 = vpop.f32.mrb[10].mxu0  ;;  %v565_v26 = vmul.f32 %v2637_v20, %v2637_v20 }
 0x190   : > { %535 = vadd.xlane.f32.xlu1 %v2618_v63  ;;  %v496_v4 = vpop.f32.mrb[11].mxu0  ;;  %v2654_v32 = vadd.f32 %v1729_v0, %v2588_v40 }
 0x191   : > { %v2649_v30 = vadd.f32 %v2588_v40, %v496_v4 }
 0x192   : > { %581 = vadd.xlane.f32.xlu0 %v561_v3  ;;  %v568_v37 = vmul.f32 %v2654_v32, %v2654_v32 }
 0x193   : > { %v1732_v8 = vpop.f32.mrb[12].mxu0  ;;  %v567_v36 = vmul.f32 %v2649_v30, %v2649_v30 }
 0x194   : > { %583 = vadd.xlane.f32.xlu1 %v562_v7  ;;  %v506_v9 = vpop.f32.mrb[13].mxu0  ;;  %v2666_v45 = vadd.f32 %v1732_v8, %v2588_v40 }
 0x195   : > { %v2663_v43 = vadd.f32 %v2588_v40, %v506_v9 }
 0x196   : > { %537 = vadd.xlane.f32.xlu0 %v2625_v6  ;;  %v570_v47 = vmul.f32 %v2666_v45, %v2666_v45 }
 0x197   : > { %v1735_v14 = vpop.f32.mrb[14].mxu0  ;;  %v569_v46 = vmul.f32 %v2663_v43, %v2663_v43 }
 0x198   : > { %539 = vadd.xlane.f32.xlu1 %v2630_v13  ;;  %v516_v16 = vpop.f32.mrb[15].mxu0  ;;  %v2678_v50 = vadd.f32 %v1735_v14, %v2588_v40 }
 0x199   : > { %v2675_v49 = vadd.f32 %v2588_v40, %v516_v16 }
 0x19a   : > { %585 = vadd.xlane.f32.xlu0 %v563_v15  ;;  %v572_v53 = vmul.f32 %v2678_v50, %v2678_v50 }
 0x19b   : > { %v571_v51 = vmul.f32 %v2675_v49, %v2675_v49 }
 0x19c   : > { %587 = vadd.xlane.f32.xlu1 %v564_v21 }
 0x19e   : > { %541 = vadd.xlane.f32.xlu0 %v2637_v20 }
 0x1a0   : > { %543 = vadd.xlane.f32.xlu1 %v2642_v25 }
 0x1a2   : > { %589 = vadd.xlane.f32.xlu0 %v565_v26 }
 0x1a4   : > { %591 = vadd.xlane.f32.xlu1 %v566_v31 }
 0x1a6   : > { %545 = vadd.xlane.f32.xlu0 %v2649_v30 }
 0x1a8   : > { %547 = vadd.xlane.f32.xlu1 %v2654_v32 }
 0x1aa   : > { %593 = vadd.xlane.f32.xlu0 %v567_v36 }
 0x1ac   : > { %595 = vadd.xlane.f32.xlu1 %v568_v37 }
 0x1ae   : > { %549 = vadd.xlane.f32.xlu0 %v2663_v43 }
 0x1b0   : > { %551 = vadd.xlane.f32.xlu1 %v2666_v45 }
 0x1b2   : > { %597 = vadd.xlane.f32.xlu0 %v569_v46 }
 0x1b4   : > { %599 = vadd.xlane.f32.xlu1 %v570_v47 }
 0x1b6   : > { %553 = vadd.xlane.f32.xlu0 %v2675_v49 }
 0x1b8   : > { %555 = vadd.xlane.f32.xlu1 %v2678_v50 }
 0x1ba   : > { %601 = vadd.xlane.f32.xlu0 %v571_v51 }
 0x1bc   : > { %603 = vadd.xlane.f32.xlu1 %v572_v53 }
 0x20b   : > { %v528_v54 = vpop.xlane.xlu0 %527 }
 0x20c   : > { %v606_v55 = vmul.f32 0.0078125, %v528_v54 }
 0x20d   : > { %v576_v57 = vpop.xlane.xlu1 %575 }
 0x20e   : > { %v638_v58 = vmul.f32 %v606_v55, %v606_v55  ;;  %v622_v59 = vmul.f32 0.0078125, %v576_v57  ;;  %v686_v29 = vsub.f32 %v2591_v42, %v606_v55 }
 0x20f   : > { %v526_v40 = vpop.xlane.xlu0 %525 }
 0x210   : > { %v654_v60 = vsub.f32 %v622_v59, %v638_v58  ;;  %v605_v61 = vmul.f32 0.0078125, %v526_v40  ;;  %v2715_v40 = vld [vmem:[%s3105_s2 + $0x2] ss:$0 sm:$0xff] }
 0x211   : > { %v574_v62 = vpop.xlane.xlu1 %573 }
 0x212   : > { %v670_v0 = vmax.f32 %v654_v60, 0.0  ;;  %v637_v1 = vmul.f32 %v605_v61, %v605_v61  ;;  %v621_v2 = vmul.f32 0.0078125, %v574_v62  ;;  %v685_v51 = vsub.f32 %v2594_v44, %v605_v61 }
 0x213   : > { %v530_v3 = vpop.xlane.xlu0 %529 }
 0x214   : > { %v702_v4 = vadd.f32 1e-05, %v670_v0  ;;  %v653_v5 = vsub.f32 %v621_v2, %v637_v1  ;;  %v2686_v7 = vmul.f32 0.0078125, %v530_v3 }
 0x215   : > { %v532_v8 = vpop.xlane.xlu1 %531 }
 0x216   : > { %2041 = vrsqrt.f32 %v702_v4  ;;  %v669_v9 = vmax.f32 %v653_v5, 0.0  ;;  %v2688_v10 = vmul.f32 0.0078125, %v532_v8  ;;  %v639_v14 = vmul.f32 %v2686_v7, %v2686_v7 }
 0x217   : > { %v578_v11 = vpop.xlane.xlu0 %577 }
 0x218   : > { %v701_v12 = vadd.f32 1e-05, %v669_v9  ;;  %v623_v15 = vmul.f32 0.0078125, %v578_v11  ;;  %v640_v17 = vmul.f32 %v2688_v10, %v2688_v10  ;;  %v687_v9 = vsub.f32 %v2601_v48, %v2686_v7 }
 0x219   : > { %v580_v16 = vpop.xlane.xlu1 %579 }
 0x21a   : > { %2043 = vrsqrt.f32 %v701_v12  ;;  %v655_v18 = vsub.f32 %v623_v15, %v639_v14  ;;  %v624_v19 = vmul.f32 0.0078125, %v580_v16 }
 0x21b   : > { %v534_v21 = vpop.xlane.xlu0 %533 }
 0x21c   : > { %v671_v22 = vmax.f32 %v655_v18, 0.0  ;;  %v656_v23 = vsub.f32 %v624_v19, %v640_v17  ;;  %v2694_v24 = vmul.f32 0.0078125, %v534_v21  ;;  %v688_v18 = vsub.f32 %v2606_v52, %v2688_v10 }
 0x21d   : > { %v536_v26 = vpop.xlane.xlu1 %535 }
 0x21e   : > { %v703_v27 = vadd.f32 1e-05, %v671_v22  ;;  %v672_v28 = vmax.f32 %v656_v23, 0.0  ;;  %v2697_v31 = vmul.f32 0.0078125, %v536_v26  ;;  %v641_v36 = vmul.f32 %v2694_v24, %v2694_v24 }
 0x21f   : > { %v582_v33 = vpop.xlane.xlu0 %581 }
 0x220   : > { %v2042_v34 = vpop.eup %2041  ;;  %2045 = vrsqrt.f32 %v703_v27  ;;  %v704_v35 = vadd.f32 1e-05, %v672_v28  ;;  %v625_v37 = vmul.f32 0.0078125, %v582_v33  ;;  %v642_v42 = vmul.f32 %v2697_v31, %v2697_v31 }
 0x221   : > { %v584_v39 = vpop.xlane.xlu1 %583  ;;  %v734_v41 = vmul.f32 %v2042_v34, %v686_v29 }
 0x222   : > { %2047 = vrsqrt.f32 %v704_v35  ;;  %v657_v46 = vsub.f32 %v625_v37, %v641_v36  ;;  %v626_v47 = vmul.f32 0.0078125, %v584_v39 }
 0x223   : > { %v538_v53 = vpop.xlane.xlu0 %537  ;;  %v755_v54 = vmul.f32 %v2704_v38, %v734_v41 }
 0x224   : > { %v2044_v55 = vpop.eup %2043  ;;  %v673_v57 = vmax.f32 %v657_v46, 0.0  ;;  %v658_v58 = vsub.f32 %v626_v47, %v642_v42  ;;  %v2710_v59 = vmul.f32 0.0078125, %v538_v53  ;;  %v689_v46 = vsub.f32 %v2613_v56, %v2694_v24 }
 0x225   : > { %v540_v60 = vpop.xlane.xlu1 %539  ;;  %v733_v62 = vmul.f32 %v2044_v55, %v685_v51  ;;  %v776_v3 = vadd.f32 %v2715_v40, %v755_v54 }
 0x226   : > { %v705_v0 = vadd.f32 1e-05, %v673_v57  ;;  %v674_v1 = vmax.f32 %v658_v58, 0.0  ;;  %v2717_v2 = vmul.f32 0.0078125, %v540_v60  ;;  %v643_v5 = vmul.f32 %v2710_v59, %v2710_v59 }
 0x227   : > { %v586_v44 = vpop.xlane.xlu0 %585  ;;  %v754_v61 = vmul.f32 %v2704_v38, %v733_v62  ;;  %v792_v7 = vmax.f32 %v776_v3, 0.0  ;;  %v690_v60 = vsub.f32 %v2618_v63, %v2697_v31 }
 0x228   : > { %2049 = vrsqrt.f32 %v705_v0  ;;  %v706_v4 = vadd.f32 1e-05, %v674_v1  ;;  %v627_v8 = vmul.f32 0.0078125, %v586_v44  ;;  %v644_v15 = vmul.f32 %v2717_v2, %v2717_v2 }
 0x229   : > { %v588_v11 = vpop.xlane.xlu1 %587  ;;  %v775_v12 = vadd.f32 %v2715_v40, %v754_v61 }
 0x22a   : > { %v2046_v14 = vpop.eup %2045  ;;  %2051 = vrsqrt.f32 %v706_v4  ;;  %v659_v16 = vsub.f32 %v627_v8, %v643_v5  ;;  %v628_v17 = vmul.f32 0.0078125, %v588_v11 }
 0x22b   : > { %v542_v19 = vpop.xlane.xlu0 %541  ;;  %v791_v21 = vmax.f32 %v775_v12, 0.0  ;;  %v735_v22 = vmul.f32 %v2046_v14, %v687_v9 }
 0x22c   : > { %v2048_v23 = vpop.eup %2047  ;;  %v675_v26 = vmax.f32 %v659_v16, 0.0  ;;  %v660_v27 = vsub.f32 %v628_v17, %v644_v15  ;;  %v2730_v48 = vmul.f32 0.0078125, %v542_v19  ;;  %v691_v17 = vsub.f32 %v2625_v6, %v2710_v59 }
 0x22d   : > { %1768 = vmatprep.mubr.f32.mxu1 %v791_v21  ;;  %v544_v28 = vpop.xlane.xlu1 %543  ;;  %v756_v29 = vmul.f32 %v2704_v38, %v735_v22  ;;  %v736_v33 = vmul.f32 %v2048_v23, %v688_v18 }
 0x22e   : > { %v707_v34 = vadd.f32 1e-05, %v675_v26  ;;  %v676_v35 = vmax.f32 %v660_v27, 0.0  ;;  %1769 = vmatmul.mubr.f32.vlgmr.msra.gmra.mrb[0].mxu1 %v792_v7  ;;  %v2733_v36 = vmul.f32 0.0078125, %v544_v28  ;;  %v645_v41 = vmul.f32 %v2730_v48, %v2730_v48 }
 0x22f   : > { %v590_v52 = vpop.xlane.xlu0 %589  ;;  %v777_v10 = vadd.f32 %v2715_v40, %v756_v29  ;;  %v757_v37 = vmul.f32 %v2704_v38, %v736_v33  ;;  %v692_v7 = vsub.f32 %v2630_v13, %v2717_v2 }
 0x230   : > { %2053 = vrsqrt.f32 %v707_v34  ;;  %v708_v39 = vadd.f32 1e-05, %v676_v35  ;;  %v629_v42 = vmul.f32 0.0078125, %v590_v52  ;;  %v646_v55 = vmul.f32 %v2733_v36, %v2733_v36 }
 0x231   : > { %v592_v47 = vpop.xlane.xlu1 %591  ;;  %v793_v51 = vmax.f32 %v777_v10, 0.0  ;;  %v778_v53 = vadd.f32 %v2715_v40, %v757_v37 }
 0x232   : > { %v2050_v54 = vpop.eup %2049  ;;  %2055 = vrsqrt.f32 %v708_v39  ;;  %v661_v57 = vsub.f32 %v629_v42, %v645_v41  ;;  %v630_v58 = vmul.f32 0.0078125, %v592_v47 }
 0x233   : > { %v546_v62 = vpop.xlane.xlu0 %545  ;;  %1771 = vmatprep.mubr.f32.mxu1 %v793_v51  ;;  %v794_v0 = vmax.f32 %v778_v53, 0.0  ;;  %v737_v1 = vmul.f32 %v2050_v54, %v689_v46  ;;  %v693_v54 = vsub.f32 %v2637_v20, %v2730_v48 }
 0x234   : > { %v2052_v44 = vpop.eup %2051  ;;  %v677_v56 = vmax.f32 %v661_v57, 0.0  ;;  %v662_v24 = vsub.f32 %v630_v58, %v646_v55  ;;  %v2746_v61 = vmul.f32 0.0078125, %v546_v62 }
 0x235   : > { %1772 = vmatmul.mubr.f32.gmra.mrb[2].mxu1 %v794_v0  ;;  %v548_v3 = vpop.xlane.xlu1 %547  ;;  %v758_v4 = vmul.f32 %v2704_v38, %v737_v1  ;;  %v738_v5 = vmul.f32 %v2052_v44, %v690_v60  ;;  %v694_v44 = vsub.f32 %v2642_v25, %v2733_v36 }
 0x236   : > { %v709_v8 = vadd.f32 1e-05, %v677_v56  ;;  %v678_v9 = vmax.f32 %v662_v24, 0.0  ;;  %v647_v11 = vmul.f32 %v2746_v61, %v2746_v61  ;;  %v2751_v63 = vmul.f32 0.0078125, %v548_v3 }
 0x237   : > { %v594_v31 = vpop.xlane.xlu0 %593  ;;  %v779_v12 = vadd.f32 %v2715_v40, %v758_v4  ;;  %v759_v14 = vmul.f32 %v2704_v38, %v738_v5 }
 0x238   : > { %2057 = vrsqrt.f32 %v709_v8  ;;  %v710_v15 = vadd.f32 1e-05, %v678_v9  ;;  %v631_v16 = vmul.f32 0.0078125, %v594_v31  ;;  %v648_v18 = vmul.f32 %v2751_v63, %v2751_v63 }
 0x239   : > { %v596_v19 = vpop.xlane.xlu1 %595  ;;  %v795_v21 = vmax.f32 %v779_v12, 0.0  ;;  %v780_v22 = vadd.f32 %v2715_v40, %v759_v14 }
 0x23a   : > { %v2054_v23 = vpop.eup %2053  ;;  %2059 = vrsqrt.f32 %v710_v15  ;;  %v663_v26 = vsub.f32 %v631_v16, %v647_v11  ;;  %v632_v27 = vmul.f32 0.0078125, %v596_v19  ;;  %v695_v19 = vsub.f32 %v2649_v30, %v2746_v61 }
 0x23b   : > { %v550_v28 = vpop.xlane.xlu0 %549  ;;  %1774 = vmatprep.mubr.f32.mxu1 %v795_v21  ;;  %v796_v29 = vmax.f32 %v780_v22, 0.0  ;;  %v739_v33 = vmul.f32 %v2054_v23, %v691_v17 }
 0x23c   : > { %v2056_v34 = vpop.eup %2055  ;;  %v679_v6 = vmax.f32 %v663_v26, 0.0  ;;  %v664_v59 = vsub.f32 %v632_v27, %v648_v18  ;;  %v2762_v35 = vmul.f32 0.0078125, %v550_v28 }
 0x23d   : > { %1775 = vmatmul.mubr.f32.gmra.mrb[4].mxu1 %v796_v29  ;;  %v552_v52 = vpop.xlane.xlu1 %551  ;;  %v760_v10 = vmul.f32 %v2704_v38, %v739_v33  ;;  %v740_v37 = vmul.f32 %v2056_v34, %v692_v7  ;;  %v696_v29 = vsub.f32 %v2654_v32, %v2751_v63 }
 0x23e   : > { %v711_v39 = vadd.f32 1e-05, %v679_v6  ;;  %v680_v41 = vmax.f32 %v664_v59, 0.0  ;;  %v649_v42 = vmul.f32 %v2762_v35, %v2762_v35  ;;  %v2767_v13 = vmul.f32 0.0078125, %v552_v52 }
 0x23f   : > { %v598_v2 = vpop.xlane.xlu0 %597  ;;  %v781_v46 = vadd.f32 %v2715_v40, %v760_v10  ;;  %v761_v47 = vmul.f32 %v2704_v38, %v740_v37  ;;  %v697_v32 = vsub.f32 %v2663_v43, %v2762_v35 }
 0x240   : > { %2061 = vrsqrt.f32 %v711_v39  ;;  %v712_v51 = vadd.f32 1e-05, %v680_v41  ;;  %v633_v53 = vmul.f32 0.0078125, %v598_v2  ;;  %v650_v55 = vmul.f32 %v2767_v13, %v2767_v13 }
 0x241   : > { %v600_v57 = vpop.xlane.xlu1 %599  ;;  %v797_v58 = vmax.f32 %v781_v46, 0.0  ;;  %v782_v60 = vadd.f32 %v2715_v40, %v761_v47  ;;  %v698_v47 = vsub.f32 %v2666_v45, %v2767_v13 }
 0x242   : > { %v2058_v62 = vpop.eup %2057  ;;  %2063 = vrsqrt.f32 %v712_v51  ;;  %v665_v0 = vsub.f32 %v633_v53, %v649_v42  ;;  %v634_v1 = vmul.f32 0.0078125, %v600_v57 }
 0x243   : > { %v554_v56 = vpop.xlane.xlu0 %553  ;;  %1777 = vmatprep.mubr.f32.mxu1 %v797_v58  ;;  %v798_v24 = vmax.f32 %v782_v60, 0.0  ;;  %v741_v3 = vmul.f32 %v2058_v62, %v693_v54 }
 0x244   : > { %v2060_v4 = vpop.eup %2059  ;;  %v681_v20 = vmax.f32 %v665_v0, 0.0  ;;  %v666_v48 = vsub.f32 %v634_v1, %v650_v55  ;;  %v2778_v5 = vmul.f32 0.0078125, %v554_v56 }
 0x245   : > { %1778 = vmatmul.mubr.f32.gmra.mrb[6].mxu1 %v798_v24  ;;  %v556_v8 = vpop.xlane.xlu1 %555  ;;  %v762_v9 = vmul.f32 %v2704_v38, %v741_v3  ;;  %v742_v11 = vmul.f32 %v2060_v4, %v694_v44 }
 0x246   : > { %v713_v31 = vadd.f32 1e-05, %v681_v20  ;;  %v682_v12 = vmax.f32 %v666_v48, 0.0  ;;  %v651_v14 = vmul.f32 %v2778_v5, %v2778_v5  ;;  %v620_v25 = vmul.f32 0.0078125, %v556_v8 }
 0x247   : > { %v602_v36 = vpop.xlane.xlu0 %601  ;;  %v783_v15 = vadd.f32 %v2715_v40, %v762_v9  ;;  %v763_v16 = vmul.f32 %v2704_v38, %v742_v11  ;;  %v699_v35 = vsub.f32 %v2675_v49, %v2778_v5 }
 0x248   : > { %2065 = vrsqrt.f32 %v713_v31  ;;  %v714_v17 = vadd.f32 1e-05, %v682_v12  ;;  %v635_v18 = vmul.f32 0.0078125, %v602_v36  ;;  %v652_v21 = vmul.f32 %v620_v25, %v620_v25 }
 0x249   : > { %v604_v22 = vpop.xlane.xlu1 %603  ;;  %v799_v23 = vmax.f32 %v783_v15, 0.0  ;;  %v784_v26 = vadd.f32 %v2715_v40, %v763_v16  ;;  %v700_v45 = vsub.f32 %v2678_v50, %v620_v25  ;;  %v2812_v50 = vld [vmem:[%s3107_s4] ss:$0 sm:$0xff] }
 0x24a   : > { %v2062_v27 = vpop.eup %2061  ;;  %2067 = vrsqrt.f32 %v714_v17  ;;  %v667_v7 = vsub.f32 %v635_v18, %v651_v14  ;;  %v636_v28 = vmul.f32 0.0078125, %v604_v22  ;;  %v1255_v17 = vld [vmem:[#allocation8] sm:$0xff]  ;;  %v1256_v18 = vld [vmem:[#allocation8 + $0x8] sm:$0xff] }
 0x24b   : > { %1780 = vmatprep.mubr.f32.mxu1 %v799_v23  ;;  %v800_v33 = vmax.f32 %v784_v26, 0.0  ;;  %v743_v34 = vmul.f32 %v2062_v27, %v695_v19  ;;  %v1257_v23 = vld [vmem:[#allocation8 + $0x10] sm:$0xff]  ;;  %v1258_v26 = vld [vmem:[#allocation8 + $0x18] sm:$0xff] }
 0x24c   : > { %v2064_v6 = vpop.eup %2063  ;;  %v683_v59 = vmax.f32 %v667_v7, 0.0  ;;  %v668_v52 = vsub.f32 %v636_v28, %v652_v21  ;;  %v1912_v21 = vpack.c.bf16 %v1256_v18, %v1255_v17  ;;  %v1916_v27 = vpack.c.bf16 %v1258_v26, %v1257_v23 }
 0x24d   : > { %1781 = vmatmul.mubr.f32.gmra.mrb[8].mxu1 %v800_v33  ;;  %v764_v30 = vmul.f32 %v2704_v38, %v743_v34  ;;  %v744_v61 = vmul.f32 %v2064_v6, %v696_v29  ;;  %v1259_v29 = vld [vmem:[#allocation8 + $0x20] sm:$0xff]  ;;  %v1260_v33 = vld [vmem:[#allocation8 + $0x28] sm:$0xff] }
 0x24e   : > { %v715_v10 = vadd.f32 1e-05, %v683_v59  ;;  %v684_v37 = vmax.f32 %v668_v52, 0.0  ;;  %1913 = vmatprep.subr.bf16.mxu0 %v1912_v21  ;;  %1944 = vmatprep.subr.bf16.mxu1 %v1912_v21  ;;  %v1920_v59 = vpack.c.bf16 %v1260_v33, %v1259_v29 }
 0x24f   : > { %v785_v39 = vadd.f32 %v2715_v40, %v764_v30  ;;  %v765_v41 = vmul.f32 %v2704_v38, %v744_v61  ;;  %1915 = vmatpush3.bf16.msra.mxu0 %v1912_v21  ;;  %1952 = vmatpush3.bf16.msra.mxu1 %v1912_v21  ;;  %v1261_v30 = vld [vmem:[#allocation8 + $0x30] sm:$0xff]  ;;  %v1262_v61 = vld [vmem:[#allocation8 + $0x38] sm:$0xff] }
 0x250   : > { %2069 = vrsqrt.f32 %v715_v10  ;;  %v716_v42 = vadd.f32 1e-05, %v684_v37  ;;  %1917 = vmatprep.subr.bf16.mxu0 %v1916_v27  ;;  %1945 = vmatprep.subr.bf16.mxu1 %v1916_v27  ;;  %v1924_v37 = vpack.c.bf16 %v1262_v61, %v1261_v30 }
 0x251   : > { %v801_v63 = vmax.f32 %v785_v39, 0.0  ;;  %v786_v2 = vadd.f32 %v2715_v40, %v765_v41 }
 0x252   : > { %v2066_v46 = vpop.eup %2065  ;;  %2071 = vrsqrt.f32 %v716_v42  ;;  %v1263_v42 = vld [vmem:[#allocation8 + $0x40] sm:$0xff] }
 0x253   : > { %1783 = vmatprep.mubr.f32.mxu1 %v801_v63  ;;  %v802_v51 = vmax.f32 %v786_v2, 0.0  ;;  %v745_v53 = vmul.f32 %v2066_v46, %v697_v32  ;;  %1919 = vmatpush3.bf16.msra.mxu0 %v1916_v27  ;;  %v1264_v32 = vld [vmem:[#allocation8 + $0x48] sm:$0xff] }
 0x254   : > { %v2068_v54 = vpop.eup %2067  ;;  %1953 = vmatpush3.bf16.msra.mxu1 %v1916_v27  ;;  %1921 = vmatprep.subr.bf16.mxu0 %v1920_v59  ;;  %v1928_v46 = vpack.c.bf16 %v1264_v32, %v1263_v42 }
 0x255   : > { %1784 = vmatmul.mubr.f32.gmra.mrb[10].mxu1 %v802_v51  ;;  %v766_v55 = vmul.f32 %v2704_v38, %v745_v53  ;;  %v746_v57 = vmul.f32 %v2068_v54, %v698_v47  ;;  %1946 = vmatprep.subr.bf16.mxu1 %v1920_v59  ;;  %v1265_v51 = vld [vmem:[#allocation8 + $0x50] sm:$0xff]  ;;  %v1266_v53 = vld [vmem:[#allocation8 + $0x58] sm:$0xff] }
 0x257   : > { %v787_v58 = vadd.f32 %v2715_v40, %v766_v55  ;;  %v767_v43 = vmul.f32 %v2704_v38, %v746_v57  ;;  %1923 = vmatpush3.bf16.msra.mxu0 %v1920_v59  ;;  %v1932_v55 = vpack.c.bf16 %v1266_v53, %v1265_v51 }
 0x258   : > { %1954 = vmatpush3.bf16.msra.mxu1 %v1920_v59  ;;  %1925 = vmatprep.subr.bf16.mxu0 %v1924_v37 }
 0x259   : > { %v803_v60 = vmax.f32 %v787_v58, 0.0  ;;  %v788_v62 = vadd.f32 %v2715_v40, %v767_v43  ;;  %1947 = vmatprep.subr.bf16.mxu1 %v1924_v37  ;;  %v1267_v43 = vld [vmem:[#allocation8 + $0x60] sm:$0xff] }
 0x25a   : > { %v2070_v0 = vpop.eup %2069 }
 0x25b   : > { %1786 = vmatprep.mubr.f32.mxu1 %v803_v60  ;;  %v804_v13 = vmax.f32 %v788_v62, 0.0  ;;  %v747_v1 = vmul.f32 %v2070_v0, %v699_v35  ;;  %1927 = vmatpush3.bf16.msra.mxu0 %v1924_v37  ;;  %v1268_v35 = vld [vmem:[#allocation8 + $0x68] sm:$0xff] }
 0x25c   : > { %v2072_v44 = vpop.eup %2071  ;;  %1955 = vmatpush3.bf16.msra.mxu1 %v1924_v37  ;;  %1929 = vmatprep.subr.bf16.mxu0 %v1928_v46  ;;  %v1936_v0 = vpack.c.bf16 %v1268_v35, %v1267_v43 }
 0x25d   : > { %1787 = vmatmul.mubr.f32.gmra.mrb[12].mxu1 %v804_v13  ;;  %v768_v56 = vmul.f32 %v2704_v38, %v747_v1  ;;  %v748_v24 = vmul.f32 %v2072_v44, %v700_v45  ;;  %1948 = vmatprep.subr.bf16.mxu1 %v1928_v46  ;;  %v1269_v1 = vld [vmem:[#allocation8 + $0x70] sm:$0xff]  ;;  %v1270_v44 = vld [vmem:[#allocation8 + $0x78] sm:$0xff] }
 0x25f   : > { %v789_v3 = vadd.f32 %v2715_v40, %v768_v56  ;;  %v769_v4 = vmul.f32 %v2704_v38, %v748_v24  ;;  %1931 = vmatpush3.bf16.msra.mxu0 %v1928_v46  ;;  %v1940_v24 = vpack.c.bf16 %v1270_v44, %v1269_v1 }
 0x260   : > { %1956 = vmatpush3.bf16.msra.mxu1 %v1928_v46  ;;  %1933 = vmatprep.subr.bf16.mxu0 %v1932_v55 }
 0x261   : > { %v805_v20 = vmax.f32 %v789_v3, 0.0  ;;  %v790_v49 = vadd.f32 %v2715_v40, %v769_v4  ;;  %1949 = vmatprep.subr.bf16.mxu1 %v1932_v55 }
 0x263   : > { %1789 = vmatprep.mubr.f32.mxu1 %v805_v20  ;;  %v806_v48 = vmax.f32 %v790_v49, 0.0  ;;  %1935 = vmatpush3.bf16.msra.mxu0 %v1932_v55 }
 0x264   : > { %1957 = vmatpush3.bf16.msra.mxu1 %v1932_v55  ;;  %1937 = vmatprep.subr.bf16.mxu0 %v1936_v0  ;;  %v2922_v55 = vld [vmem:[%s3107_s4 + $0x1] ss:$0 sm:$0xff] }
 0x265   : > { %1790 = vmatmul.mubr.f32.gmra.mrb[14].mxu1 %v806_v48  ;;  %1950 = vmatprep.subr.bf16.mxu1 %v1936_v0 }
 0x267   : > { %1939 = vmatpush3.bf16.msra.mxu0 %v1936_v0 }
 0x268   : > { %1958 = vmatpush3.bf16.msra.mxu1 %v1936_v0  ;;  %1941 = vmatprep.subr.bf16.mxu0 %v1940_v24 }
 0x269   : > { %1951 = vmatprep.subr.bf16.mxu1 %v1940_v24 }
 0x26b   : > { %1943 = vmatpush3.bf16.msra.mxu0 %v1940_v24 }
 0x26c   : > { %1959 = vmatpush3.bf16.msra.mxu1 %v1940_v24 }
 0x301   : > { %v1770_v5 = vpop.f32.mrb[0].mxu1 }
 0x302   : > { %v2815_v8 = vadd.f32 %v1770_v5, %v2812_v50  ;;  %v894_v9 = vpop.f32.mrb[1].mxu1 }
 0x303   : > { %v2819_v38 = vadd.f32 %v2812_v50, %v894_v9 }
 0x304   : > { %975 = vadd.xlane.f32.xlu0 %v2815_v8  ;;  %v1006_v31 = vmul.f32 %v2815_v8, %v2815_v8 }
 0x305   : > { %v1005_v12 = vmul.f32 %v2819_v38, %v2819_v38 }
 0x308   : > { %973 = vadd.xlane.f32.xlu0 %v2819_v38  ;;  %v1773_v40 = vpop.f32.mrb[2].mxu1 }
 0x309   : > { %v904_v11 = vpop.f32.mrb[3].mxu1  ;;  %v2827_v36 = vadd.f32 %v1773_v40, %v2812_v50 }
 0x30a   : > { %v2831_v15 = vadd.f32 %v2812_v50, %v904_v11 }
 0x30b   : > { %v1008_v22 = vmul.f32 %v2827_v36, %v2827_v36 }
 0x30c   : > { %1023 = vadd.xlane.f32.xlu0 %v1006_v31  ;;  %v1007_v7 = vmul.f32 %v2831_v15, %v2831_v15 }
 0x310   : > { %1021 = vadd.xlane.f32.xlu0 %v1005_v12  ;;  %v1776_v14 = vpop.f32.mrb[4].mxu1 }
 0x311   : > { %v914_v25 = vpop.f32.mrb[5].mxu1  ;;  %v2846_v52 = vadd.f32 %v1776_v14, %v2812_v50 }
 0x312   : > { %v2854_v39 = vadd.f32 %v2812_v50, %v914_v25 }
 0x313   : > { %v1010_v47 = vmul.f32 %v2846_v52, %v2846_v52 }
 0x314   : > { %979 = vadd.xlane.f32.xlu0 %v2827_v36  ;;  %v1009_v57 = vmul.f32 %v2854_v39, %v2854_v39 }
 0x318   : > { %977 = vadd.xlane.f32.xlu0 %v2831_v15  ;;  %v2834_v16 = vpop.f32.mrb[6].mxu1 }
 0x319   : > { %v2836_v19 = vpop.f32.mrb[7].mxu1  ;;  %v2871_v45 = vadd.f32 %v2834_v16, %v2812_v50 }
 0x31a   : > { %v2883_v3 = vadd.f32 %v2812_v50, %v2836_v19 }
 0x31b   : > { %v1012_v11 = vmul.f32 %v2871_v45, %v2871_v45 }
 0x31c   : > { %1027 = vadd.xlane.f32.xlu0 %v1008_v22  ;;  %v1011_v9 = vmul.f32 %v2883_v3, %v2883_v3 }
 0x320   : > { %1025 = vadd.xlane.f32.xlu0 %v1007_v7  ;;  %v1782_v28 = vpop.f32.mrb[8].mxu1 }
 0x321   : > { %v2843_v34 = vadd.f32 %v1782_v28, %v2812_v50  ;;  %v934_v6 = vpop.f32.mrb[9].mxu1 }
 0x322   : > { %v2851_v10 = vadd.f32 %v2812_v50, %v934_v6 }
 0x323   : > { %991 = vadd.xlane.f32.xlu1 %v2843_v34  ;;  %v1014_v2 = vmul.f32 %v2843_v34, %v2843_v34 }
 0x324   : > { %983 = vadd.xlane.f32.xlu0 %v2846_v52  ;;  %v1013_v54 = vmul.f32 %v2851_v10, %v2851_v10 }
 0x327   : > { %989 = vadd.xlane.f32.xlu1 %v2851_v10 }
 0x328   : > { %981 = vadd.xlane.f32.xlu0 %v2854_v39  ;;  %v1785_v41 = vpop.f32.mrb[10].mxu1 }
 0x329   : > { %v944_v63 = vpop.f32.mrb[11].mxu1  ;;  %v2867_v60 = vadd.f32 %v1785_v41, %v2812_v50 }
 0x32a   : > { %v2879_v56 = vadd.f32 %v2812_v50, %v944_v63 }
 0x32b   : > { %1039 = vadd.xlane.f32.xlu1 %v1014_v2  ;;  %v1016_v48 = vmul.f32 %v2867_v60, %v2867_v60 }
 0x32c   : > { %1031 = vadd.xlane.f32.xlu0 %v1010_v47  ;;  %v1015_v40 = vmul.f32 %v2879_v56, %v2879_v56 }
 0x32f   : > { %1037 = vadd.xlane.f32.xlu1 %v1013_v54 }
 0x330   : > { %1029 = vadd.xlane.f32.xlu0 %v1009_v57  ;;  %v1788_v58 = vpop.f32.mrb[12].mxu1 }
 0x331   : > { %v954_v62 = vpop.f32.mrb[13].mxu1  ;;  %v2902_v31 = vadd.f32 %v1788_v58, %v2812_v50 }
 0x332   : > { %v2874_v13 = vadd.f32 %v2812_v50, %v954_v62 }
 0x333   : > { %995 = vadd.xlane.f32.xlu1 %v2867_v60  ;;  %v1018_v12 = vmul.f32 %v2902_v31, %v2902_v31 }
 0x334   : > { %987 = vadd.xlane.f32.xlu0 %v2871_v45  ;;  %v1017_v14 = vmul.f32 %v2874_v13, %v2874_v13 }
 0x337   : > { %993 = vadd.xlane.f32.xlu1 %v2879_v56 }
 0x338   : > { %985 = vadd.xlane.f32.xlu0 %v2883_v3  ;;  %v1791_v4 = vpop.f32.mrb[14].mxu1 }
 0x339   : > { %v2888_v20 = vadd.f32 %v1791_v4, %v2812_v50  ;;  %v964_v49 = vpop.f32.mrb[15].mxu1 }
 0x33a   : > { %v2893_v5 = vadd.f32 %v2812_v50, %v964_v49  ;;  %v2931_v49 = vld [vmem:[%s3107_s4 + $0x2] ss:$0 sm:$0xff] }
 0x33b   : > { %1043 = vadd.xlane.f32.xlu1 %v1016_v48  ;;  %v1020_v25 = vmul.f32 %v2888_v20, %v2888_v20 }
 0x33c   : > { %1033 = vadd.xlane.f32.xlu0 %v1011_v9  ;;  %v1019_v50 = vmul.f32 %v2893_v5, %v2893_v5 }
 0x33f   : > { %1041 = vadd.xlane.f32.xlu1 %v1015_v40 }
 0x340   : > { %1035 = vadd.xlane.f32.xlu0 %v1012_v11 }
 0x343   : > { %999 = vadd.xlane.f32.xlu1 %v2902_v31 }
 0x347   : > { %997 = vadd.xlane.f32.xlu1 %v2874_v13 }
 0x34b   : > { %1047 = vadd.xlane.f32.xlu1 %v1018_v12 }
 0x34f   : > { %1045 = vadd.xlane.f32.xlu1 %v1017_v14 }
 0x353   : > { %1003 = vadd.xlane.f32.xlu1 %v2888_v20 }
 0x357   : > { %1001 = vadd.xlane.f32.xlu1 %v2893_v5 }
 0x35b   : > { %1049 = vadd.xlane.f32.xlu1 %v1019_v50 }
 0x35f   : > { %1051 = vadd.xlane.f32.xlu1 %v1020_v25 }
 0x391   : > { %v976_v16 = vpop.xlane.xlu0 %975 }
 0x392   : > { %v1054_v18 = vmul.f32 0.0078125, %v976_v16 }
 0x394   : > { %v1086_v21 = vmul.f32 %v1054_v18, %v1054_v18  ;;  %v1134_v46 = vsub.f32 %v2815_v8, %v1054_v18 }
 0x395   : > { %v974_v17 = vpop.xlane.xlu0 %973 }
 0x396   : > { %v1053_v22 = vmul.f32 0.0078125, %v974_v17 }
 0x398   : > { %v1085_v7 = vmul.f32 %v1053_v22, %v1053_v22  ;;  %v1133_v35 = vsub.f32 %v2819_v38, %v1053_v22 }
 0x399   : > { %v1024_v19 = vpop.xlane.xlu0 %1023 }
 0x39a   : > { %v1070_v23 = vmul.f32 0.0078125, %v1024_v19 }
 0x39c   : > { %v1102_v26 = vsub.f32 %v1070_v23, %v1086_v21 }
 0x39d   : > { %v1022_v27 = vpop.xlane.xlu0 %1021 }
 0x39e   : > { %v1118_v28 = vmax.f32 %v1102_v26, 0.0  ;;  %v1069_v29 = vmul.f32 0.0078125, %v1022_v27 }
 0x3a0   : > { %v1150_v33 = vadd.f32 1e-05, %v1118_v28  ;;  %v1101_v6 = vsub.f32 %v1069_v29, %v1085_v7 }
 0x3a1   : > { %v980_v59 = vpop.xlane.xlu0 %979 }
 0x3a2   : > { %2073 = vrsqrt.f32 %v1150_v33  ;;  %v1117_v30 = vmax.f32 %v1101_v6, 0.0  ;;  %v1056_v41 = vmul.f32 0.0078125, %v980_v59 }
 0x3a4   : > { %v1149_v61 = vadd.f32 1e-05, %v1117_v30  ;;  %v1088_v32 = vmul.f32 %v1056_v41, %v1056_v41  ;;  %v1136_v28 = vsub.f32 %v2827_v36, %v1056_v41 }
 0x3a5   : > { %v978_v37 = vpop.xlane.xlu0 %977 }
 0x3a6   : > { %2075 = vrsqrt.f32 %v1149_v61  ;;  %v2916_v63 = vmul.f32 0.0078125, %v978_v37 }
 0x3a8   : > { %v1087_v57 = vmul.f32 %v2916_v63, %v2916_v63 }
 0x3a9   : > { %v1028_v42 = vpop.xlane.xlu0 %1027 }
 0x3aa   : > { %v1072_v2 = vmul.f32 0.0078125, %v1028_v42 }
 0x3ac   : > { %v2074_v47 = vpop.eup %2073  ;;  %v1104_v51 = vsub.f32 %v1072_v2, %v1088_v32 }
 0x3ad   : > { %v1182_v53 = vmul.f32 %v2074_v47, %v1134_v46  ;;  %v1026_v54 = vpop.xlane.xlu0 %1025 }
 0x3ae   : > { %v1120_v58 = vmax.f32 %v1104_v51, 0.0  ;;  %v1071_v43 = vmul.f32 0.0078125, %v1026_v54  ;;  %v1135_v51 = vsub.f32 %v2831_v15, %v2916_v63 }
 0x3af   : > { %v1203_v44 = vmul.f32 %v2922_v55, %v1182_v53 }
 0x3b0   : > { %v2076_v62 = vpop.eup %2075  ;;  %v1152_v0 = vadd.f32 1e-05, %v1120_v58  ;;  %v1103_v1 = vsub.f32 %v1071_v43, %v1087_v57  ;;  %v992_v8 = vpop.xlane.xlu1 %991 }
 0x3b1   : > { %v984_v24 = vpop.xlane.xlu0 %983  ;;  %v1181_v4 = vmul.f32 %v2076_v62, %v1133_v35  ;;  %v1224_v38 = vadd.f32 %v2931_v49, %v1203_v44  ;;  %v2935_v12 = vmul.f32 0.0078125, %v992_v8 }
 0x3b2   : > { %2077 = vrsqrt.f32 %v1152_v0  ;;  %v1119_v48 = vmax.f32 %v1103_v1, 0.0  ;;  %v2938_v25 = vmul.f32 0.0078125, %v984_v24 }
 0x3b3   : > { %v1202_v9 = vmul.f32 %v2922_v55, %v1181_v4  ;;  %v1240_v18 = vmax.f32 %v1224_v38, 0.0  ;;  %v1094_v19 = vmul.f32 %v2935_v12, %v2935_v12 }
 0x3b4   : > { %v1151_v40 = vadd.f32 1e-05, %v1119_v48  ;;  %v990_v11 = vpop.xlane.xlu1 %989  ;;  %v1090_v26 = vmul.f32 %v2938_v25, %v2938_v25 }
 0x3b5   : > { %v982_v14 = vpop.xlane.xlu0 %981  ;;  %v1223_v50 = vadd.f32 %v2931_v49, %v1202_v9  ;;  %v2942_v21 = vmul.f32 0.0078125, %v990_v11 }
 0x3b6   : > { %2079 = vrsqrt.f32 %v1151_v40  ;;  %v2946_v27 = vmul.f32 0.0078125, %v982_v14 }
 0x3b7   : > { %v1239_v16 = vmax.f32 %v1223_v50, 0.0  ;;  %v1093_v30 = vmul.f32 %v2942_v21, %v2942_v21 }
 0x3b8   : > { %v1040_v17 = vpop.xlane.xlu1 %1039  ;;  %v1089_v2 = vmul.f32 %v2946_v27, %v2946_v27 }
 0x3b9   : > { %v1078_v22 = vmul.f32 0.0078125, %v1040_v17  ;;  %1824 = vmatprep.mubr.f32.mxu0 %v1239_v16  ;;  %v1032_v23 = vpop.xlane.xlu0 %1031 }
 0x3ba   : > { %v1074_v7 = vmul.f32 0.0078125, %v1032_v23  ;;  %1825 = vmatmul.mubr.f32.vlgmr.msra.gmra.mrb[16].mxu0 %v1240_v18 }
 0x3bb   : > { %v1110_v29 = vsub.f32 %v1078_v22, %v1094_v19  ;;  %v1142_v19 = vsub.f32 %v2843_v34, %v2935_v12 }
 0x3bc   : > { %v2078_v33 = vpop.eup %2077  ;;  %v1106_v6 = vsub.f32 %v1074_v7, %v1090_v26  ;;  %v1038_v59 = vpop.xlane.xlu1 %1037 }
 0x3bd   : > { %v1126_v61 = vmax.f32 %v1110_v29, 0.0  ;;  %v1077_v37 = vmul.f32 0.0078125, %v1038_v59  ;;  %v1030_v42 = vpop.xlane.xlu0 %1029  ;;  %v1184_v32 = vmul.f32 %v2078_v33, %v1136_v28  ;;  %v1138_v28 = vsub.f32 %v2846_v52, %v2938_v25 }
 0x3be   : > { %v1122_v46 = vmax.f32 %v1106_v6, 0.0  ;;  %v1073_v47 = vmul.f32 0.0078125, %v1030_v42 }
 0x3bf   : > { %v1158_v36 = vadd.f32 1e-05, %v1126_v61  ;;  %v1109_v41 = vsub.f32 %v1077_v37, %v1093_v30  ;;  %v1205_v43 = vmul.f32 %v2922_v55, %v1184_v32  ;;  %v1141_v32 = vsub.f32 %v2851_v10, %v2942_v21 }
 0x3c0   : > { %v2080_v53 = vpop.eup %2079  ;;  %v1154_v54 = vadd.f32 1e-05, %v1122_v46  ;;  %v1105_v57 = vsub.f32 %v1073_v47, %v1089_v2  ;;  %v996_v58 = vpop.xlane.xlu1 %995  ;;  %v1137_v47 = vsub.f32 %v2854_v39, %v2946_v27 }
 0x3c1   : > { %2081 = vrsqrt.f32 %v1158_v36  ;;  %v1125_v35 = vmax.f32 %v1109_v41, 0.0  ;;  %v988_v62 = vpop.xlane.xlu0 %987  ;;  %v1183_v0 = vmul.f32 %v2080_v53, %v1135_v51  ;;  %v1226_v15 = vadd.f32 %v2931_v49, %v1205_v43 }
 0x3c2   : > { %2083 = vrsqrt.f32 %v1154_v54  ;;  %v1121_v1 = vmax.f32 %v1105_v57, 0.0  ;;  %v2958_v63 = vmul.f32 0.0078125, %v996_v58  ;;  %v2969_v22 = vmul.f32 0.0078125, %v988_v62 }
 0x3c3   : > { %v1157_v8 = vadd.f32 1e-05, %v1125_v35  ;;  %v1204_v44 = vmul.f32 %v2922_v55, %v1183_v0  ;;  %v1242_v14 = vmax.f32 %v1226_v15, 0.0 }
 0x3c4   : > { %v1153_v24 = vadd.f32 1e-05, %v1121_v1  ;;  %v994_v4 = vpop.xlane.xlu1 %993  ;;  %v1096_v50 = vmul.f32 %v2958_v63, %v2958_v63  ;;  %v1092_v2 = vmul.f32 %v2969_v22, %v2969_v22 }
 0x3c5   : > { %2085 = vrsqrt.f32 %v1157_v8  ;;  %v986_v48 = vpop.xlane.xlu0 %985  ;;  %v1225_v9 = vadd.f32 %v2931_v49, %v1204_v44  ;;  %v2965_v16 = vmul.f32 0.0078125, %v994_v4 }
 0x3c6   : > { %2087 = vrsqrt.f32 %v1153_v24  ;;  %v2961_v40 = vmul.f32 0.0078125, %v986_v48 }
 0x3c7   : > { %v1241_v11 = vmax.f32 %v1225_v9, 0.0  ;;  %v1095_v61 = vmul.f32 %v2965_v16, %v2965_v16 }
 0x3c8   : > { %v1044_v38 = vpop.xlane.xlu1 %1043  ;;  %v1091_v23 = vmul.f32 %v2961_v40, %v2961_v40 }
 0x3c9   : > { %v1080_v17 = vmul.f32 0.0078125, %v1044_v38  ;;  %1827 = vmatprep.mubr.f32.mxu0 %v1241_v11  ;;  %v1034_v18 = vpop.xlane.xlu0 %1033 }
 0x3ca   : > { %v1075_v26 = vmul.f32 0.0078125, %v1034_v18  ;;  %1828 = vmatmul.mubr.f32.gmra.mrb[18].mxu0 %v1242_v14 }
 0x3cb   : > { %v2082_v7 = vpop.eup %2081  ;;  %v1112_v29 = vsub.f32 %v1080_v17, %v1096_v50 }
 0x3cc   : > { %v2084_v33 = vpop.eup %2083  ;;  %v1190_v6 = vmul.f32 %v2082_v7, %v1142_v19  ;;  %v1107_v59 = vsub.f32 %v1075_v26, %v1091_v23  ;;  %v1042_v30 = vpop.xlane.xlu1 %1041  ;;  %v1144_v23 = vsub.f32 %v2867_v60, %v2958_v63  ;;  %v1139_v7 = vsub.f32 %v2883_v3, %v2961_v40 }
 0x3cd   : > { %v1128_v34 = vmax.f32 %v1112_v29, 0.0  ;;  %v1079_v12 = vmul.f32 0.0078125, %v1042_v30  ;;  %v1036_v37 = vpop.xlane.xlu0 %1035  ;;  %v1186_v42 = vmul.f32 %v2084_v33, %v1138_v28 }
 0x3ce   : > { %v1123_v46 = vmax.f32 %v1107_v59, 0.0  ;;  %v1076_v52 = vmul.f32 0.0078125, %v1036_v37  ;;  %v1211_v41 = vmul.f32 %v2922_v55, %v1190_v6 }
 0x3cf   : > { %v2086_v25 = vpop.eup %2085  ;;  %v1160_v51 = vadd.f32 1e-05, %v1128_v34  ;;  %v1111_v36 = vsub.f32 %v1079_v12, %v1095_v61  ;;  %v1207_v10 = vmul.f32 %v2922_v55, %v1186_v42  ;;  %v1143_v12 = vsub.f32 %v2879_v56, %v2965_v16 }
 0x3d0   : > { %v2088_v53 = vpop.eup %2087  ;;  %v1155_v54 = vadd.f32 1e-05, %v1123_v46  ;;  %v1108_v57 = vsub.f32 %v1076_v52, %v1092_v2  ;;  %v1000_v58 = vpop.xlane.xlu1 %999  ;;  %v1189_v43 = vmul.f32 %v2086_v25, %v1141_v32  ;;  %v1232_v27 = vadd.f32 %v2931_v49, %v1211_v41 }
 0x3d1   : > { %2089 = vrsqrt.f32 %v1160_v51  ;;  %v1127_v21 = vmax.f32 %v1111_v36, 0.0  ;;  %v1185_v35 = vmul.f32 %v2088_v53, %v1137_v47  ;;  %v1228_v4 = vadd.f32 %v2931_v49, %v1207_v10 }
 0x3d2   : > { %2091 = vrsqrt.f32 %v1155_v54  ;;  %v1124_v62 = vmax.f32 %v1108_v57, 0.0  ;;  %v1210_v0 = vmul.f32 %v2922_v55, %v1189_v43  ;;  %v2990_v15 = vmul.f32 0.0078125, %v1000_v58 }
 0x3d3   : > { %v1159_v1 = vadd.f32 1e-05, %v1127_v21  ;;  %v1206_v39 = vmul.f32 %v2922_v55, %v1185_v35  ;;  %v1248_v38 = vmax.f32 %v1232_v27, 0.0  ;;  %v1244_v50 = vmax.f32 %v1228_v4, 0.0 }
 0x3d4   : > { %v1156_v8 = vadd.f32 1e-05, %v1124_v62  ;;  %v998_v44 = vpop.xlane.xlu1 %997  ;;  %v1231_v24 = vadd.f32 %v2931_v49, %v1210_v0  ;;  %v1098_v17 = vmul.f32 %v2990_v15, %v2990_v15  ;;  %v1140_v32 = vsub.f32 %v2871_v45, %v2969_v22 }
 0x3d5   : > { %2093 = vrsqrt.f32 %v1159_v1  ;;  %v1227_v48 = vadd.f32 %v2931_v49, %v1206_v39  ;;  %v2995_v18 = vmul.f32 0.0078125, %v998_v44  ;;  %v1146_v0 = vsub.f32 %v2902_v31, %v2990_v15 }
 0x3d6   : > { %2095 = vrsqrt.f32 %v1156_v8  ;;  %v1247_v9 = vmax.f32 %v1231_v24, 0.0 }
 0x3d7   : > { %v1243_v11 = vmax.f32 %v1227_v48, 0.0  ;;  %v1097_v59 = vmul.f32 %v2995_v18, %v2995_v18  ;;  %v1145_v48 = vsub.f32 %v2874_v13, %v2995_v18 }
 0x3d8   : > { %1836 = vmatprep.mubr.f32.mxu1 %v1247_v9  ;;  %v1048_v14 = vpop.xlane.xlu1 %1047 }
 0x3d9   : > { %v1082_v19 = vmul.f32 0.0078125, %v1048_v14  ;;  %1830 = vmatprep.mubr.f32.mxu0 %v1243_v11  ;;  %1837 = vmatmul.mubr.f32.vlgmr.msra.gmra.mrb[16].mxu1 %v1248_v38 }
 0x3da   : > { %1831 = vmatmul.mubr.f32.gmra.mrb[20].mxu0 %v1244_v50 }
 0x3db   : > { %v2090_v26 = vpop.eup %2089  ;;  %v1114_v28 = vsub.f32 %v1082_v19, %v1098_v17 }
 0x3dc   : > { %v2092_v29 = vpop.eup %2091  ;;  %v1046_v33 = vpop.xlane.xlu1 %1045  ;;  %v1192_v6 = vmul.f32 %v2090_v26, %v1144_v23 }
 0x3dd   : > { %v1130_v30 = vmax.f32 %v1114_v28, 0.0  ;;  %v1081_v61 = vmul.f32 0.0078125, %v1046_v33  ;;  %v1187_v34 = vmul.f32 %v2092_v29, %v1139_v7 }
 0x3de   : > { %v1213_v3 = vmul.f32 %v2922_v55, %v1192_v6 }
 0x3df   : > { %v2094_v37 = vpop.eup %2093  ;;  %v1162_v60 = vadd.f32 1e-05, %v1130_v30  ;;  %v1113_v63 = vsub.f32 %v1081_v61, %v1097_v59  ;;  %v1208_v42 = vmul.f32 %v2922_v55, %v1187_v34 }
 0x3e0   : > { %v2096_v40 = vpop.eup %2095  ;;  %v1004_v2 = vpop.xlane.xlu1 %1003  ;;  %v1191_v46 = vmul.f32 %v2094_v37, %v1143_v12  ;;  %v1234_v36 = vadd.f32 %v2931_v49, %v1213_v3 }
 0x3e1   : > { %2097 = vrsqrt.f32 %v1162_v60  ;;  %v1129_v52 = vmax.f32 %v1113_v63, 0.0  ;;  %v1229_v25 = vadd.f32 %v2931_v49, %v1208_v42  ;;  %v1188_v56 = vmul.f32 %v2096_v40, %v1140_v32 }
 0x3e2   : > { %v1212_v47 = vmul.f32 %v2922_v55, %v1191_v46  ;;  %v1250_v58 = vmax.f32 %v1234_v36, 0.0  ;;  %v1068_v21 = vmul.f32 0.0078125, %v1004_v2 }
 0x3e3   : > { %v1161_v16 = vadd.f32 1e-05, %v1129_v52  ;;  %v1245_v51 = vmax.f32 %v1229_v25, 0.0  ;;  %v1209_v54 = vmul.f32 %v2922_v55, %v1188_v56 }
 0x3e4   : > { %v1002_v41 = vpop.xlane.xlu1 %1001  ;;  %v1233_v53 = vadd.f32 %v2931_v49, %v1212_v47  ;;  %v1100_v44 = vmul.f32 %v1068_v21, %v1068_v21  ;;  %v1148_v29 = vsub.f32 %v2888_v20, %v1068_v21 }
 0x3e5   : > { %2099 = vrsqrt.f32 %v1161_v16  ;;  %v1067_v45 = vmul.f32 0.0078125, %v1002_v41  ;;  %1833 = vmatprep.mubr.f32.mxu0 %v1245_v51  ;;  %v1230_v57 = vadd.f32 %v2931_v49, %v1209_v54 }
 0x3e6   : > { %v1249_v22 = vmax.f32 %v1233_v53, 0.0 }
 0x3e7   : > { %v1246_v10 = vmax.f32 %v1230_v57, 0.0  ;;  %v1099_v35 = vmul.f32 %v1067_v45, %v1067_v45  ;;  %v1147_v13 = vsub.f32 %v2893_v5, %v1067_v45  ;;  %v1576_v5 = vld [vmem:[%s3109_s6] ss:$0 sm:$0xff] }
 0x3e8   : > { %1839 = vmatprep.mubr.f32.mxu1 %v1249_v22  ;;  %v1050_v43 = vpop.xlane.xlu1 %1049 }
 0x3e9   : > { %v1083_v62 = vmul.f32 0.0078125, %v1050_v43  ;;  %1840 = vmatmul.mubr.f32.gmra.mrb[18].mxu1 %v1250_v58  ;;  %1834 = vmatmul.mubr.f32.gmra.mrb[22].mxu0 %v1246_v10 }
 0x3eb   : > { %v2098_v1 = vpop.eup %2097  ;;  %v1115_v39 = vsub.f32 %v1083_v62, %v1099_v35 }
 0x3ec   : > { %v1052_v27 = vpop.xlane.xlu1 %1051  ;;  %v1194_v8 = vmul.f32 %v2098_v1, %v1146_v0 }
 0x3ed   : > { %v1131_v24 = vmax.f32 %v1115_v39, 0.0  ;;  %v1084_v4 = vmul.f32 0.0078125, %v1052_v27 }
 0x3ee   : > { %v1215_v14 = vmul.f32 %v2922_v55, %v1194_v8 }
 0x3ef   : > { %v2100_v9 = vpop.eup %2099  ;;  %v1163_v11 = vadd.f32 1e-05, %v1131_v24  ;;  %v1116_v38 = vsub.f32 %v1084_v4, %v1100_v44 }
 0x3f0   : > { %v1193_v50 = vmul.f32 %v2100_v9, %v1145_v48  ;;  %v1236_v19 = vadd.f32 %v2931_v49, %v1215_v14 }
 0x3f1   : > { %2101 = vrsqrt.f32 %v1163_v11  ;;  %v1132_v17 = vmax.f32 %v1116_v38, 0.0 }
 0x3f2   : > { %v1214_v31 = vmul.f32 %v2922_v55, %v1193_v50  ;;  %v1252_v7 = vmax.f32 %v1236_v19, 0.0 }
 0x3f3   : > { %v1164_v15 = vadd.f32 1e-05, %v1132_v17 }
 0x3f4   : > { %v1235_v23 = vadd.f32 %v2931_v49, %v1214_v31 }
 0x3f5   : > { %2103 = vrsqrt.f32 %v1164_v15 }
 0x3f6   : > { %v1251_v26 = vmax.f32 %v1235_v23, 0.0 }
 0x3f8   : > { %1842 = vmatprep.mubr.f32.mxu1 %v1251_v26 }
 0x3f9   : > { %1843 = vmatmul.mubr.f32.gmra.mrb[20].mxu1 %v1252_v7 }
 0x3fb   : > { %v2102_v18 = vpop.eup %2101 }
 0x3fc   : > { %v1195_v28 = vmul.f32 %v2102_v18, %v1147_v13 }
 0x3fe   : > { %v1216_v33 = vmul.f32 %v2922_v55, %v1195_v28 }
 0x3ff   : > { %v2104_v6 = vpop.eup %2103 }
 0x400   : > { %v1237_v59 = vadd.f32 %v2931_v49, %v1216_v33  ;;  %v1196_v30 = vmul.f32 %v2104_v6, %v1148_v29 }
 0x402   : > { %v1253_v61 = vmax.f32 %v1237_v59, 0.0  ;;  %v1217_v34 = vmul.f32 %v2922_v55, %v1196_v30 }
 0x404   : > { %1845 = vmatprep.mubr.f32.mxu1 %v1253_v61  ;;  %v1238_v12 = vadd.f32 %v2931_v49, %v1217_v34 }
 0x406   : > { %v1254_v37 = vmax.f32 %v1238_v12, 0.0 }
 0x408   : > { %1846 = vmatmul.mubr.f32.gmra.mrb[22].mxu1 %v1254_v37 }
 0x48d   : > { %v1826_v20 = vpop.f32.mrb[16].mxu0 }
 0x48e   : > { %v1350_v60 = vadd.f32 %v1826_v20, %v1576_v5  ;;  %v1344_v63 = vpop.f32.mrb[17].mxu0 }
 0x48f   : > { %v1345_v42 = vadd.f32 %v1576_v5, %v1344_v63 }
 0x490   : > { %1424 = vst [vmem:[%s3034_s9 + $0x8] sm:$0xff] %v1350_v60 }
 0x491   : > { %1423 = vst [vmem:[%s3034_s9] sm:$0xff] %v1345_v42 }
 0x49d   : > { %v1829_v55 = vpop.f32.mrb[18].mxu0 }
 0x49e   : > { %v1360_v49 = vadd.f32 %v1829_v55, %v1576_v5  ;;  %v1354_v3 = vpop.f32.mrb[19].mxu0 }
 0x49f   : > { %v1355_v40 = vadd.f32 %v1576_v5, %v1354_v3 }
 0x4a0   : > { %1426 = vst [vmem:[%s3034_s9 + $0x18] sm:$0xff] %v1360_v49 }
 0x4a1   : > { %1425 = vst [vmem:[%s3034_s9 + $0x10] sm:$0xff] %v1355_v40 }
 0x4ac   : > { %v1838_v32 = vpop.f32.mrb[16].mxu1 }
 0x4ad   : > { %v1390_v2 = vadd.f32 %v1838_v32, %v1576_v5  ;;  %v1832_v46 = vpop.f32.mrb[20].mxu0  ;;  %v1384_v52 = vpop.f32.mrb[17].mxu1 }
 0x4ae   : > { %v1370_v25 = vadd.f32 %v1832_v46, %v1576_v5  ;;  %v1385_v47 = vadd.f32 %v1576_v5, %v1384_v52  ;;  %v1364_v56 = vpop.f32.mrb[21].mxu0 }
 0x4af   : > { %1432 = vst [vmem:[%s3034_s9 + $0x48] sm:$0xff] %v1390_v2  ;;  %v1365_v16 = vadd.f32 %v1576_v5, %v1364_v56 }
 0x4b0   : > { %1428 = vst [vmem:[%s3034_s9 + $0x28] sm:$0xff] %v1370_v25  ;;  %1431 = vst [vmem:[%s3034_s9 + $0x40] sm:$0xff] %v1385_v47 }
 0x4b1   : > { %1427 = vst [vmem:[%s3034_s9 + $0x20] sm:$0xff] %v1365_v16 }
 0x4bc   : > { %v1841_v51 = vpop.f32.mrb[18].mxu1  ;;  %v1835_v36 = vpop.f32.mrb[22].mxu0 }
 0x4bd   : > { %v1400_v41 = vadd.f32 %v1841_v51, %v1576_v5  ;;  %v1394_v53 = vpop.f32.mrb[19].mxu1  ;;  %v1380_v54 = vadd.f32 %v1835_v36, %v1576_v5  ;;  %v1374_v45 = vpop.f32.mrb[23].mxu0 }
 0x4be   : > { %v1395_v22 = vadd.f32 %v1576_v5, %v1394_v53  ;;  %v1375_v57 = vadd.f32 %v1576_v5, %v1374_v45 }
 0x4bf   : > { %1434 = vst [vmem:[%s3034_s9 + $0x58] sm:$0xff] %v1400_v41  ;;  %1430 = vst [vmem:[%s3034_s9 + $0x38] sm:$0xff] %v1380_v54 }
 0x4c0   : > { %1433 = vst [vmem:[%s3034_s9 + $0x50] sm:$0xff] %v1395_v22  ;;  %1429 = vst [vmem:[%s3034_s9 + $0x30] sm:$0xff] %v1375_v57 }
 0x4cc   : > { %v1844_v58 = vpop.f32.mrb[20].mxu1 }
 0x4cd   : > { %v1410_v43 = vadd.f32 %v1844_v58, %v1576_v5  ;;  %v1404_v10 = vpop.f32.mrb[21].mxu1 }
 0x4ce   : > { %v1405_v21 = vadd.f32 %v1576_v5, %v1404_v10 }
 0x4cf   : > { %1436 = vst [vmem:[%s3034_s9 + $0x68] sm:$0xff] %v1410_v43 }
 0x4d0   : > { %1435 = vst [vmem:[%s3034_s9 + $0x60] sm:$0xff] %v1405_v21 }
 0x4db   : > { %v1847_v35 = vpop.f32.mrb[22].mxu1 }
 0x4dc   : > { %v1420_v62 = vadd.f32 %v1847_v35, %v1576_v5  ;;  %v1414_v0 = vpop.f32.mrb[23].mxu1 }
 0x4dd   : > { %v1415_v1 = vadd.f32 %v1576_v5, %v1414_v0 }
 0x4de   : > { %1438 = vst [vmem:[%s3034_s9 + $0x78] sm:$0xff] %v1420_v62 }
 0x4df   : > { %1437 = vst [vmem:[%s3034_s9 + $0x70] sm:$0xff] %v1415_v1 }
 0x4e0   : > { %2232 = shalt.err (!%p2229_p4)
}
 0x4e1   : > { %s2233_s29 = scalar_lea.hbm %s3055_s14, 2048  ;;  %s2237_s30 = scalar_lea.hbm %s3110_s7, 4096 }
 0x4e2   : > { %p2234_p9 = scmp.ne.s32.totalorder %s3055_s14, %s2233_s29  ;;  %p2238_p8 = scmp.lt.u32.totalorder %s3055_s14, %s3110_s7 }
 0x4e3   : > { %p2239_p13 = scmp.lt.u32.totalorder %s2237_s30, %s2233_s29  ;;  %p2241_p10 = scmp.lt.u32.totalorder %s2233_s29, %s3055_s14 }
 0x4e4   : > { %p2235_p0 = pnand %p2234_p9, %p2498_p5 }
 0x4e5   : > { %p2240_p6 = por %p2239_p13, %p2238_p8 }
 0x4e6   : > { %p2236_p11 = pneg %p2235_p0 }
 0x4e7   : > { %p2242_p3 = por %p2241_p10, %p2240_p6 }
 0x4e9   : > { %p2243_p7 = pnand %p2242_p3, %p2236_p11 }
 0x4eb   : > { %2246 = shalt.err (!%p2243_p7)
}
 0x4ec   : > { %s2302_s15 = smov 128   ;;  %s2303_s10 = smov 8  }
 0x4ed   : > { %1974 = dma.vmem_to_hbm [thread:$0]  (%p2498_p5), %s3057_s13, 2048, %s3055_s14, %s1440_s12, %s2302_s15, %s2302_s15, %s2303_s10  }
 0x4ee PF: > { %s3130_s20 = sld [smem:[#allocation15_spill]]  ;;  %s1468_s28 = sand.u32 1, %s2281_s24  }
 0x4ef   : > { %p3132_p1 = scmp.ge.s32.totalorder %s2293_s27, 2  ;;  %s1469_s21 = scalar_lea.sflag [#allocation4], %s1468_s28 }
 0x4f4   : > { %p3131_p12 = scmp.ne.s32.totalorder %s3130_s20, 0 }
 0x4f6   : > { %p1991_p2 = pnand %p3132_p1, %p3131_p12 }
 0x4f8   : > { %2276 = dma.done.wait (!%p1991_p2), %s1469_s21, 2048  }
 0x4f9   : > { %2278 = vsyncadd (!%p1991_p2), %s1469_s21, 4294965248  ;;  %p22_p4 = scmp.ge.s32.totalorder %s2484_s22, 4   ;;  %s3133_s24 = smov %s2285_s25 }
 0x4fa   : > { %s3134_s25 = smov %s2289_s26  ;;  %s3135_s26 = smov %s2494_s18 }
 0x4fb   : > { %s3136_s27 = smov %s2484_s22  ;;  %24 = sbr.rel (!%p22_p4) target bundleno = 7 (0x7), region = 105 }
 0x502   :  { %1474 = vsyncpa [#allocation3], 1 }
 0x503   :  { %1476 = vsyncpa [#allocation3 + $0x1], 1 }
 0x504   :  { %1477 = vsyncpa [#allocation6], 1 }
 0x505   :  { %1478 = vsyncpa [#allocation9], 1 }
 0x506   :  { %1479 = vsyncpa [#allocation4], 1 }
 0x507   :  { %1481 = vsyncpa [#allocation4 + $0x1], 1 }

// kernel: tpu_custom_call.1
= control target key start
LH: loop header
LB: loop body
LE: loop exit
PB: predicated region body
PF: predicated region fallthrough
CT: control target
= control target key end

     0   :  { %12 = vsyncpa [#allocation3], 0  ;;  %s3103_s0 = inlined_call_operand.hbm [shape: f32[256,128], index: 0, kind: input, shape index: {}]   ;;  %s3104_s1 = inlined_call_operand.hbm [shape: f32[128,128], index: 1, kind: input, shape index: {}]   ;;  %s3105_s2 = inlined_call_operand.vmem [shape: f32[3,128], index: 2, kind: input, shape index: {}]   ;;  %s3106_s3 = inlined_call_operand.hbm [shape: f32[128,128], index: 3, kind: input, shape index: {}]   ;;  %s3107_s4 = inlined_call_operand.vmem [shape: f32[3,128], index: 4, kind: input, shape index: {}]   ;;  %s3108_s5 = inlined_call_operand.hbm [shape: f32[128,128], index: 5, kind: input, shape index: {}]   ;;  %s3109_s6 = inlined_call_operand.vmem [shape: f32[1,128], index: 6, kind: input, shape index: {}]   ;;  %s3110_s7 = inlined_call_operand.hbm [shape: f32[256,128], index: 7, kind: output, shape index: {}]  }
   0x1   :  { %14 = vsyncpa [#allocation3 + $0x1], 0 }
   0x2   :  { %15 = vsyncpa [#allocation6], 0 }
   0x3   :  { %16 = vsyncpa [#allocation9], 0 }
   0x4   :  { %17 = vsyncpa [#allocation4], 0 }
   0x5   :  { %19 = vsyncpa [#allocation4 + $0x1], 0  ;;  %s2344_s24 = smov 0   ;;  %s2346_s25 = smov 0  }
   0x6   :  { %s2348_s26 = smov 0   ;;  %s2350_s27 = smov 0  }
   0x7 LB: > { %s2365_s28 = sadd.s32 4294967295, %s2293_s27   ;;  %s1555_s29 = sadd.s32 4294967294, %s2293_s27   ;;  %s2293_s27 = sphi %s2350_s27, %s3136_s27   ;;  %s2289_s26 = sphi %s2348_s26, %s3135_s26   ;;  %s2285_s25 = sphi %s2346_s25, %s3134_s25   ;;  %s2281_s24 = sphi %s2344_s24, %s3133_s24  }
   0x8   : > { %p45_p0 = scmp.ne.s32.totalorder %s2285_s25, %s2281_s24  ;;  %p3111_p1 = scmp.eq.s32.totalorder %s2365_s28, 0 }
   0x9   : > { %p201_p3 = scmp.eq.s32.totalorder %s1555_s29, 1  ;;  %p1556_p5 = scmp.ge.s32.totalorder %s2293_s27, 1 }
   0xa   : > { %p2374_p4 = por %p3111_p1, %p45_p0  ;;  %p208_p7 = scmp.lt.s32.totalorder %s2293_s27, 3 }
   0xb   : > { %p2379_p6 = por %p201_p3, %p45_p0  ;;  %s2295_s10 = smov [#allocation5]  }
   0xc   : > { %s3115_s30 = scalar_select %p2374_p4, 1, 0 }
   0xd   : > { %s3116_s8 = scalar_select %p2379_p6, 1, 0 }
   0xe   : > { %p2384_p8 = pnand %p1556_p5, %p208_p7  ;;  %s220_s11 = sshll.u32 %s2295_s10, 4  ;;  %s2388_s11 = int_to_ptr.vmem [resolvable:$true] %s220_s11 }
   0xf   : > { %3117 = sst [smem:[#allocation15_spill]] %s3116_s8  ;;  %s2296_s13 = smov [#allocation7]  }
  0x10   : > { %s3118_s9 = scalar_select %p2384_p8, 1, 0 }
  0x11   : > { %p1976_p9 = pneg %p2384_p8  ;;  %s236_s14 = sshll.u32 %s2296_s13, 4  ;;  %s2399_s14 = int_to_ptr.vmem [resolvable:$true] %s236_s14 }
  0x12   : > { %s2297_s15 = smov [#allocation8]   ;;  %s2105_s19 = scalar_lea.hbm %s3104_s1, 2048 }
  0x13   : > { %p2395_p11 = pnand %p1976_p9, %p3111_p1  ;;  %s2401_s16 = sshll.u32 %s2297_s15, 4  ;;  %s253_s16 = int_to_ptr.vmem [resolvable:$true] %s2401_s16 }
  0x14   : > { %p2106_p12 = scmp.ne.s32.totalorder %s3104_s1, %s2105_s19  ;;  %p2112_p5 = scmp.lt.u32.totalorder %s2105_s19, %s3104_s1 }
  0x15   : > { %p2411_p13 = pneg %p2395_p11 }
  0x17   : > { %p2108_p0 = pnand %p2411_p13, %p2106_p12 }
  0x19   : > { %p2109_p3 = pneg %p2108_p0 }
  0x1b   : > { %p2114_p7 = pnand %p2112_p5, %p2109_p3 }
  0x1d   : > { %2117 = shalt.err (!%p2114_p7)
}
  0x1e   : > { %s2118_s10 = scalar_lea.vmem %s2388_s11, 2048  ;;  %p2126_p2 = scmp.lt.s32.totalorder %s2388_s11, %s2388_s11 }
  0x1f   : > { %p2119_p9 = scmp.ne.s32.totalorder %s2388_s11, %s2118_s10  ;;  %p2127_p6 = scmp.lt.s32.totalorder %s2118_s10, %s2118_s10 }
  0x21   : > { %p2121_p10 = pnand %p2119_p9, %p2411_p13  ;;  %p2128_p12 = por %p2127_p6, %p2126_p2 }
  0x23   : > { %p2122_p1 = pneg %p2121_p10 }
  0x25   : > { %p2129_p0 = pnand %p2128_p12, %p2122_p1 }
  0x27   : > { %2132 = shalt.err (!%p2129_p0)
}
  0x28   : > { %s2298_s13 = smov 128   ;;  %s2299_s15 = smov 8  }
  0x29   : > { %1979 = dma.hbm_to_vmem [thread:$0]  (!%p2395_p11), %s3104_s1, 2048, %s2388_s11, [#allocation6], %s2298_s13, %s2298_s13, %s2299_s15  }
  0x2a   : > { %s2133_s21 = scalar_lea.hbm %s3106_s3, 2048 }
  0x2b   : > { %p2134_p1 = scmp.ne.s32.totalorder %s3106_s3, %s2133_s21  ;;  %p2140_p10 = scmp.lt.u32.totalorder %s2133_s21, %s3106_s3 }
  0x2d   : > { %p2136_p2 = pnand %p2134_p1, %p2411_p13 }
  0x2f   : > { %p2137_p6 = pneg %p2136_p2 }
  0x31   : > { %p2142_p3 = pnand %p2140_p10, %p2137_p6 }
  0x33   : > { %2145 = shalt.err (!%p2142_p3)
}
  0x34   : > { %s2146_s11 = scalar_lea.vmem %s2399_s14, 2048  ;;  %p2154_p12 = scmp.lt.s32.totalorder %s2399_s14, %s2399_s14 }
  0x35   : > { %p2147_p5 = scmp.ne.s32.totalorder %s2399_s14, %s2146_s11  ;;  %p2155_p0 = scmp.lt.s32.totalorder %s2146_s11, %s2146_s11 }
  0x37   : > { %p2149_p7 = pnand %p2147_p5, %p2411_p13  ;;  %p2156_p1 = por %p2155_p0, %p2154_p12 }
  0x39   : > { %p2150_p9 = pneg %p2149_p7 }
  0x3b   : > { %p2157_p2 = pnand %p2156_p1, %p2150_p9 }
  0x3d   : > { %2160 = shalt.err (!%p2157_p2)
}
  0x3e   : > { %1982 = dma.hbm_to_vmem [thread:$0]  (!%p2395_p11), %s3106_s3, 2048, %s2399_s14, [#allocation6], %s2298_s13, %s2298_s13, %s2299_s15  }
  0x3f   : > { %s2161_s20 = scalar_lea.hbm %s3108_s5, 2048 }
  0x40   : > { %p2162_p6 = scmp.ne.s32.totalorder %s3108_s5, %s2161_s20  ;;  %p2168_p5 = scmp.lt.u32.totalorder %s2161_s20, %s3108_s5 }
  0x42   : > { %p2164_p10 = pnand %p2162_p6, %p2411_p13 }
  0x44   : > { %p2165_p3 = pneg %p2164_p10 }
  0x46   : > { %p2170_p7 = pnand %p2168_p5, %p2165_p3 }
  0x48   : > { %2173 = shalt.err (!%p2170_p7)
}
  0x49   : > { %s2174_s11 = scalar_lea.vmem %s253_s16, 2048  ;;  %p2182_p1 = scmp.lt.s32.totalorder %s253_s16, %s253_s16 }
  0x4a   : > { %p2175_p9 = scmp.ne.s32.totalorder %s253_s16, %s2174_s11  ;;  %p2183_p2 = scmp.lt.s32.totalorder %s2174_s11, %s2174_s11 }
  0x4c   : > { %p2177_p12 = pnand %p2175_p9, %p2411_p13  ;;  %p2184_p4 = por %p2183_p2, %p2182_p1 }
  0x4e   : > { %p2178_p0 = pneg %p2177_p12 }
  0x50   : > { %p2185_p8 = pnand %p2184_p4, %p2178_p0 }
  0x52   : > { %2188 = shalt.err (!%p2185_p8)
}
  0x53   : > { %1985 = dma.hbm_to_vmem [thread:$0]  (!%p2395_p11), %s3108_s5, 2048, %s253_s16, [#allocation9], %s2298_s13, %s2298_s13, %s2299_s15  }
  0x54   : > { %s2484_s22 = sadd.s32 1, %s2293_s27   ;;  %s32_s17 = sadd.s32 1, %s2289_s26 }
  0x55   : > { %s29_s12 = ssub.s32 %s2293_s27, %s2484_s22  ;;  %p39_p8 = scmp.ne.s32.totalorder %s2289_s26, %s2285_s25 }
  0x56   : > { %p30_p4 = scmp.eq.s32.totalorder %s29_s12, 0  ;;  %p40_p13 = scmp.eq.s32.totalorder %s2293_s27, 0 }
  0x57   : > { %p1997_p6 = scmp.lt.s32.totalorder %s2293_s27, 2  ;;  %p3121_p3 = scmp.eq.s32.totalorder %s2365_s28, 1 }
  0x58   : > { %s2494_s18 = scalar_select %p30_p4, %s2289_s26, %s32_s17  }
  0x59   : > { %p41_p10 = por %p40_p13, %p39_p8  ;;  %p2498_p5 = por %p3121_p3, %p39_p8 }
  0x5a   : > { %s269_s20 = sand.u32 1, %s2289_s26   ;;  %s1582_s21 = sshll.u32 %s2293_s27, 11 }
  0x5b   : > { %s1561_s16 = sshll.u32 %s269_s20, 7  ;;  %s2507_s10 = scalar_lea.hbm %s3103_s0, %s1582_s21 }
  0x5c   : > { %s273_s11 = scalar_lea.vmem [#allocation2], %s1561_s16  ;;  %p2509_p11 = pnand %p1997_p6, %p41_p10 }
  0x5d   : > { %s280_s14 = sshll.u32 %s273_s11, 4  ;;  %s2515_s12 = scalar_lea.sflag [#allocation3], %s269_s20  ;;  %s2513_s14 = int_to_ptr.vmem [resolvable:$true] %s280_s14 }
  0x5e   : > { %s2189_s17 = scalar_lea.hbm %s2507_s10, 2048  ;;  %p2191_p9 = pneg %p2509_p11 }
  0x5f   : > { %p2190_p7 = scmp.ne.s32.totalorder %s2507_s10, %s2189_s17  ;;  %s2194_s23 = scalar_lea.hbm %s3103_s0, 4096 }
  0x60   : > { %p2195_p1 = scmp.lt.u32.totalorder %s2507_s10, %s3103_s0  ;;  %p2196_p2 = scmp.lt.u32.totalorder %s2194_s23, %s2189_s17 }
  0x61   : > { %p2192_p12 = pnand %p2191_p9, %p2190_p7  ;;  %p2198_p8 = scmp.lt.u32.totalorder %s2189_s17, %s2507_s10 }
  0x62   : > { %p2197_p4 = por %p2196_p2, %p2195_p1 }
  0x63   : > { %p2193_p0 = pneg %p2192_p12 }
  0x64   : > { %p2199_p13 = por %p2198_p8, %p2197_p4 }
  0x66   : > { %p2200_p6 = pnand %p2199_p13, %p2193_p0 }
  0x68   : > { %2203 = shalt.err (!%p2200_p6)
}
  0x69   : > { %s2204_s20 = scalar_lea.vmem %s2513_s14, 2048  ;;  %s2300_s21 = smov [#allocation2]  }
  0x6a   : > { %p2205_p10 = scmp.ne.s32.totalorder %s2513_s14, %s2204_s20  ;;  %s2209_s16 = sshll.u32 %s2300_s21, 4  ;;  %s2210_s16 = int_to_ptr.vmem [resolvable:$false] %s2209_s16 }
  0x6b   : > { %s2211_s29 = scalar_lea.vmem %s2210_s16, 4096  ;;  %p2212_p12 = scmp.lt.s32.totalorder %s2513_s14, %s2210_s16 }
  0x6c   : > { %p2207_p3 = pnand %p2205_p10, %p2191_p9  ;;  %p2213_p1 = scmp.lt.s32.totalorder %s2211_s29, %s2204_s20 }
  0x6e   : > { %p2208_p7 = pneg %p2207_p3  ;;  %p2214_p2 = por %p2213_p1, %p2212_p12 }
  0x70   : > { %p2215_p4 = pnand %p2214_p2, %p2208_p7 }
  0x72   : > { %2218 = shalt.err (!%p2215_p4)
}
  0x73   : > { %1989 = dma.hbm_to_vmem [thread:$0]  (!%p2509_p11), %s2507_s10, 2048, %s2513_s14, %s2515_s12, %s2298_s13, %s2298_s13, %s2299_s15  }
  0x74   : > { %p3124_p9 = scmp.ne.s32.totalorder %s3118_s9, 0 }
  0x75   : > { %s2549_s17 = sand.u32 (!%p3124_p9), 1, %s2285_s25   ;;  %p3125_p0 = scmp.ne.s32.totalorder (!%p3124_p9), %s3115_s30, 0 }
  0x76   : > { %292 = sbr.rel (%p3124_p9) target bundleno = 1262 (0x4ee), region = 48  ;;  %s1565_s23 = sshll.u32 (!%p3124_p9), %s2549_s17, 7 }
  0x77   : > { %s295_s11 = scalar_lea.sflag (!%p3124_p9), [#allocation3], %s2549_s17  ;;  %s2555_s8 = scalar_lea.vmem (!%p3124_p9), [#allocation2], %s1565_s23 }
  0x7d   : > { %2264 = dma.done.wait (%p3125_p0), %s295_s11, 2048  }
  0x7e   : > { %2266 = vsyncadd (%p3125_p0), %s295_s11, 4294965248  ;;  %p3126_p11 = scmp.eq.s32.totalorder %s2365_s28, 0 }
  0x80   : > { %2268 = dma.done.wait (%p3126_p11), [#allocation6], 4096   ;;  %p3127_p8 = pmov %p3126_p11 }
  0x82   : > { %2270 = vsyncadd (%p3127_p8), [#allocation6], 4294963200  ;;  %p3128_p13 = pmov %p3127_p8 }
  0x83   : > { %p3129_p6 = pmov %p3127_p8 }
  0x84   : > { %2272 = dma.done.wait (%p3128_p13), [#allocation9], 2048  }
  0x85   : > { %2274 = vsyncadd (%p3129_p6), [#allocation9], 4294965248  ;;  %v359_v0 = vld [vmem:[#allocation5] sm:$0xff]  ;;  %v360_v1 = vld [vmem:[#allocation5 + $0x8] sm:$0xff]  ;;  %s3034_s9 = scalar_lea.vmem [#allocation10], %s1565_s23  ;;  %s1583_s23 = sshll.u32 %s2365_s28, 11 }
  0x86   : > { %v361_v2 = vld [vmem:[#allocation5 + $0x10] sm:$0xff]  ;;  %v1848_v3 = vpack.c.bf16 %v360_v1, %v359_v0  ;;  %v362_v4 = vld [vmem:[#allocation5 + $0x18] sm:$0xff]  ;;  %v363_v6 = vld [vmem:[#allocation5 + $0x20] sm:$0xff]  ;;  %s1453_s13 = sshll.u32 %s3034_s9, 4  ;;  %s3055_s14 = scalar_lea.hbm %s3110_s7, %s1583_s23  ;;  %s3057_s13 = int_to_ptr.vmem [resolvable:$true] %s1453_s13 }
  0x87   : > { %v1852_v5 = vpack.c.bf16 %v362_v4, %v361_v2  ;;  %v364_v7 = vld [vmem:[#allocation5 + $0x28] sm:$0xff]  ;;  %v343_v9 = vld [vmem:[%s2555_s8] sm:$0xff]  ;;  %v365_v10 = vld [vmem:[#allocation5 + $0x30] sm:$0xff]  ;;  %s1440_s12 = scalar_lea.sflag [#allocation4], %s2549_s17  ;;  %s2219_s20 = scalar_lea.vmem %s3057_s13, 2048 }
  0x88   : > { %1849 = vmatprep.subr.bf16.mxu0 %v1848_v3  ;;  %v1856_v8 = vpack.c.bf16 %v364_v7, %v363_v6  ;;  %v366_v11 = vld [vmem:[#allocation5 + $0x38] sm:$0xff]  ;;  %1712 = vmatprep.mubr.f32.mxu0 %v343_v9  ;;  %v367_v13 = vld [vmem:[#allocation5 + $0x40] sm:$0xff]  ;;  %v368_v14 = vld [vmem:[#allocation5 + $0x48] sm:$0xff]  ;;  %p2220_p10 = scmp.ne.s32.totalorder %s3057_s13, %s2219_s20  ;;  %s2301_s28 = smov [#allocation10]  }
  0x89   : > { %1851 = vmatpush3.bf16.msra.mxu0 %v1848_v3  ;;  %v1860_v12 = vpack.c.bf16 %v366_v11, %v365_v10  ;;  %v1864_v15 = vpack.c.bf16 %v368_v14, %v367_v13  ;;  %v369_v16 = vld [vmem:[#allocation5 + $0x50] sm:$0xff]  ;;  %v370_v17 = vld [vmem:[#allocation5 + $0x58] sm:$0xff]  ;;  %v371_v19 = vld [vmem:[#allocation5 + $0x60] sm:$0xff]  ;;  %s2223_s21 = sshll.u32 %s2301_s28, 4  ;;  %s2224_s21 = int_to_ptr.vmem [resolvable:$false] %s2223_s21 }
  0x8a   : > { %1853 = vmatprep.subr.bf16.mxu0 %v1852_v5  ;;  %v1868_v18 = vpack.c.bf16 %v370_v17, %v369_v16  ;;  %v372_v20 = vld [vmem:[#allocation5 + $0x68] sm:$0xff]  ;;  %v373_v22 = vld [vmem:[#allocation5 + $0x70] sm:$0xff]  ;;  %v374_v23 = vld [vmem:[#allocation5 + $0x78] sm:$0xff]  ;;  %p2221_p3 = pnand %p2220_p10, %p2498_p5  ;;  %s2225_s16 = scalar_lea.vmem %s2224_s21, 4096 }
  0x8b   : > { %v1872_v21 = vpack.c.bf16 %v372_v20, %v371_v19  ;;  %v1876_v24 = vpack.c.bf16 %v374_v23, %v373_v22  ;;  %v344_v25 = vld [vmem:[%s2555_s8 + $0x8] sm:$0xff]  ;;  %v345_v26 = vld [vmem:[%s2555_s8 + $0x10] sm:$0xff]  ;;  %v346_v27 = vld [vmem:[%s2555_s8 + $0x18] sm:$0xff]  ;;  %p2226_p12 = scmp.lt.s32.totalorder %s3057_s13, %s2224_s21  ;;  %p2227_p1 = scmp.lt.s32.totalorder %s2225_s16, %s2219_s20 }
  0x8c   : > { %v347_v28 = vld [vmem:[%s2555_s8 + $0x20] sm:$0xff]  ;;  %v348_v29 = vld [vmem:[%s2555_s8 + $0x28] sm:$0xff]  ;;  %v349_v30 = vld [vmem:[%s2555_s8 + $0x30] sm:$0xff]  ;;  %p2222_p7 = pneg %p2221_p3 }
  0x8d   : > { %1855 = vmatpush3.bf16.msra.mxu0 %v1852_v5  ;;  %v350_v31 = vld [vmem:[%s2555_s8 + $0x38] sm:$0xff]  ;;  %v351_v32 = vld [vmem:[%s2555_s8 + $0x40] sm:$0xff]  ;;  %v352_v33 = vld [vmem:[%s2555_s8 + $0x48] sm:$0xff]  ;;  %p2228_p2 = por %p2227_p1, %p2226_p12 }
  0x8e   : > { %1857 = vmatprep.subr.bf16.mxu0 %v1856_v8  ;;  %v353_v34 = vld [vmem:[%s2555_s8 + $0x50] sm:$0xff]  ;;  %v354_v35 = vld [vmem:[%s2555_s8 + $0x58] sm:$0xff]  ;;  %v355_v36 = vld [vmem:[%s2555_s8 + $0x60] sm:$0xff] }
  0x8f   : > { %v356_v37 = vld [vmem:[%s2555_s8 + $0x68] sm:$0xff]  ;;  %v357_v38 = vld [vmem:[%s2555_s8 + $0x70] sm:$0xff]  ;;  %v358_v39 = vld [vmem:[%s2555_s8 + $0x78] sm:$0xff]  ;;  %p2229_p4 = pnand %p2228_p2, %p2222_p7 }
  0x90   : > { %v2588_v40 = vld [vmem:[%s3105_s2] ss:$0 sm:$0xff]  ;;  %v808_v60 = vld [vmem:[#allocation7 + $0x8] sm:$0xff]  ;;  %v809_v1 = vld [vmem:[#allocation7 + $0x10] sm:$0xff] }
  0x91   : > { %1859 = vmatpush3.bf16.msra.mxu0 %v1856_v8  ;;  %v807_v59 = vld [vmem:[#allocation7] sm:$0xff]  ;;  %v810_v2 = vld [vmem:[#allocation7 + $0x18] sm:$0xff]  ;;  %v812_v11 = vld [vmem:[#allocation7 + $0x28] sm:$0xff] }
  0x92   : > { %1861 = vmatprep.subr.bf16.mxu0 %v1860_v12  ;;  %v1880_v62 = vpack.c.bf16 %v808_v60, %v807_v59  ;;  %v1884_v5 = vpack.c.bf16 %v810_v2, %v809_v1  ;;  %v811_v10 = vld [vmem:[#allocation7 + $0x20] sm:$0xff]  ;;  %v813_v17 = vld [vmem:[#allocation7 + $0x30] sm:$0xff]  ;;  %v816_v23 = vld [vmem:[#allocation7 + $0x48] sm:$0xff] }
  0x93   : > { %v815_v22 = vld [vmem:[#allocation7 + $0x40] sm:$0xff] }
  0x94   : > { %1881 = vmatprep.subr.bf16.mxu1 %v1880_v62 }
  0x95   : > { %1863 = vmatpush3.bf16.msra.mxu0 %v1860_v12  ;;  %1883 = vmatpush3.bf16.msra.mxu1 %v1880_v62  ;;  %v1888_v12 = vpack.c.bf16 %v812_v11, %v811_v10 }
  0x96   : > { %1865 = vmatprep.subr.bf16.mxu0 %v1864_v15  ;;  %1885 = vmatprep.subr.bf16.mxu1 %v1884_v5 }
  0x99   : > { %1867 = vmatpush3.bf16.msra.mxu0 %v1864_v15  ;;  %1887 = vmatpush3.bf16.msra.mxu1 %v1884_v5 }
  0x9a   : > { %1869 = vmatprep.subr.bf16.mxu0 %v1868_v18  ;;  %1889 = vmatprep.subr.bf16.mxu1 %v1888_v12 }
  0x9d   : > { %1871 = vmatpush3.bf16.msra.mxu0 %v1868_v18  ;;  %1891 = vmatpush3.bf16.msra.mxu1 %v1888_v12  ;;  %v814_v18 = vld [vmem:[#allocation7 + $0x38] sm:$0xff] }
  0x9e   : > { %1873 = vmatprep.subr.bf16.mxu0 %v1872_v21  ;;  %v1892_v19 = vpack.c.bf16 %v814_v18, %v813_v17 }
  0xa0   : > { %1893 = vmatprep.subr.bf16.mxu1 %v1892_v19 }
  0xa1   : > { %1875 = vmatpush3.bf16.msra.mxu0 %v1872_v21  ;;  %1895 = vmatpush3.bf16.msra.mxu1 %v1892_v19 }
  0xa2   : > { %1877 = vmatprep.subr.bf16.mxu0 %v1876_v24 }
  0xa5   : > { %1879 = vmatpush3.bf16.msra.mxu0 %v1876_v24  ;;  %v1896_v24 = vpack.c.bf16 %v816_v23, %v815_v22 }
  0xa7   : > { %1897 = vmatprep.subr.bf16.mxu1 %v1896_v24 }
  0xa8   : > { %1713 = vmatmul.mubr.f32.vlgmr.msra.gmra.mrb[0].mxu0 %v344_v25  ;;  %1899 = vmatpush3.bf16.msra.mxu1 %v1896_v24 }
  0xa9   : > { %1715 = vmatprep.mubr.f32.mxu0 %v345_v26 }
  0xac   : > { %1716 = vmatmul.mubr.f32.gmra.mrb[2].mxu0 %v346_v27  ;;  %v817_v27 = vld [vmem:[#allocation7 + $0x50] sm:$0xff] }
  0xad   : > { %1718 = vmatprep.mubr.f32.mxu0 %v347_v28  ;;  %v818_v28 = vld [vmem:[#allocation7 + $0x58] sm:$0xff] }
  0xb0   : > { %1719 = vmatmul.mubr.f32.gmra.mrb[4].mxu0 %v348_v29  ;;  %v1900_v29 = vpack.c.bf16 %v818_v28, %v817_v27 }
  0xb1   : > { %1721 = vmatprep.mubr.f32.mxu0 %v349_v30 }
  0xb2   : > { %1901 = vmatprep.subr.bf16.mxu1 %v1900_v29 }
  0xb3   : > { %1903 = vmatpush3.bf16.msra.mxu1 %v1900_v29 }
  0xb4   : > { %1722 = vmatmul.mubr.f32.gmra.mrb[6].mxu0 %v350_v31 }
  0xb5   : > { %1724 = vmatprep.mubr.f32.mxu0 %v351_v32 }
  0xb8   : > { %1725 = vmatmul.mubr.f32.gmra.mrb[8].mxu0 %v352_v33  ;;  %v819_v33 = vld [vmem:[#allocation7 + $0x60] sm:$0xff] }
  0xb9   : > { %1727 = vmatprep.mubr.f32.mxu0 %v353_v34  ;;  %v820_v34 = vld [vmem:[#allocation7 + $0x68] sm:$0xff] }
  0xbc   : > { %1728 = vmatmul.mubr.f32.gmra.mrb[10].mxu0 %v354_v35  ;;  %v1904_v35 = vpack.c.bf16 %v820_v34, %v819_v33 }
  0xbd   : > { %1730 = vmatprep.mubr.f32.mxu0 %v355_v36 }
  0xbe   : > { %1905 = vmatprep.subr.bf16.mxu1 %v1904_v35 }
  0xbf   : > { %1907 = vmatpush3.bf16.msra.mxu1 %v1904_v35 }
  0xc0   : > { %1731 = vmatmul.mubr.f32.gmra.mrb[12].mxu0 %v356_v37 }
  0xc1   : > { %1733 = vmatprep.mubr.f32.mxu0 %v357_v38  ;;  %v821_v38 = vld [vmem:[#allocation7 + $0x70] sm:$0xff] }
  0xc4   : > { %1734 = vmatmul.mubr.f32.gmra.mrb[14].mxu0 %v358_v39  ;;  %v822_v39 = vld [vmem:[#allocation7 + $0x78] sm:$0xff] }
 0x17b   : > { %v1714_v41 = vpop.f32.mrb[0].mxu0 }
 0x17c   : > { %v2591_v42 = vadd.f32 %v1714_v41, %v2588_v40  ;;  %v446_v43 = vpop.f32.mrb[1].mxu0  ;;  %v1908_v41 = vpack.c.bf16 %v822_v39, %v821_v38  ;;  %v2704_v38 = vld [vmem:[%s3105_s2 + $0x1] ss:$0 sm:$0xff] }
 0x17d   : > { %v2594_v44 = vadd.f32 %v2588_v40, %v446_v43 }
 0x17e   : > { %527 = vadd.xlane.f32.xlu0 %v2591_v42  ;;  %v558_v45 = vmul.f32 %v2591_v42, %v2591_v42  ;;  %1909 = vmatprep.subr.bf16.mxu1 %v1908_v41 }
 0x17f   : > { %v1717_v46 = vpop.f32.mrb[2].mxu0  ;;  %v557_v49 = vmul.f32 %v2594_v44, %v2594_v44  ;;  %1911 = vmatpush3.bf16.msra.mxu1 %v1908_v41 }
 0x180   : > { %575 = vadd.xlane.f32.xlu1 %v558_v45  ;;  %v456_v47 = vpop.f32.mrb[3].mxu0  ;;  %v2606_v52 = vadd.f32 %v1717_v46, %v2588_v40 }
 0x181   : > { %v2601_v48 = vadd.f32 %v2588_v40, %v456_v47 }
 0x182   : > { %525 = vadd.xlane.f32.xlu0 %v2594_v44  ;;  %v560_v57 = vmul.f32 %v2606_v52, %v2606_v52 }
 0x183   : > { %v1720_v50 = vpop.f32.mrb[4].mxu0  ;;  %v559_v54 = vmul.f32 %v2601_v48, %v2601_v48 }
 0x184   : > { %573 = vadd.xlane.f32.xlu1 %v557_v49  ;;  %v466_v51 = vpop.f32.mrb[5].mxu0  ;;  %v2618_v63 = vadd.f32 %v1720_v50, %v2588_v40 }
 0x185   : > { %v2613_v56 = vadd.f32 %v2588_v40, %v466_v51 }
 0x186   : > { %529 = vadd.xlane.f32.xlu0 %v2601_v48  ;;  %v562_v7 = vmul.f32 %v2618_v63, %v2618_v63 }
 0x187   : > { %v1723_v53 = vpop.f32.mrb[6].mxu0  ;;  %v561_v3 = vmul.f32 %v2613_v56, %v2613_v56 }
 0x188   : > { %531 = vadd.xlane.f32.xlu1 %v2606_v52  ;;  %v476_v55 = vpop.f32.mrb[7].mxu0  ;;  %v2630_v13 = vadd.f32 %v1723_v53, %v2588_v40 }
 0x189   : > { %v2625_v6 = vadd.f32 %v2588_v40, %v476_v55 }
 0x18a   : > { %577 = vadd.xlane.f32.xlu0 %v559_v54  ;;  %v564_v21 = vmul.f32 %v2630_v13, %v2630_v13 }
 0x18b   : > { %v1726_v58 = vpop.f32.mrb[8].mxu0  ;;  %v563_v15 = vmul.f32 %v2625_v6, %v2625_v6 }
 0x18c   : > { %579 = vadd.xlane.f32.xlu1 %v560_v57  ;;  %v486_v61 = vpop.f32.mrb[9].mxu0  ;;  %v2642_v25 = vadd.f32 %v1726_v58, %v2588_v40 }
 0x18d   : > { %v2637_v20 = vadd.f32 %v2588_v40, %v486_v61 }
 0x18e   : > { %533 = vadd.xlane.f32.xlu0 %v2613_v56  ;;  %v566_v31 = vmul.f32 %v2642_v25, %v2642_v25 }
 0x18f   : > { %v1729_v0 = vpop.f32.mrb[10].mxu0  ;;  %v565_v26 = vmul.f32 %v2637_v20, %v2637_v20 }
 0x190   : > { %535 = vadd.xlane.f32.xlu1 %v2618_v63  ;;  %v496_v4 = vpop.f32.mrb[11].mxu0  ;;  %v2654_v32 = vadd.f32 %v1729_v0, %v2588_v40 }
 0x191   : > { %v2649_v30 = vadd.f32 %v2588_v40, %v496_v4 }
 0x192   : > { %581 = vadd.xlane.f32.xlu0 %v561_v3  ;;  %v568_v37 = vmul.f32 %v2654_v32, %v2654_v32 }
 0x193   : > { %v1732_v8 = vpop.f32.mrb[12].mxu0  ;;  %v567_v36 = vmul.f32 %v2649_v30, %v2649_v30 }
 0x194   : > { %583 = vadd.xlane.f32.xlu1 %v562_v7  ;;  %v506_v9 = vpop.f32.mrb[13].mxu0  ;;  %v2666_v45 = vadd.f32 %v1732_v8, %v2588_v40 }
 0x195   : > { %v2663_v43 = vadd.f32 %v2588_v40, %v506_v9 }
 0x196   : > { %537 = vadd.xlane.f32.xlu0 %v2625_v6  ;;  %v570_v47 = vmul.f32 %v2666_v45, %v2666_v45 }
 0x197   : > { %v1735_v14 = vpop.f32.mrb[14].mxu0  ;;  %v569_v46 = vmul.f32 %v2663_v43, %v2663_v43 }
 0x198   : > { %539 = vadd.xlane.f32.xlu1 %v2630_v13  ;;  %v516_v16 = vpop.f32.mrb[15].mxu0  ;;  %v2678_v50 = vadd.f32 %v1735_v14, %v2588_v40 }
 0x199   : > { %v2675_v49 = vadd.f32 %v2588_v40, %v516_v16 }
 0x19a   : > { %585 = vadd.xlane.f32.xlu0 %v563_v15  ;;  %v572_v53 = vmul.f32 %v2678_v50, %v2678_v50 }
 0x19b   : > { %v571_v51 = vmul.f32 %v2675_v49, %v2675_v49 }
 0x19c   : > { %587 = vadd.xlane.f32.xlu1 %v564_v21 }
 0x19e   : > { %541 = vadd.xlane.f32.xlu0 %v2637_v20 }
 0x1a0   : > { %543 = vadd.xlane.f32.xlu1 %v2642_v25 }
 0x1a2   : > { %589 = vadd.xlane.f32.xlu0 %v565_v26 }
 0x1a4   : > { %591 = vadd.xlane.f32.xlu1 %v566_v31 }
 0x1a6   : > { %545 = vadd.xlane.f32.xlu0 %v2649_v30 }
 0x1a8   : > { %547 = vadd.xlane.f32.xlu1 %v2654_v32 }
 0x1aa   : > { %593 = vadd.xlane.f32.xlu0 %v567_v36 }
 0x1ac   : > { %595 = vadd.xlane.f32.xlu1 %v568_v37 }
 0x1ae   : > { %549 = vadd.xlane.f32.xlu0 %v2663_v43 }
 0x1b0   : > { %551 = vadd.xlane.f32.xlu1 %v2666_v45 }
 0x1b2   : > { %597 = vadd.xlane.f32.xlu0 %v569_v46 }
 0x1b4   : > { %599 = vadd.xlane.f32.xlu1 %v570_v47 }
 0x1b6   : > { %553 = vadd.xlane.f32.xlu0 %v2675_v49 }
 0x1b8   : > { %555 = vadd.xlane.f32.xlu1 %v2678_v50 }
 0x1ba   : > { %601 = vadd.xlane.f32.xlu0 %v571_v51 }
 0x1bc   : > { %603 = vadd.xlane.f32.xlu1 %v572_v53 }
 0x20b   : > { %v528_v54 = vpop.xlane.xlu0 %527 }
 0x20c   : > { %v606_v55 = vmul.f32 0.0078125, %v528_v54 }
 0x20d   : > { %v576_v57 = vpop.xlane.xlu1 %575 }
 0x20e   : > { %v638_v58 = vmul.f32 %v606_v55, %v606_v55  ;;  %v622_v59 = vmul.f32 0.0078125, %v576_v57  ;;  %v686_v29 = vsub.f32 %v2591_v42, %v606_v55 }
 0x20f   : > { %v526_v40 = vpop.xlane.xlu0 %525 }
 0x210   : > { %v654_v60 = vsub.f32 %v622_v59, %v638_v58  ;;  %v605_v61 = vmul.f32 0.0078125, %v526_v40  ;;  %v2715_v40 = vld [vmem:[%s3105_s2 + $0x2] ss:$0 sm:$0xff] }
 0x211   : > { %v574_v62 = vpop.xlane.xlu1 %573 }
 0x212   : > { %v670_v0 = vmax.f32 %v654_v60, 0.0  ;;  %v637_v1 = vmul.f32 %v605_v61, %v605_v61  ;;  %v621_v2 = vmul.f32 0.0078125, %v574_v62  ;;  %v685_v51 = vsub.f32 %v2594_v44, %v605_v61 }
 0x213   : > { %v530_v3 = vpop.xlane.xlu0 %529 }
 0x214   : > { %v702_v4 = vadd.f32 1e-05, %v670_v0  ;;  %v653_v5 = vsub.f32 %v621_v2, %v637_v1  ;;  %v2686_v7 = vmul.f32 0.0078125, %v530_v3 }
 0x215   : > { %v532_v8 = vpop.xlane.xlu1 %531 }
 0x216   : > { %2041 = vrsqrt.f32 %v702_v4  ;;  %v669_v9 = vmax.f32 %v653_v5, 0.0  ;;  %v2688_v10 = vmul.f32 0.0078125, %v532_v8  ;;  %v639_v14 = vmul.f32 %v2686_v7, %v2686_v7 }
 0x217   : > { %v578_v11 = vpop.xlane.xlu0 %577 }
 0x218   : > { %v701_v12 = vadd.f32 1e-05, %v669_v9  ;;  %v623_v15 = vmul.f32 0.0078125, %v578_v11  ;;  %v640_v17 = vmul.f32 %v2688_v10, %v2688_v10  ;;  %v687_v9 = vsub.f32 %v2601_v48, %v2686_v7 }
 0x219   : > { %v580_v16 = vpop.xlane.xlu1 %579 }
 0x21a   : > { %2043 = vrsqrt.f32 %v701_v12  ;;  %v655_v18 = vsub.f32 %v623_v15, %v639_v14  ;;  %v624_v19 = vmul.f32 0.0078125, %v580_v16 }
 0x21b   : > { %v534_v21 = vpop.xlane.xlu0 %533 }
 0x21c   : > { %v671_v22 = vmax.f32 %v655_v18, 0.0  ;;  %v656_v23 = vsub.f32 %v624_v19, %v640_v17  ;;  %v2694_v24 = vmul.f32 0.0078125, %v534_v21  ;;  %v688_v18 = vsub.f32 %v2606_v52, %v2688_v10 }
 0x21d   : > { %v536_v26 = vpop.xlane.xlu1 %535 }
 0x21e   : > { %v703_v27 = vadd.f32 1e-05, %v671_v22  ;;  %v672_v28 = vmax.f32 %v656_v23, 0.0  ;;  %v2697_v31 = vmul.f32 0.0078125, %v536_v26  ;;  %v641_v36 = vmul.f32 %v2694_v24, %v2694_v24 }
 0x21f   : > { %v582_v33 = vpop.xlane.xlu0 %581 }
 0x220   : > { %v2042_v34 = vpop.eup %2041  ;;  %2045 = vrsqrt.f32 %v703_v27  ;;  %v704_v35 = vadd.f32 1e-05, %v672_v28  ;;  %v625_v37 = vmul.f32 0.0078125, %v582_v33  ;;  %v642_v42 = vmul.f32 %v2697_v31, %v2697_v31 }
 0x221   : > { %v584_v39 = vpop.xlane.xlu1 %583  ;;  %v734_v41 = vmul.f32 %v2042_v34, %v686_v29 }
 0x222   : > { %2047 = vrsqrt.f32 %v704_v35  ;;  %v657_v46 = vsub.f32 %v625_v37, %v641_v36  ;;  %v626_v47 = vmul.f32 0.0078125, %v584_v39 }
 0x223   : > { %v538_v53 = vpop.xlane.xlu0 %537  ;;  %v755_v54 = vmul.f32 %v2704_v38, %v734_v41 }
 0x224   : > { %v2044_v55 = vpop.eup %2043  ;;  %v673_v57 = vmax.f32 %v657_v46, 0.0  ;;  %v658_v58 = vsub.f32 %v626_v47, %v642_v42  ;;  %v2710_v59 = vmul.f32 0.0078125, %v538_v53  ;;  %v689_v46 = vsub.f32 %v2613_v56, %v2694_v24 }
 0x225   : > { %v540_v60 = vpop.xlane.xlu1 %539  ;;  %v733_v62 = vmul.f32 %v2044_v55, %v685_v51  ;;  %v776_v3 = vadd.f32 %v2715_v40, %v755_v54 }
 0x226   : > { %v705_v0 = vadd.f32 1e-05, %v673_v57  ;;  %v674_v1 = vmax.f32 %v658_v58, 0.0  ;;  %v2717_v2 = vmul.f32 0.0078125, %v540_v60  ;;  %v643_v5 = vmul.f32 %v2710_v59, %v2710_v59 }
 0x227   : > { %v586_v44 = vpop.xlane.xlu0 %585  ;;  %v754_v61 = vmul.f32 %v2704_v38, %v733_v62  ;;  %v792_v7 = vmax.f32 %v776_v3, 0.0  ;;  %v690_v60 = vsub.f32 %v2618_v63, %v2697_v31 }
 0x228   : > { %2049 = vrsqrt.f32 %v705_v0  ;;  %v706_v4 = vadd.f32 1e-05, %v674_v1  ;;  %v627_v8 = vmul.f32 0.0078125, %v586_v44  ;;  %v644_v15 = vmul.f32 %v2717_v2, %v2717_v2 }
 0x229   : > { %v588_v11 = vpop.xlane.xlu1 %587  ;;  %v775_v12 = vadd.f32 %v2715_v40, %v754_v61 }
 0x22a   : > { %v2046_v14 = vpop.eup %2045  ;;  %2051 = vrsqrt.f32 %v706_v4  ;;  %v659_v16 = vsub.f32 %v627_v8, %v643_v5  ;;  %v628_v17 = vmul.f32 0.0078125, %v588_v11 }
 0x22b   : > { %v542_v19 = vpop.xlane.xlu0 %541  ;;  %v791_v21 = vmax.f32 %v775_v12, 0.0  ;;  %v735_v22 = vmul.f32 %v2046_v14, %v687_v9 }
 0x22c   : > { %v2048_v23 = vpop.eup %2047  ;;  %v675_v26 = vmax.f32 %v659_v16, 0.0  ;;  %v660_v27 = vsub.f32 %v628_v17, %v644_v15  ;;  %v2730_v48 = vmul.f32 0.0078125, %v542_v19  ;;  %v691_v17 = vsub.f32 %v2625_v6, %v2710_v59 }
 0x22d   : > { %1768 = vmatprep.mubr.f32.mxu1 %v791_v21  ;;  %v544_v28 = vpop.xlane.xlu1 %543  ;;  %v756_v29 = vmul.f32 %v2704_v38, %v735_v22  ;;  %v736_v33 = vmul.f32 %v2048_v23, %v688_v18 }
 0x22e   : > { %v707_v34 = vadd.f32 1e-05, %v675_v26  ;;  %v676_v35 = vmax.f32 %v660_v27, 0.0  ;;  %1769 = vmatmul.mubr.f32.vlgmr.msra.gmra.mrb[0].mxu1 %v792_v7  ;;  %v2733_v36 = vmul.f32 0.0078125, %v544_v28  ;;  %v645_v41 = vmul.f32 %v2730_v48, %v2730_v48 }
 0x22f   : > { %v590_v52 = vpop.xlane.xlu0 %589  ;;  %v777_v10 = vadd.f32 %v2715_v40, %v756_v29  ;;  %v757_v37 = vmul.f32 %v2704_v38, %v736_v33  ;;  %v692_v7 = vsub.f32 %v2630_v13, %v2717_v2 }
 0x230   : > { %2053 = vrsqrt.f32 %v707_v34  ;;  %v708_v39 = vadd.f32 1e-05, %v676_v35  ;;  %v629_v42 = vmul.f32 0.0078125, %v590_v52  ;;  %v646_v55 = vmul.f32 %v2733_v36, %v2733_v36 }
 0x231   : > { %v592_v47 = vpop.xlane.xlu1 %591  ;;  %v793_v51 = vmax.f32 %v777_v10, 0.0  ;;  %v778_v53 = vadd.f32 %v2715_v40, %v757_v37 }
 0x232   : > { %v2050_v54 = vpop.eup %2049  ;;  %2055 = vrsqrt.f32 %v708_v39  ;;  %v661_v57 = vsub.f32 %v629_v42, %v645_v41  ;;  %v630_v58 = vmul.f32 0.0078125, %v592_v47 }
 0x233   : > { %v546_v62 = vpop.xlane.xlu0 %545  ;;  %1771 = vmatprep.mubr.f32.mxu1 %v793_v51  ;;  %v794_v0 = vmax.f32 %v778_v53, 0.0  ;;  %v737_v1 = vmul.f32 %v2050_v54, %v689_v46  ;;  %v693_v54 = vsub.f32 %v2637_v20, %v2730_v48 }
 0x234   : > { %v2052_v44 = vpop.eup %2051  ;;  %v677_v56 = vmax.f32 %v661_v57, 0.0  ;;  %v662_v24 = vsub.f32 %v630_v58, %v646_v55  ;;  %v2746_v61 = vmul.f32 0.0078125, %v546_v62 }
 0x235   : > { %1772 = vmatmul.mubr.f32.gmra.mrb[2].mxu1 %v794_v0  ;;  %v548_v3 = vpop.xlane.xlu1 %547  ;;  %v758_v4 = vmul.f32 %v2704_v38, %v737_v1  ;;  %v738_v5 = vmul.f32 %v2052_v44, %v690_v60  ;;  %v694_v44 = vsub.f32 %v2642_v25, %v2733_v36 }
 0x236   : > { %v709_v8 = vadd.f32 1e-05, %v677_v56  ;;  %v678_v9 = vmax.f32 %v662_v24, 0.0  ;;  %v647_v11 = vmul.f32 %v2746_v61, %v2746_v61  ;;  %v2751_v63 = vmul.f32 0.0078125, %v548_v3 }
 0x237   : > { %v594_v31 = vpop.xlane.xlu0 %593  ;;  %v779_v12 = vadd.f32 %v2715_v40, %v758_v4  ;;  %v759_v14 = vmul.f32 %v2704_v38, %v738_v5 }
 0x238   : > { %2057 = vrsqrt.f32 %v709_v8  ;;  %v710_v15 = vadd.f32 1e-05, %v678_v9  ;;  %v631_v16 = vmul.f32 0.0078125, %v594_v31  ;;  %v648_v18 = vmul.f32 %v2751_v63, %v2751_v63 }
 0x239   : > { %v596_v19 = vpop.xlane.xlu1 %595  ;;  %v795_v21 = vmax.f32 %v779_v12, 0.0  ;;  %v780_v22 = vadd.f32 %v2715_v40, %v759_v14 }
 0x23a   : > { %v2054_v23 = vpop.eup %2053  ;;  %2059 = vrsqrt.f32 %v710_v15  ;;  %v663_v26 = vsub.f32 %v631_v16, %v647_v11  ;;  %v632_v27 = vmul.f32 0.0078125, %v596_v19  ;;  %v695_v19 = vsub.f32 %v2649_v30, %v2746_v61 }
 0x23b   : > { %v550_v28 = vpop.xlane.xlu0 %549  ;;  %1774 = vmatprep.mubr.f32.mxu1 %v795_v21  ;;  %v796_v29 = vmax.f32 %v780_v22, 0.0  ;;  %v739_v33 = vmul.f32 %v2054_v23, %v691_v17 }
 0x23c   : > { %v2056_v34 = vpop.eup %2055  ;;  %v679_v6 = vmax.f32 %v663_v26, 0.0  ;;  %v664_v59 = vsub.f32 %v632_v27, %v648_v18  ;;  %v2762_v35 = vmul.f32 0.0078125, %v550_v28 }
 0x23d   : > { %1775 = vmatmul.mubr.f32.gmra.mrb[4].mxu1 %v796_v29  ;;  %v552_v52 = vpop.xlane.xlu1 %551  ;;  %v760_v10 = vmul.f32 %v2704_v38, %v739_v33  ;;  %v740_v37 = vmul.f32 %v2056_v34, %v692_v7  ;;  %v696_v29 = vsub.f32 %v2654_v32, %v2751_v63 }
 0x23e   : > { %v711_v39 = vadd.f32 1e-05, %v679_v6  ;;  %v680_v41 = vmax.f32 %v664_v59, 0.0  ;;  %v649_v42 = vmul.f32 %v2762_v35, %v2762_v35  ;;  %v2767_v13 = vmul.f32 0.0078125, %v552_v52 }
 0x23f   : > { %v598_v2 = vpop.xlane.xlu0 %597  ;;  %v781_v46 = vadd.f32 %v2715_v40, %v760_v10  ;;  %v761_v47 = vmul.f32 %v2704_v38, %v740_v37  ;;  %v697_v32 = vsub.f32 %v2663_v43, %v2762_v35 }
 0x240   : > { %2061 = vrsqrt.f32 %v711_v39  ;;  %v712_v51 = vadd.f32 1e-05, %v680_v41  ;;  %v633_v53 = vmul.f32 0.0078125, %v598_v2  ;;  %v650_v55 = vmul.f32 %v2767_v13, %v2767_v13 }
 0x241   : > { %v600_v57 = vpop.xlane.xlu1 %599  ;;  %v797_v58 = vmax.f32 %v781_v46, 0.0  ;;  %v782_v60 = vadd.f32 %v2715_v40, %v761_v47  ;;  %v698_v47 = vsub.f32 %v2666_v45, %v2767_v13 }
 0x242   : > { %v2058_v62 = vpop.eup %2057  ;;  %2063 = vrsqrt.f32 %v712_v51  ;;  %v665_v0 = vsub.f32 %v633_v53, %v649_v42  ;;  %v634_v1 = vmul.f32 0.0078125, %v600_v57 }
 0x243   : > { %v554_v56 = vpop.xlane.xlu0 %553  ;;  %1777 = vmatprep.mubr.f32.mxu1 %v797_v58  ;;  %v798_v24 = vmax.f32 %v782_v60, 0.0  ;;  %v741_v3 = vmul.f32 %v2058_v62, %v693_v54 }
 0x244   : > { %v2060_v4 = vpop.eup %2059  ;;  %v681_v20 = vmax.f32 %v665_v0, 0.0  ;;  %v666_v48 = vsub.f32 %v634_v1, %v650_v55  ;;  %v2778_v5 = vmul.f32 0.0078125, %v554_v56 }
 0x245   : > { %1778 = vmatmul.mubr.f32.gmra.mrb[6].mxu1 %v798_v24  ;;  %v556_v8 = vpop.xlane.xlu1 %555  ;;  %v762_v9 = vmul.f32 %v2704_v38, %v741_v3  ;;  %v742_v11 = vmul.f32 %v2060_v4, %v694_v44 }
 0x246   : > { %v713_v31 = vadd.f32 1e-05, %v681_v20  ;;  %v682_v12 = vmax.f32 %v666_v48, 0.0  ;;  %v651_v14 = vmul.f32 %v2778_v5, %v2778_v5  ;;  %v620_v25 = vmul.f32 0.0078125, %v556_v8 }
 0x247   : > { %v602_v36 = vpop.xlane.xlu0 %601  ;;  %v783_v15 = vadd.f32 %v2715_v40, %v762_v9  ;;  %v763_v16 = vmul.f32 %v2704_v38, %v742_v11  ;;  %v699_v35 = vsub.f32 %v2675_v49, %v2778_v5 }
 0x248   : > { %2065 = vrsqrt.f32 %v713_v31  ;;  %v714_v17 = vadd.f32 1e-05, %v682_v12  ;;  %v635_v18 = vmul.f32 0.0078125, %v602_v36  ;;  %v652_v21 = vmul.f32 %v620_v25, %v620_v25 }
 0x249   : > { %v604_v22 = vpop.xlane.xlu1 %603  ;;  %v799_v23 = vmax.f32 %v783_v15, 0.0  ;;  %v784_v26 = vadd.f32 %v2715_v40, %v763_v16  ;;  %v700_v45 = vsub.f32 %v2678_v50, %v620_v25  ;;  %v2812_v50 = vld [vmem:[%s3107_s4] ss:$0 sm:$0xff] }
 0x24a   : > { %v2062_v27 = vpop.eup %2061  ;;  %2067 = vrsqrt.f32 %v714_v17  ;;  %v667_v7 = vsub.f32 %v635_v18, %v651_v14  ;;  %v636_v28 = vmul.f32 0.0078125, %v604_v22  ;;  %v1255_v17 = vld [vmem:[#allocation8] sm:$0xff]  ;;  %v1256_v18 = vld [vmem:[#allocation8 + $0x8] sm:$0xff] }
 0x24b   : > { %1780 = vmatprep.mubr.f32.mxu1 %v799_v23  ;;  %v800_v33 = vmax.f32 %v784_v26, 0.0  ;;  %v743_v34 = vmul.f32 %v2062_v27, %v695_v19  ;;  %v1257_v23 = vld [vmem:[#allocation8 + $0x10] sm:$0xff]  ;;  %v1258_v26 = vld [vmem:[#allocation8 + $0x18] sm:$0xff] }
 0x24c   : > { %v2064_v6 = vpop.eup %2063  ;;  %v683_v59 = vmax.f32 %v667_v7, 0.0  ;;  %v668_v52 = vsub.f32 %v636_v28, %v652_v21  ;;  %v1912_v21 = vpack.c.bf16 %v1256_v18, %v1255_v17  ;;  %v1916_v27 = vpack.c.bf16 %v1258_v26, %v1257_v23 }
 0x24d   : > { %1781 = vmatmul.mubr.f32.gmra.mrb[8].mxu1 %v800_v33  ;;  %v764_v30 = vmul.f32 %v2704_v38, %v743_v34  ;;  %v744_v61 = vmul.f32 %v2064_v6, %v696_v29  ;;  %v1259_v29 = vld [vmem:[#allocation8 + $0x20] sm:$0xff]  ;;  %v1260_v33 = vld [vmem:[#allocation8 + $0x28] sm:$0xff] }
 0x24e   : > { %v715_v10 = vadd.f32 1e-05, %v683_v59  ;;  %v684_v37 = vmax.f32 %v668_v52, 0.0  ;;  %1913 = vmatprep.subr.bf16.mxu0 %v1912_v21  ;;  %1944 = vmatprep.subr.bf16.mxu1 %v1912_v21  ;;  %v1920_v59 = vpack.c.bf16 %v1260_v33, %v1259_v29 }
 0x24f   : > { %v785_v39 = vadd.f32 %v2715_v40, %v764_v30  ;;  %v765_v41 = vmul.f32 %v2704_v38, %v744_v61  ;;  %1915 = vmatpush3.bf16.msra.mxu0 %v1912_v21  ;;  %1952 = vmatpush3.bf16.msra.mxu1 %v1912_v21  ;;  %v1261_v30 = vld [vmem:[#allocation8 + $0x30] sm:$0xff]  ;;  %v1262_v61 = vld [vmem:[#allocation8 + $0x38] sm:$0xff] }
 0x250   : > { %2069 = vrsqrt.f32 %v715_v10  ;;  %v716_v42 = vadd.f32 1e-05, %v684_v37  ;;  %1917 = vmatprep.subr.bf16.mxu0 %v1916_v27  ;;  %1945 = vmatprep.subr.bf16.mxu1 %v1916_v27  ;;  %v1924_v37 = vpack.c.bf16 %v1262_v61, %v1261_v30 }
 0x251   : > { %v801_v63 = vmax.f32 %v785_v39, 0.0  ;;  %v786_v2 = vadd.f32 %v2715_v40, %v765_v41 }
 0x252   : > { %v2066_v46 = vpop.eup %2065  ;;  %2071 = vrsqrt.f32 %v716_v42  ;;  %v1263_v42 = vld [vmem:[#allocation8 + $0x40] sm:$0xff] }
 0x253   : > { %1783 = vmatprep.mubr.f32.mxu1 %v801_v63  ;;  %v802_v51 = vmax.f32 %v786_v2, 0.0  ;;  %v745_v53 = vmul.f32 %v2066_v46, %v697_v32  ;;  %1919 = vmatpush3.bf16.msra.mxu0 %v1916_v27  ;;  %v1264_v32 = vld [vmem:[#allocation8 + $0x48] sm:$0xff] }
 0x254   : > { %v2068_v54 = vpop.eup %2067  ;;  %1953 = vmatpush3.bf16.msra.mxu1 %v1916_v27  ;;  %1921 = vmatprep.subr.bf16.mxu0 %v1920_v59  ;;  %v1928_v46 = vpack.c.bf16 %v1264_v32, %v1263_v42 }
 0x255   : > { %1784 = vmatmul.mubr.f32.gmra.mrb[10].mxu1 %v802_v51  ;;  %v766_v55 = vmul.f32 %v2704_v38, %v745_v53  ;;  %v746_v57 = vmul.f32 %v2068_v54, %v698_v47  ;;  %1946 = vmatprep.subr.bf16.mxu1 %v1920_v59  ;;  %v1265_v51 = vld [vmem:[#allocation8 + $0x50] sm:$0xff]  ;;  %v1266_v53 = vld [vmem:[#allocation8 + $0x58] sm:$0xff] }
 0x257   : > { %v787_v58 = vadd.f32 %v2715_v40, %v766_v55  ;;  %v767_v43 = vmul.f32 %v2704_v38, %v746_v57  ;;  %1923 = vmatpush3.bf16.msra.mxu0 %v1920_v59  ;;  %v1932_v55 = vpack.c.bf16 %v1266_v53, %v1265_v51 }
 0x258   : > { %1954 = vmatpush3.bf16.msra.mxu1 %v1920_v59  ;;  %1925 = vmatprep.subr.bf16.mxu0 %v1924_v37 }
 0x259   : > { %v803_v60 = vmax.f32 %v787_v58, 0.0  ;;  %v788_v62 = vadd.f32 %v2715_v40, %v767_v43  ;;  %1947 = vmatprep.subr.bf16.mxu1 %v1924_v37  ;;  %v1267_v43 = vld [vmem:[#allocation8 + $0x60] sm:$0xff] }
 0x25a   : > { %v2070_v0 = vpop.eup %2069 }
 0x25b   : > { %1786 = vmatprep.mubr.f32.mxu1 %v803_v60  ;;  %v804_v13 = vmax.f32 %v788_v62, 0.0  ;;  %v747_v1 = vmul.f32 %v2070_v0, %v699_v35  ;;  %1927 = vmatpush3.bf16.msra.mxu0 %v1924_v37  ;;  %v1268_v35 = vld [vmem:[#allocation8 + $0x68] sm:$0xff] }
 0x25c   : > { %v2072_v44 = vpop.eup %2071  ;;  %1955 = vmatpush3.bf16.msra.mxu1 %v1924_v37  ;;  %1929 = vmatprep.subr.bf16.mxu0 %v1928_v46  ;;  %v1936_v0 = vpack.c.bf16 %v1268_v35, %v1267_v43 }
 0x25d   : > { %1787 = vmatmul.mubr.f32.gmra.mrb[12].mxu1 %v804_v13  ;;  %v768_v56 = vmul.f32 %v2704_v38, %v747_v1  ;;  %v748_v24 = vmul.f32 %v2072_v44, %v700_v45  ;;  %1948 = vmatprep.subr.bf16.mxu1 %v1928_v46  ;;  %v1269_v1 = vld [vmem:[#allocation8 + $0x70] sm:$0xff]  ;;  %v1270_v44 = vld [vmem:[#allocation8 + $0x78] sm:$0xff] }
 0x25f   : > { %v789_v3 = vadd.f32 %v2715_v40, %v768_v56  ;;  %v769_v4 = vmul.f32 %v2704_v38, %v748_v24  ;;  %1931 = vmatpush3.bf16.msra.mxu0 %v1928_v46  ;;  %v1940_v24 = vpack.c.bf16 %v1270_v44, %v1269_v1 }
 0x260   : > { %1956 = vmatpush3.bf16.msra.mxu1 %v1928_v46  ;;  %1933 = vmatprep.subr.bf16.mxu0 %v1932_v55 }
 0x261   : > { %v805_v20 = vmax.f32 %v789_v3, 0.0  ;;  %v790_v49 = vadd.f32 %v2715_v40, %v769_v4  ;;  %1949 = vmatprep.subr.bf16.mxu1 %v1932_v55 }
 0x263   : > { %1789 = vmatprep.mubr.f32.mxu1 %v805_v20  ;;  %v806_v48 = vmax.f32 %v790_v49, 0.0  ;;  %1935 = vmatpush3.bf16.msra.mxu0 %v1932_v55 }
 0x264   : > { %1957 = vmatpush3.bf16.msra.mxu1 %v1932_v55  ;;  %1937 = vmatprep.subr.bf16.mxu0 %v1936_v0  ;;  %v2922_v55 = vld [vmem:[%s3107_s4 + $0x1] ss:$0 sm:$0xff] }
 0x265   : > { %1790 = vmatmul.mubr.f32.gmra.mrb[14].mxu1 %v806_v48  ;;  %1950 = vmatprep.subr.bf16.mxu1 %v1936_v0 }
 0x267   : > { %1939 = vmatpush3.bf16.msra.mxu0 %v1936_v0 }
 0x268   : > { %1958 = vmatpush3.bf16.msra.mxu1 %v1936_v0  ;;  %1941 = vmatprep.subr.bf16.mxu0 %v1940_v24 }
 0x269   : > { %1951 = vmatprep.subr.bf16.mxu1 %v1940_v24 }
 0x26b   : > { %1943 = vmatpush3.bf16.msra.mxu0 %v1940_v24 }
 0x26c   : > { %1959 = vmatpush3.bf16.msra.mxu1 %v1940_v24 }
 0x301   : > { %v1770_v5 = vpop.f32.mrb[0].mxu1 }
 0x302   : > { %v2815_v8 = vadd.f32 %v1770_v5, %v2812_v50  ;;  %v894_v9 = vpop.f32.mrb[1].mxu1 }
 0x303   : > { %v2819_v38 = vadd.f32 %v2812_v50, %v894_v9 }
 0x304   : > { %975 = vadd.xlane.f32.xlu0 %v2815_v8  ;;  %v1006_v31 = vmul.f32 %v2815_v8, %v2815_v8 }
 0x305   : > { %v1005_v12 = vmul.f32 %v2819_v38, %v2819_v38 }
 0x308   : > { %973 = vadd.xlane.f32.xlu0 %v2819_v38  ;;  %v1773_v40 = vpop.f32.mrb[2].mxu1 }
 0x309   : > { %v904_v11 = vpop.f32.mrb[3].mxu1  ;;  %v2827_v36 = vadd.f32 %v1773_v40, %v2812_v50 }
 0x30a   : > { %v2831_v15 = vadd.f32 %v2812_v50, %v904_v11 }
 0x30b   : > { %v1008_v22 = vmul.f32 %v2827_v36, %v2827_v36 }
 0x30c   : > { %1023 = vadd.xlane.f32.xlu0 %v1006_v31  ;;  %v1007_v7 = vmul.f32 %v2831_v15, %v2831_v15 }
 0x310   : > { %1021 = vadd.xlane.f32.xlu0 %v1005_v12  ;;  %v1776_v14 = vpop.f32.mrb[4].mxu1 }
 0x311   : > { %v914_v25 = vpop.f32.mrb[5].mxu1  ;;  %v2846_v52 = vadd.f32 %v1776_v14, %v2812_v50 }
 0x312   : > { %v2854_v39 = vadd.f32 %v2812_v50, %v914_v25 }
 0x313   : > { %v1010_v47 = vmul.f32 %v2846_v52, %v2846_v52 }
 0x314   : > { %979 = vadd.xlane.f32.xlu0 %v2827_v36  ;;  %v1009_v57 = vmul.f32 %v2854_v39, %v2854_v39 }
 0x318   : > { %977 = vadd.xlane.f32.xlu0 %v2831_v15  ;;  %v2834_v16 = vpop.f32.mrb[6].mxu1 }
 0x319   : > { %v2836_v19 = vpop.f32.mrb[7].mxu1  ;;  %v2871_v45 = vadd.f32 %v2834_v16, %v2812_v50 }
 0x31a   : > { %v2883_v3 = vadd.f32 %v2812_v50, %v2836_v19 }
 0x31b   : > { %v1012_v11 = vmul.f32 %v2871_v45, %v2871_v45 }
 0x31c   : > { %1027 = vadd.xlane.f32.xlu0 %v1008_v22  ;;  %v1011_v9 = vmul.f32 %v2883_v3, %v2883_v3 }
 0x320   : > { %1025 = vadd.xlane.f32.xlu0 %v1007_v7  ;;  %v1782_v28 = vpop.f32.mrb[8].mxu1 }
 0x321   : > { %v2843_v34 = vadd.f32 %v1782_v28, %v2812_v50  ;;  %v934_v6 = vpop.f32.mrb[9].mxu1 }
 0x322   : > { %v2851_v10 = vadd.f32 %v2812_v50, %v934_v6 }
 0x323   : > { %991 = vadd.xlane.f32.xlu1 %v2843_v34  ;;  %v1014_v2 = vmul.f32 %v2843_v34, %v2843_v34 }
 0x324   : > { %983 = vadd.xlane.f32.xlu0 %v2846_v52  ;;  %v1013_v54 = vmul.f32 %v2851_v10, %v2851_v10 }
 0x327   : > { %989 = vadd.xlane.f32.xlu1 %v2851_v10 }
 0x328   : > { %981 = vadd.xlane.f32.xlu0 %v2854_v39  ;;  %v1785_v41 = vpop.f32.mrb[10].mxu1 }
 0x329   : > { %v944_v63 = vpop.f32.mrb[11].mxu1  ;;  %v2867_v60 = vadd.f32 %v1785_v41, %v2812_v50 }
 0x32a   : > { %v2879_v56 = vadd.f32 %v2812_v50, %v944_v63 }
 0x32b   : > { %1039 = vadd.xlane.f32.xlu1 %v1014_v2  ;;  %v1016_v48 = vmul.f32 %v2867_v60, %v2867_v60 }
 0x32c   : > { %1031 = vadd.xlane.f32.xlu0 %v1010_v47  ;;  %v1015_v40 = vmul.f32 %v2879_v56, %v2879_v56 }
 0x32f   : > { %1037 = vadd.xlane.f32.xlu1 %v1013_v54 }
 0x330   : > { %1029 = vadd.xlane.f32.xlu0 %v1009_v57  ;;  %v1788_v58 = vpop.f32.mrb[12].mxu1 }
 0x331   : > { %v954_v62 = vpop.f32.mrb[13].mxu1  ;;  %v2902_v31 = vadd.f32 %v1788_v58, %v2812_v50 }
 0x332   : > { %v2874_v13 = vadd.f32 %v2812_v50, %v954_v62 }
 0x333   : > { %995 = vadd.xlane.f32.xlu1 %v2867_v60  ;;  %v1018_v12 = vmul.f32 %v2902_v31, %v2902_v31 }
 0x334   : > { %987 = vadd.xlane.f32.xlu0 %v2871_v45  ;;  %v1017_v14 = vmul.f32 %v2874_v13, %v2874_v13 }
 0x337   : > { %993 = vadd.xlane.f32.xlu1 %v2879_v56 }
 0x338   : > { %985 = vadd.xlane.f32.xlu0 %v2883_v3  ;;  %v1791_v4 = vpop.f32.mrb[14].mxu1 }
 0x339   : > { %v2888_v20 = vadd.f32 %v1791_v4, %v2812_v50  ;;  %v964_v49 = vpop.f32.mrb[15].mxu1 }
 0x33a   : > { %v2893_v5 = vadd.f32 %v2812_v50, %v964_v49  ;;  %v2931_v49 = vld [vmem:[%s3107_s4 + $0x2] ss:$0 sm:$0xff] }
 0x33b   : > { %1043 = vadd.xlane.f32.xlu1 %v1016_v48  ;;  %v1020_v25 = vmul.f32 %v2888_v20, %v2888_v20 }
 0x33c   : > { %1033 = vadd.xlane.f32.xlu0 %v1011_v9  ;;  %v1019_v50 = vmul.f32 %v2893_v5, %v2893_v5 }
 0x33f   : > { %1041 = vadd.xlane.f32.xlu1 %v1015_v40 }
 0x340   : > { %1035 = vadd.xlane.f32.xlu0 %v1012_v11 }
 0x343   : > { %999 = vadd.xlane.f32.xlu1 %v2902_v31 }
 0x347   : > { %997 = vadd.xlane.f32.xlu1 %v2874_v13 }
 0x34b   : > { %1047 = vadd.xlane.f32.xlu1 %v1018_v12 }
 0x34f   : > { %1045 = vadd.xlane.f32.xlu1 %v1017_v14 }
 0x353   : > { %1003 = vadd.xlane.f32.xlu1 %v2888_v20 }
 0x357   : > { %1001 = vadd.xlane.f32.xlu1 %v2893_v5 }
 0x35b   : > { %1049 = vadd.xlane.f32.xlu1 %v1019_v50 }
 0x35f   : > { %1051 = vadd.xlane.f32.xlu1 %v1020_v25 }
 0x391   : > { %v976_v16 = vpop.xlane.xlu0 %975 }
 0x392   : > { %v1054_v18 = vmul.f32 0.0078125, %v976_v16 }
 0x394   : > { %v1086_v21 = vmul.f32 %v1054_v18, %v1054_v18  ;;  %v1134_v46 = vsub.f32 %v2815_v8, %v1054_v18 }
 0x395   : > { %v974_v17 = vpop.xlane.xlu0 %973 }
 0x396   : > { %v1053_v22 = vmul.f32 0.0078125, %v974_v17 }
 0x398   : > { %v1085_v7 = vmul.f32 %v1053_v22, %v1053_v22  ;;  %v1133_v35 = vsub.f32 %v2819_v38, %v1053_v22 }
 0x399   : > { %v1024_v19 = vpop.xlane.xlu0 %1023 }
 0x39a   : > { %v1070_v23 = vmul.f32 0.0078125, %v1024_v19 }
 0x39c   : > { %v1102_v26 = vsub.f32 %v1070_v23, %v1086_v21 }
 0x39d   : > { %v1022_v27 = vpop.xlane.xlu0 %1021 }
 0x39e   : > { %v1118_v28 = vmax.f32 %v1102_v26, 0.0  ;;  %v1069_v29 = vmul.f32 0.0078125, %v1022_v27 }
 0x3a0   : > { %v1150_v33 = vadd.f32 1e-05, %v1118_v28  ;;  %v1101_v6 = vsub.f32 %v1069_v29, %v1085_v7 }
 0x3a1   : > { %v980_v59 = vpop.xlane.xlu0 %979 }
 0x3a2   : > { %2073 = vrsqrt.f32 %v1150_v33  ;;  %v1117_v30 = vmax.f32 %v1101_v6, 0.0  ;;  %v1056_v41 = vmul.f32 0.0078125, %v980_v59 }
 0x3a4   : > { %v1149_v61 = vadd.f32 1e-05, %v1117_v30  ;;  %v1088_v32 = vmul.f32 %v1056_v41, %v1056_v41  ;;  %v1136_v28 = vsub.f32 %v2827_v36, %v1056_v41 }
 0x3a5   : > { %v978_v37 = vpop.xlane.xlu0 %977 }
 0x3a6   : > { %2075 = vrsqrt.f32 %v1149_v61  ;;  %v2916_v63 = vmul.f32 0.0078125, %v978_v37 }
 0x3a8   : > { %v1087_v57 = vmul.f32 %v2916_v63, %v2916_v63 }
 0x3a9   : > { %v1028_v42 = vpop.xlane.xlu0 %1027 }
 0x3aa   : > { %v1072_v2 = vmul.f32 0.0078125, %v1028_v42 }
 0x3ac   : > { %v2074_v47 = vpop.eup %2073  ;;  %v1104_v51 = vsub.f32 %v1072_v2, %v1088_v32 }
 0x3ad   : > { %v1182_v53 = vmul.f32 %v2074_v47, %v1134_v46  ;;  %v1026_v54 = vpop.xlane.xlu0 %1025 }
 0x3ae   : > { %v1120_v58 = vmax.f32 %v1104_v51, 0.0  ;;  %v1071_v43 = vmul.f32 0.0078125, %v1026_v54  ;;  %v1135_v51 = vsub.f32 %v2831_v15, %v2916_v63 }
 0x3af   : > { %v1203_v44 = vmul.f32 %v2922_v55, %v1182_v53 }
 0x3b0   : > { %v2076_v62 = vpop.eup %2075  ;;  %v1152_v0 = vadd.f32 1e-05, %v1120_v58  ;;  %v1103_v1 = vsub.f32 %v1071_v43, %v1087_v57  ;;  %v992_v8 = vpop.xlane.xlu1 %991 }
 0x3b1   : > { %v984_v24 = vpop.xlane.xlu0 %983  ;;  %v1181_v4 = vmul.f32 %v2076_v62, %v1133_v35  ;;  %v1224_v38 = vadd.f32 %v2931_v49, %v1203_v44  ;;  %v2935_v12 = vmul.f32 0.0078125, %v992_v8 }
 0x3b2   : > { %2077 = vrsqrt.f32 %v1152_v0  ;;  %v1119_v48 = vmax.f32 %v1103_v1, 0.0  ;;  %v2938_v25 = vmul.f32 0.0078125, %v984_v24 }
 0x3b3   : > { %v1202_v9 = vmul.f32 %v2922_v55, %v1181_v4  ;;  %v1240_v18 = vmax.f32 %v1224_v38, 0.0  ;;  %v1094_v19 = vmul.f32 %v2935_v12, %v2935_v12 }
 0x3b4   : > { %v1151_v40 = vadd.f32 1e-05, %v1119_v48  ;;  %v990_v11 = vpop.xlane.xlu1 %989  ;;  %v1090_v26 = vmul.f32 %v2938_v25, %v2938_v25 }
 0x3b5   : > { %v982_v14 = vpop.xlane.xlu0 %981  ;;  %v1223_v50 = vadd.f32 %v2931_v49, %v1202_v9  ;;  %v2942_v21 = vmul.f32 0.0078125, %v990_v11 }
 0x3b6   : > { %2079 = vrsqrt.f32 %v1151_v40  ;;  %v2946_v27 = vmul.f32 0.0078125, %v982_v14 }
 0x3b7   : > { %v1239_v16 = vmax.f32 %v1223_v50, 0.0  ;;  %v1093_v30 = vmul.f32 %v2942_v21, %v2942_v21 }
 0x3b8   : > { %v1040_v17 = vpop.xlane.xlu1 %1039  ;;  %v1089_v2 = vmul.f32 %v2946_v27, %v2946_v27 }
 0x3b9   : > { %v1078_v22 = vmul.f32 0.0078125, %v1040_v17  ;;  %1824 = vmatprep.mubr.f32.mxu0 %v1239_v16  ;;  %v1032_v23 = vpop.xlane.xlu0 %1031 }
 0x3ba   : > { %v1074_v7 = vmul.f32 0.0078125, %v1032_v23  ;;  %1825 = vmatmul.mubr.f32.vlgmr.msra.gmra.mrb[16].mxu0 %v1240_v18 }
 0x3bb   : > { %v1110_v29 = vsub.f32 %v1078_v22, %v1094_v19  ;;  %v1142_v19 = vsub.f32 %v2843_v34, %v2935_v12 }
 0x3bc   : > { %v2078_v33 = vpop.eup %2077  ;;  %v1106_v6 = vsub.f32 %v1074_v7, %v1090_v26  ;;  %v1038_v59 = vpop.xlane.xlu1 %1037 }
 0x3bd   : > { %v1126_v61 = vmax.f32 %v1110_v29, 0.0  ;;  %v1077_v37 = vmul.f32 0.0078125, %v1038_v59  ;;  %v1030_v42 = vpop.xlane.xlu0 %1029  ;;  %v1184_v32 = vmul.f32 %v2078_v33, %v1136_v28  ;;  %v1138_v28 = vsub.f32 %v2846_v52, %v2938_v25 }
 0x3be   : > { %v1122_v46 = vmax.f32 %v1106_v6, 0.0  ;;  %v1073_v47 = vmul.f32 0.0078125, %v1030_v42 }
 0x3bf   : > { %v1158_v36 = vadd.f32 1e-05, %v1126_v61  ;;  %v1109_v41 = vsub.f32 %v1077_v37, %v1093_v30  ;;  %v1205_v43 = vmul.f32 %v2922_v55, %v1184_v32  ;;  %v1141_v32 = vsub.f32 %v2851_v10, %v2942_v21 }
 0x3c0   : > { %v2080_v53 = vpop.eup %2079  ;;  %v1154_v54 = vadd.f32 1e-05, %v1122_v46  ;;  %v1105_v57 = vsub.f32 %v1073_v47, %v1089_v2  ;;  %v996_v58 = vpop.xlane.xlu1 %995  ;;  %v1137_v47 = vsub.f32 %v2854_v39, %v2946_v27 }
 0x3c1   : > { %2081 = vrsqrt.f32 %v1158_v36  ;;  %v1125_v35 = vmax.f32 %v1109_v41, 0.0  ;;  %v988_v62 = vpop.xlane.xlu0 %987  ;;  %v1183_v0 = vmul.f32 %v2080_v53, %v1135_v51  ;;  %v1226_v15 = vadd.f32 %v2931_v49, %v1205_v43 }
 0x3c2   : > { %2083 = vrsqrt.f32 %v1154_v54  ;;  %v1121_v1 = vmax.f32 %v1105_v57, 0.0  ;;  %v2958_v63 = vmul.f32 0.0078125, %v996_v58  ;;  %v2969_v22 = vmul.f32 0.0078125, %v988_v62 }
 0x3c3   : > { %v1157_v8 = vadd.f32 1e-05, %v1125_v35  ;;  %v1204_v44 = vmul.f32 %v2922_v55, %v1183_v0  ;;  %v1242_v14 = vmax.f32 %v1226_v15, 0.0 }
 0x3c4   : > { %v1153_v24 = vadd.f32 1e-05, %v1121_v1  ;;  %v994_v4 = vpop.xlane.xlu1 %993  ;;  %v1096_v50 = vmul.f32 %v2958_v63, %v2958_v63  ;;  %v1092_v2 = vmul.f32 %v2969_v22, %v2969_v22 }
 0x3c5   : > { %2085 = vrsqrt.f32 %v1157_v8  ;;  %v986_v48 = vpop.xlane.xlu0 %985  ;;  %v1225_v9 = vadd.f32 %v2931_v49, %v1204_v44  ;;  %v2965_v16 = vmul.f32 0.0078125, %v994_v4 }
 0x3c6   : > { %2087 = vrsqrt.f32 %v1153_v24  ;;  %v2961_v40 = vmul.f32 0.0078125, %v986_v48 }
 0x3c7   : > { %v1241_v11 = vmax.f32 %v1225_v9, 0.0  ;;  %v1095_v61 = vmul.f32 %v2965_v16, %v2965_v16 }
 0x3c8   : > { %v1044_v38 = vpop.xlane.xlu1 %1043  ;;  %v1091_v23 = vmul.f32 %v2961_v40, %v2961_v40 }
 0x3c9   : > { %v1080_v17 = vmul.f32 0.0078125, %v1044_v38  ;;  %1827 = vmatprep.mubr.f32.mxu0 %v1241_v11  ;;  %v1034_v18 = vpop.xlane.xlu0 %1033 }
 0x3ca   : > { %v1075_v26 = vmul.f32 0.0078125, %v1034_v18  ;;  %1828 = vmatmul.mubr.f32.gmra.mrb[18].mxu0 %v1242_v14 }
 0x3cb   : > { %v2082_v7 = vpop.eup %2081  ;;  %v1112_v29 = vsub.f32 %v1080_v17, %v1096_v50 }
 0x3cc   : > { %v2084_v33 = vpop.eup %2083  ;;  %v1190_v6 = vmul.f32 %v2082_v7, %v1142_v19  ;;  %v1107_v59 = vsub.f32 %v1075_v26, %v1091_v23  ;;  %v1042_v30 = vpop.xlane.xlu1 %1041  ;;  %v1144_v23 = vsub.f32 %v2867_v60, %v2958_v63  ;;  %v1139_v7 = vsub.f32 %v2883_v3, %v2961_v40 }
 0x3cd   : > { %v1128_v34 = vmax.f32 %v1112_v29, 0.0  ;;  %v1079_v12 = vmul.f32 0.0078125, %v1042_v30  ;;  %v1036_v37 = vpop.xlane.xlu0 %1035  ;;  %v1186_v42 = vmul.f32 %v2084_v33, %v1138_v28 }
 0x3ce   : > { %v1123_v46 = vmax.f32 %v1107_v59, 0.0  ;;  %v1076_v52 = vmul.f32 0.0078125, %v1036_v37  ;;  %v1211_v41 = vmul.f32 %v2922_v55, %v1190_v6 }
 0x3cf   : > { %v2086_v25 = vpop.eup %2085  ;;  %v1160_v51 = vadd.f32 1e-05, %v1128_v34  ;;  %v1111_v36 = vsub.f32 %v1079_v12, %v1095_v61  ;;  %v1207_v10 = vmul.f32 %v2922_v55, %v1186_v42  ;;  %v1143_v12 = vsub.f32 %v2879_v56, %v2965_v16 }
 0x3d0   : > { %v2088_v53 = vpop.eup %2087  ;;  %v1155_v54 = vadd.f32 1e-05, %v1123_v46  ;;  %v1108_v57 = vsub.f32 %v1076_v52, %v1092_v2  ;;  %v1000_v58 = vpop.xlane.xlu1 %999  ;;  %v1189_v43 = vmul.f32 %v2086_v25, %v1141_v32  ;;  %v1232_v27 = vadd.f32 %v2931_v49, %v1211_v41 }
 0x3d1   : > { %2089 = vrsqrt.f32 %v1160_v51  ;;  %v1127_v21 = vmax.f32 %v1111_v36, 0.0  ;;  %v1185_v35 = vmul.f32 %v2088_v53, %v1137_v47  ;;  %v1228_v4 = vadd.f32 %v2931_v49, %v1207_v10 }
 0x3d2   : > { %2091 = vrsqrt.f32 %v1155_v54  ;;  %v1124_v62 = vmax.f32 %v1108_v57, 0.0  ;;  %v1210_v0 = vmul.f32 %v2922_v55, %v1189_v43  ;;  %v2990_v15 = vmul.f32 0.0078125, %v1000_v58 }
 0x3d3   : > { %v1159_v1 = vadd.f32 1e-05, %v1127_v21  ;;  %v1206_v39 = vmul.f32 %v2922_v55, %v1185_v35  ;;  %v1248_v38 = vmax.f32 %v1232_v27, 0.0  ;;  %v1244_v50 = vmax.f32 %v1228_v4, 0.0 }
 0x3d4   : > { %v1156_v8 = vadd.f32 1e-05, %v1124_v62  ;;  %v998_v44 = vpop.xlane.xlu1 %997  ;;  %v1231_v24 = vadd.f32 %v2931_v49, %v1210_v0  ;;  %v1098_v17 = vmul.f32 %v2990_v15, %v2990_v15  ;;  %v1140_v32 = vsub.f32 %v2871_v45, %v2969_v22 }
 0x3d5   : > { %2093 = vrsqrt.f32 %v1159_v1  ;;  %v1227_v48 = vadd.f32 %v2931_v49, %v1206_v39  ;;  %v2995_v18 = vmul.f32 0.0078125, %v998_v44  ;;  %v1146_v0 = vsub.f32 %v2902_v31, %v2990_v15 }
 0x3d6   : > { %2095 = vrsqrt.f32 %v1156_v8  ;;  %v1247_v9 = vmax.f32 %v1231_v24, 0.0 }
 0x3d7   : > { %v1243_v11 = vmax.f32 %v1227_v48, 0.0  ;;  %v1097_v59 = vmul.f32 %v2995_v18, %v2995_v18  ;;  %v1145_v48 = vsub.f32 %v2874_v13, %v2995_v18 }
 0x3d8   : > { %1836 = vmatprep.mubr.f32.mxu1 %v1247_v9  ;;  %v1048_v14 = vpop.xlane.xlu1 %1047 }
 0x3d9   : > { %v1082_v19 = vmul.f32 0.0078125, %v1048_v14  ;;  %1830 = vmatprep.mubr.f32.mxu0 %v1243_v11  ;;  %1837 = vmatmul.mubr.f32.vlgmr.msra.gmra.mrb[16].mxu1 %v1248_v38 }
 0x3da   : > { %1831 = vmatmul.mubr.f32.gmra.mrb[20].mxu0 %v1244_v50 }
 0x3db   : > { %v2090_v26 = vpop.eup %2089  ;;  %v1114_v28 = vsub.f32 %v1082_v19, %v1098_v17 }
 0x3dc   : > { %v2092_v29 = vpop.eup %2091  ;;  %v1046_v33 = vpop.xlane.xlu1 %1045  ;;  %v1192_v6 = vmul.f32 %v2090_v26, %v1144_v23 }
 0x3dd   : > { %v1130_v30 = vmax.f32 %v1114_v28, 0.0  ;;  %v1081_v61 = vmul.f32 0.0078125, %v1046_v33  ;;  %v1187_v34 = vmul.f32 %v2092_v29, %v1139_v7 }
 0x3de   : > { %v1213_v3 = vmul.f32 %v2922_v55, %v1192_v6 }
 0x3df   : > { %v2094_v37 = vpop.eup %2093  ;;  %v1162_v60 = vadd.f32 1e-05, %v1130_v30  ;;  %v1113_v63 = vsub.f32 %v1081_v61, %v1097_v59  ;;  %v1208_v42 = vmul.f32 %v2922_v55, %v1187_v34 }
 0x3e0   : > { %v2096_v40 = vpop.eup %2095  ;;  %v1004_v2 = vpop.xlane.xlu1 %1003  ;;  %v1191_v46 = vmul.f32 %v2094_v37, %v1143_v12  ;;  %v1234_v36 = vadd.f32 %v2931_v49, %v1213_v3 }
 0x3e1   : > { %2097 = vrsqrt.f32 %v1162_v60  ;;  %v1129_v52 = vmax.f32 %v1113_v63, 0.0  ;;  %v1229_v25 = vadd.f32 %v2931_v49, %v1208_v42  ;;  %v1188_v56 = vmul.f32 %v2096_v40, %v1140_v32 }
 0x3e2   : > { %v1212_v47 = vmul.f32 %v2922_v55, %v1191_v46  ;;  %v1250_v58 = vmax.f32 %v1234_v36, 0.0  ;;  %v1068_v21 = vmul.f32 0.0078125, %v1004_v2 }
 0x3e3   : > { %v1161_v16 = vadd.f32 1e-05, %v1129_v52  ;;  %v1245_v51 = vmax.f32 %v1229_v25, 0.0  ;;  %v1209_v54 = vmul.f32 %v2922_v55, %v1188_v56 }
 0x3e4   : > { %v1002_v41 = vpop.xlane.xlu1 %1001  ;;  %v1233_v53 = vadd.f32 %v2931_v49, %v1212_v47  ;;  %v1100_v44 = vmul.f32 %v1068_v21, %v1068_v21  ;;  %v1148_v29 = vsub.f32 %v2888_v20, %v1068_v21 }
 0x3e5   : > { %2099 = vrsqrt.f32 %v1161_v16  ;;  %v1067_v45 = vmul.f32 0.0078125, %v1002_v41  ;;  %1833 = vmatprep.mubr.f32.mxu0 %v1245_v51  ;;  %v1230_v57 = vadd.f32 %v2931_v49, %v1209_v54 }
 0x3e6   : > { %v1249_v22 = vmax.f32 %v1233_v53, 0.0 }
 0x3e7   : > { %v1246_v10 = vmax.f32 %v1230_v57, 0.0  ;;  %v1099_v35 = vmul.f32 %v1067_v45, %v1067_v45  ;;  %v1147_v13 = vsub.f32 %v2893_v5, %v1067_v45  ;;  %v1576_v5 = vld [vmem:[%s3109_s6] ss:$0 sm:$0xff] }
 0x3e8   : > { %1839 = vmatprep.mubr.f32.mxu1 %v1249_v22  ;;  %v1050_v43 = vpop.xlane.xlu1 %1049 }
 0x3e9   : > { %v1083_v62 = vmul.f32 0.0078125, %v1050_v43  ;;  %1840 = vmatmul.mubr.f32.gmra.mrb[18].mxu1 %v1250_v58  ;;  %1834 = vmatmul.mubr.f32.gmra.mrb[22].mxu0 %v1246_v10 }
 0x3eb   : > { %v2098_v1 = vpop.eup %2097  ;;  %v1115_v39 = vsub.f32 %v1083_v62, %v1099_v35 }
 0x3ec   : > { %v1052_v27 = vpop.xlane.xlu1 %1051  ;;  %v1194_v8 = vmul.f32 %v2098_v1, %v1146_v0 }
 0x3ed   : > { %v1131_v24 = vmax.f32 %v1115_v39, 0.0  ;;  %v1084_v4 = vmul.f32 0.0078125, %v1052_v27 }
 0x3ee   : > { %v1215_v14 = vmul.f32 %v2922_v55, %v1194_v8 }
 0x3ef   : > { %v2100_v9 = vpop.eup %2099  ;;  %v1163_v11 = vadd.f32 1e-05, %v1131_v24  ;;  %v1116_v38 = vsub.f32 %v1084_v4, %v1100_v44 }
 0x3f0   : > { %v1193_v50 = vmul.f32 %v2100_v9, %v1145_v48  ;;  %v1236_v19 = vadd.f32 %v2931_v49, %v1215_v14 }
 0x3f1   : > { %2101 = vrsqrt.f32 %v1163_v11  ;;  %v1132_v17 = vmax.f32 %v1116_v38, 0.0 }
 0x3f2   : > { %v1214_v31 = vmul.f32 %v2922_v55, %v1193_v50  ;;  %v1252_v7 = vmax.f32 %v1236_v19, 0.0 }
 0x3f3   : > { %v1164_v15 = vadd.f32 1e-05, %v1132_v17 }
 0x3f4   : > { %v1235_v23 = vadd.f32 %v2931_v49, %v1214_v31 }
 0x3f5   : > { %2103 = vrsqrt.f32 %v1164_v15 }
 0x3f6   : > { %v1251_v26 = vmax.f32 %v1235_v23, 0.0 }
 0x3f8   : > { %1842 = vmatprep.mubr.f32.mxu1 %v1251_v26 }
 0x3f9   : > { %1843 = vmatmul.mubr.f32.gmra.mrb[20].mxu1 %v1252_v7 }
 0x3fb   : > { %v2102_v18 = vpop.eup %2101 }
 0x3fc   : > { %v1195_v28 = vmul.f32 %v2102_v18, %v1147_v13 }
 0x3fe   : > { %v1216_v33 = vmul.f32 %v2922_v55, %v1195_v28 }
 0x3ff   : > { %v2104_v6 = vpop.eup %2103 }
 0x400   : > { %v1237_v59 = vadd.f32 %v2931_v49, %v1216_v33  ;;  %v1196_v30 = vmul.f32 %v2104_v6, %v1148_v29 }
 0x402   : > { %v1253_v61 = vmax.f32 %v1237_v59, 0.0  ;;  %v1217_v34 = vmul.f32 %v2922_v55, %v1196_v30 }
 0x404   : > { %1845 = vmatprep.mubr.f32.mxu1 %v1253_v61  ;;  %v1238_v12 = vadd.f32 %v2931_v49, %v1217_v34 }
 0x406   : > { %v1254_v37 = vmax.f32 %v1238_v12, 0.0 }
 0x408   : > { %1846 = vmatmul.mubr.f32.gmra.mrb[22].mxu1 %v1254_v37 }
 0x48d   : > { %v1826_v20 = vpop.f32.mrb[16].mxu0 }
 0x48e   : > { %v1350_v60 = vadd.f32 %v1826_v20, %v1576_v5  ;;  %v1344_v63 = vpop.f32.mrb[17].mxu0 }
 0x48f   : > { %v1345_v42 = vadd.f32 %v1576_v5, %v1344_v63 }
 0x490   : > { %1424 = vst [vmem:[%s3034_s9 + $0x8] sm:$0xff] %v1350_v60 }
 0x491   : > { %1423 = vst [vmem:[%s3034_s9] sm:$0xff] %v1345_v42 }
 0x49d   : > { %v1829_v55 = vpop.f32.mrb[18].mxu0 }
 0x49e   : > { %v1360_v49 = vadd.f32 %v1829_v55, %v1576_v5  ;;  %v1354_v3 = vpop.f32.mrb[19].mxu0 }
 0x49f   : > { %v1355_v40 = vadd.f32 %v1576_v5, %v1354_v3 }
 0x4a0   : > { %1426 = vst [vmem:[%s3034_s9 + $0x18] sm:$0xff] %v1360_v49 }
 0x4a1   : > { %1425 = vst [vmem:[%s3034_s9 + $0x10] sm:$0xff] %v1355_v40 }
 0x4ac   : > { %v1838_v32 = vpop.f32.mrb[16].mxu1 }
 0x4ad   : > { %v1390_v2 = vadd.f32 %v1838_v32, %v1576_v5  ;;  %v1832_v46 = vpop.f32.mrb[20].mxu0  ;;  %v1384_v52 = vpop.f32.mrb[17].mxu1 }
 0x4ae   : > { %v1370_v25 = vadd.f32 %v1832_v46, %v1576_v5  ;;  %v1385_v47 = vadd.f32 %v1576_v5, %v1384_v52  ;;  %v1364_v56 = vpop.f32.mrb[21].mxu0 }
 0x4af   : > { %1432 = vst [vmem:[%s3034_s9 + $0x48] sm:$0xff] %v1390_v2  ;;  %v1365_v16 = vadd.f32 %v1576_v5, %v1364_v56 }
 0x4b0   : > { %1428 = vst [vmem:[%s3034_s9 + $0x28] sm:$0xff] %v1370_v25  ;;  %1431 = vst [vmem:[%s3034_s9 + $0x40] sm:$0xff] %v1385_v47 }
 0x4b1   : > { %1427 = vst [vmem:[%s3034_s9 + $0x20] sm:$0xff] %v1365_v16 }
 0x4bc   : > { %v1841_v51 = vpop.f32.mrb[18].mxu1  ;;  %v1835_v36 = vpop.f32.mrb[22].mxu0 }
 0x4bd   : > { %v1400_v41 = vadd.f32 %v1841_v51, %v1576_v5  ;;  %v1394_v53 = vpop.f32.mrb[19].mxu1  ;;  %v1380_v54 = vadd.f32 %v1835_v36, %v1576_v5  ;;  %v1374_v45 = vpop.f32.mrb[23].mxu0 }
 0x4be   : > { %v1395_v22 = vadd.f32 %v1576_v5, %v1394_v53  ;;  %v1375_v57 = vadd.f32 %v1576_v5, %v1374_v45 }
 0x4bf   : > { %1434 = vst [vmem:[%s3034_s9 + $0x58] sm:$0xff] %v1400_v41  ;;  %1430 = vst [vmem:[%s3034_s9 + $0x38] sm:$0xff] %v1380_v54 }
 0x4c0   : > { %1433 = vst [vmem:[%s3034_s9 + $0x50] sm:$0xff] %v1395_v22  ;;  %1429 = vst [vmem:[%s3034_s9 + $0x30] sm:$0xff] %v1375_v57 }
 0x4cc   : > { %v1844_v58 = vpop.f32.mrb[20].mxu1 }
 0x4cd   : > { %v1410_v43 = vadd.f32 %v1844_v58, %v1576_v5  ;;  %v1404_v10 = vpop.f32.mrb[21].mxu1 }
 0x4ce   : > { %v1405_v21 = vadd.f32 %v1576_v5, %v1404_v10 }
 0x4cf   : > { %1436 = vst [vmem:[%s3034_s9 + $0x68] sm:$0xff] %v1410_v43 }
 0x4d0   : > { %1435 = vst [vmem:[%s3034_s9 + $0x60] sm:$0xff] %v1405_v21 }
 0x4db   : > { %v1847_v35 = vpop.f32.mrb[22].mxu1 }
 0x4dc   : > { %v1420_v62 = vadd.f32 %v1847_v35, %v1576_v5  ;;  %v1414_v0 = vpop.f32.mrb[23].mxu1 }
 0x4dd   : > { %v1415_v1 = vadd.f32 %v1576_v5, %v1414_v0 }
 0x4de   : > { %1438 = vst [vmem:[%s3034_s9 + $0x78] sm:$0xff] %v1420_v62 }
 0x4df   : > { %1437 = vst [vmem:[%s3034_s9 + $0x70] sm:$0xff] %v1415_v1 }
 0x4e0   : > { %2232 = shalt.err (!%p2229_p4)
}
 0x4e1   : > { %s2233_s29 = scalar_lea.hbm %s3055_s14, 2048  ;;  %s2237_s30 = scalar_lea.hbm %s3110_s7, 4096 }
 0x4e2   : > { %p2234_p9 = scmp.ne.s32.totalorder %s3055_s14, %s2233_s29  ;;  %p2238_p8 = scmp.lt.u32.totalorder %s3055_s14, %s3110_s7 }
 0x4e3   : > { %p2239_p13 = scmp.lt.u32.totalorder %s2237_s30, %s2233_s29  ;;  %p2241_p10 = scmp.lt.u32.totalorder %s2233_s29, %s3055_s14 }
 0x4e4   : > { %p2235_p0 = pnand %p2234_p9, %p2498_p5 }
 0x4e5   : > { %p2240_p6 = por %p2239_p13, %p2238_p8 }
 0x4e6   : > { %p2236_p11 = pneg %p2235_p0 }
 0x4e7   : > { %p2242_p3 = por %p2241_p10, %p2240_p6 }
 0x4e9   : > { %p2243_p7 = pnand %p2242_p3, %p2236_p11 }
 0x4eb   : > { %2246 = shalt.err (!%p2243_p7)
}
 0x4ec   : > { %s2302_s15 = smov 128   ;;  %s2303_s10 = smov 8  }
 0x4ed   : > { %1974 = dma.vmem_to_hbm [thread:$0]  (%p2498_p5), %s3057_s13, 2048, %s3055_s14, %s1440_s12, %s2302_s15, %s2302_s15, %s2303_s10  }
 0x4ee PF: > { %s3130_s20 = sld [smem:[#allocation15_spill]]  ;;  %s1468_s28 = sand.u32 1, %s2281_s24  }
 0x4ef   : > { %p3132_p1 = scmp.ge.s32.totalorder %s2293_s27, 2  ;;  %s1469_s21 = scalar_lea.sflag [#allocation4], %s1468_s28 }
 0x4f4   : > { %p3131_p12 = scmp.ne.s32.totalorder %s3130_s20, 0 }
 0x4f6   : > { %p1991_p2 = pnand %p3132_p1, %p3131_p12 }
 0x4f8   : > { %2276 = dma.done.wait (!%p1991_p2), %s1469_s21, 2048  }
 0x4f9   : > { %2278 = vsyncadd (!%p1991_p2), %s1469_s21, 4294965248  ;;  %p22_p4 = scmp.ge.s32.totalorder %s2484_s22, 4   ;;  %s3133_s24 = smov %s2285_s25 }
 0x4fa   : > { %s3134_s25 = smov %s2289_s26  ;;  %s3135_s26 = smov %s2494_s18 }
 0x4fb   : > { %s3136_s27 = smov %s2484_s22  ;;  %24 = sbr.rel (!%p22_p4) target bundleno = 7 (0x7), region = 105 }
 0x502   :  { %1474 = vsyncpa [#allocation3], 1 }
 0x503   :  { %1476 = vsyncpa [#allocation3 + $0x1], 1 }
 0x504   :  { %1477 = vsyncpa [#allocation6], 1 }
 0x505   :  { %1478 = vsyncpa [#allocation9], 1 }
 0x506   :  { %1479 = vsyncpa [#allocation4], 1 }
 0x507   :  { %1481 = vsyncpa [#allocation4 + $0x1], 1 }

</bundles_post_ra>
